<compile_context>
chip_gen: v5e
topology: v5e:2x2
jax: 0.10.0
libtpu: 0.0.40
codegen_flags: <defaults>
</compile_context>

<pallas_src>
import functools
import math

import jax
import jax.numpy as jnp
from jax import lax
from jax.experimental import pallas as pl
from jax.experimental.pallas import tpu as pltpu

_INV_SQRT_2 = 0.7071067811865475  # 1/sqrt(2), precomputed (saves a VALU recip)


def _usable_vmem_bytes():
    """Per-generation scoped-VMEM budget with headroom for compiler scratch."""
    phys = 64 * 1024 * 1024  # conservative default = v7x physical VMEM
    try:
        info = pltpu.get_tpu_info()
        phys = int(getattr(info, "vmem_capacity_bytes", phys)) or phys
    except Exception:
        pass
    # v7x (64 MiB physical)  -> ~51 MiB scoped budget
    # v5e/v6e (128 MiB phys) -> ~102 MiB scoped budget
    return min(int(phys * 0.8), phys - (8 << 20))


_USABLE_VMEM = _usable_vmem_bytes()


def _round_up(x, m):
    return -(-x // m) * m


def _choose_tm(M, tm_max):
    """Row tile: large enough to amortize per-step overhead, >=2 programs so
    v7x's second TensorCore is used when possible, low padding waste."""
    tm_max = max(8, min(tm_max, 1024))
    if M <= 64:
        return _round_up(M, 8)
    if M <= tm_max:
        # Small/medium M: split into two programs (megacore on v7x).
        return _round_up(-(-M // 2), 8)
    best = None
    for tm in (1024, 896, 768, 640, 512, 384, 256, 128):
        if tm > tm_max:
            continue
        Mp = _round_up(M, tm)
        waste = Mp - M
        if waste * 8 <= Mp:            # <= 12.5% padded rows: take the biggest
            return tm
        if best is None or waste < best[1]:
            best = (tm, waste)
    return best[0] if best is not None else max(8, (tm_max // 8) * 8)


def _activate(h, activation):
    if activation == "relu":
        return jnp.maximum(h, 0.0)
    if activation == "gelu_tanh":
        # tanh approximation -> EUP slot (numerics differ slightly from erf).
        return jax.nn.gelu(h, approximate=True)
    # Exact erf GELU (matches torch nn.GELU() default).
    return 0.5 * h * (1.0 + lax.erf(h * _INV_SQRT_2))


def _ffn_resident_kernel(x_ref, w1_ref, b1_ref, w2_ref, b2_ref, o_ref, *,
                         activation):
    """Whole-H step.  Weight BlockSpecs have constant block indices, so W1/W2
    are DMA'd from HBM exactly once for the entire grid (weight-resident)."""
    h = jnp.dot(x_ref[...], w1_ref[...], preferred_element_type=jnp.float32)
    h = _activate(h + b1_ref[...].astype(jnp.float32), activation)
    # Dropout = identity (inference).
    # NOTE: with bf16 weights the intermediate is cast to bf16 for the second
    # matmul (native MXU path); this intentionally differs from a pure-f32
    # torch reference at the ~1e-3 level.
    y = jnp.dot(h.astype(w2_ref.dtype), w2_ref[...],
                preferred_element_type=jnp.float32)
    o_ref[...] = (y + b2_ref[...].astype(jnp.float32)).astype(o_ref.dtype)


def _ffn_tiled_kernel(x_ref, w1_ref, b1_ref, w2_ref, b2_ref, o_ref, acc_ref, *,
                      activation):
    """One (row-tile i, hidden-tile j) step with an f32 VMEM accumulator."""
    j = pl.program_id(1)

    @pl.when(j == 0)
    def _():
        acc_ref[...] = jnp.zeros_like(acc_ref)

    h = jnp.dot(x_ref[...], w1_ref[...], preferred_element_type=jnp.float32)
    h = _activate(h + b1_ref[...].astype(jnp.float32), activation)
    # Dropout = identity (inference).
    acc_ref[...] += jnp.dot(h.astype(w2_ref.dtype), w2_ref[...],
                            preferred_element_type=jnp.float32)

    @pl.when(j == pl.num_programs(1) - 1)
    def _():
        y = acc_ref[...] + b2_ref[...].astype(jnp.float32)
        o_ref[...] = y.astype(o_ref.dtype)


@functools.partial(jax.jit, static_argnames=("tm", "th", "activation"))
def ffn_forward(x, w1, b1, w2, b2, *, tm=512, th=None, activation="gelu"):
    """x: [..., D] -> [..., D].  w1: [D, H], b1: [H], w2: [H, D], b2: [D].

    th=None  -> auto: weight-resident (whole H) when it fits VMEM, otherwise
                an H-tiled accumulator path with an auto-sized hidden tile.
    th=<int> -> force the H-tiled path with that hidden tile (rounded to 128).
    activation in {"gelu" (exact erf, torch default), "gelu_tanh", "relu"}.
    """
    orig_shape = x.shape
    D = orig_shape[-1]
    H = w1.shape[1]
    M = math.prod(orig_shape[:-1])

    x_item = jnp.dtype(x.dtype).itemsize
    w_item = jnp.dtype(w1.dtype).itemsize
    out_item = x_item
    usable = _USABLE_VMEM

    tm_eff = _choose_tm(M, tm)
    Mp = _round_up(M, tm_eff)
    x2d = x.reshape(M, D)
    if Mp != M:
        # Padded rows compute Act(b1)@W2+b2 garbage; sliced off below.
        x2d = jnp.pad(x2d, ((0, Mp - M), (0, 0)))
    grid_m = Mp // tm_eff

    # VMEM bookkeeping: double-buffered x/out tiles + f32 intermediate (+ cast).
    io_bytes = 2 * tm_eff * D * (x_item + out_item)
    h_bytes_per_col = tm_eff * (4 + w_item)
    resident_bytes = (io_bytes + 2 * (2 * D * H + H + D) * w_item
                      + H * h_bytes_per_col)

    use_resident = (th is None or th >= H) and resident_bytes <= usable

    if use_resident:
        # ---------------- Weight-resident fast path ----------------
        b1_2d = b1.reshape(1, H)
        b2_2d = b2.reshape(1, D)
        vmem_limit = int(min(max(resident_bytes + (4 << 20), 32 << 20), usable))
        cost = pl.CostEstimate(
            flops=4 * Mp * D * H,
            transcendentals=(Mp * H) if activation != "relu" else 0,
            bytes_accessed=(Mp * D * (x_item + out_item)
                            + (2 * D * H + H + D) * w_item),
        )
        out2d = pl.pallas_call(
            functools.partial(_ffn_resident_kernel, activation=activation),
            out_shape=jax.ShapeDtypeStruct((Mp, D), x.dtype),
            grid_spec=pltpu.PrefetchScalarGridSpec(
                num_scalar_prefetch=0,
                grid=(grid_m,),
                in_specs=[
                    pl.BlockSpec((tm_eff, D), lambda i: (i, 0)),   # x rows
                    pl.BlockSpec((D, H), lambda i: (0, 0)),        # W1 (resident)
                    pl.BlockSpec((1, H), lambda i: (0, 0)),        # b1 (resident)
                    pl.BlockSpec((H, D), lambda i: (0, 0)),        # W2 (resident)
                    pl.BlockSpec((1, D), lambda i: (0, 0)),        # b2 (resident)
                ],
                out_specs=pl.BlockSpec((tm_eff, D), lambda i: (i, 0)),
            ),
            compiler_params=pltpu.CompilerParams(
                dimension_semantics=("parallel",),
                vmem_limit_bytes=vmem_limit,
            ),
            cost_estimate=cost,
        )(x2d, w1, b1_2d, w2, b2_2d)
    else:
        # ---------------- H-tiled accumulator fallback ----------------
        acc_bytes = tm_eff * D * 4
        if th is not None:
            th_eff = min(H, max(128, (int(th) // 128) * 128))
        else:
            per_th = 2 * (2 * D + 1) * w_item + h_bytes_per_col
            budget = usable - io_bytes - acc_bytes - 2 * D * w_item
            th_budget = max(128, budget // per_th)
            th_eff = max(128, int(min(H, (th_budget // 128) * 128)))
        # Prefer a hidden tile that divides H exactly (avoids re-padding the
        # weights with jnp.pad on every call).
        for cand in range(th_eff, 127, -128):
            if H % cand == 0:
                th_eff = cand
                break
        Hp = _round_up(H, th_eff)
        if Hp != H:
            # Zero padding is exact: Act(0 + 0) = 0 and padded W2 rows are 0.
            w1 = jnp.pad(w1, ((0, 0), (0, Hp - H)))
            b1 = jnp.pad(b1, ((0, Hp - H),))
            w2 = jnp.pad(w2, ((0, Hp - H), (0, 0)))
        b1_2d = b1.reshape(1, Hp)
        b2_2d = b2.reshape(1, D)
        grid = (grid_m, Hp // th_eff)

        tiled_bytes = (io_bytes + acc_bytes + 2 * D * w_item
                       + th_eff * (2 * (2 * D + 1) * w_item + h_bytes_per_col))
        vmem_limit = int(min(max(tiled_bytes + (4 << 20), 32 << 20), usable))
        cost = pl.CostEstimate(
            flops=4 * Mp * D * Hp,
            transcendentals=(Mp * Hp) if activation != "relu" else 0,
            # Weights are re-streamed once per row tile in this path.
            bytes_accessed=(Mp * D * (x_item + out_item)
                            + grid_m * (2 * D * Hp + Hp) * w_item
                            + D * w_item),
        )
        out2d = pl.pallas_call(
            functools.partial(_ffn_tiled_kernel, activation=activation),
            out_shape=jax.ShapeDtypeStruct((Mp, D), x.dtype),
            grid_spec=pltpu.PrefetchScalarGridSpec(
                num_scalar_prefetch=0,
                grid=grid,
                in_specs=[
                    pl.BlockSpec((tm_eff, D), lambda i, j: (i, 0)),   # x rows
                    pl.BlockSpec((D, th_eff), lambda i, j: (0, j)),   # W1 cols
                    pl.BlockSpec((1, th_eff), lambda i, j: (0, j)),   # b1 slice
                    pl.BlockSpec((th_eff, D), lambda i, j: (j, 0)),   # W2 rows
                    pl.BlockSpec((1, D), lambda i, j: (0, 0)),        # b2
                ],
                out_specs=pl.BlockSpec((tm_eff, D), lambda i, j: (i, 0)),
                scratch_shapes=[pltpu.VMEM((tm_eff, D), jnp.float32)],
            ),
            compiler_params=pltpu.CompilerParams(
                dimension_semantics=("parallel", "arbitrary"),
                vmem_limit_bytes=vmem_limit,
            ),
            cost_estimate=cost,
        )(x2d, w1, b1_2d, w2, b2_2d)

    if Mp != M:
        out2d = out2d[:M]
    return out2d.reshape(orig_shape)


def init_ffn_params(key, dim, hidden_dim, dtype=jnp.float32):
    """Deterministic init mimicking nn.Linear's uniform(-1/sqrt(fan_in), ...)."""
    k1, k2, k3, k4 = jax.random.split(key, 4)
    bound1 = 1.0 / math.sqrt(dim)
    bound2 = 1.0 / math.sqrt(hidden_dim)
    # Stored as [in, out] so the kernel matmuls without transpose.
    w1 = jax.random.uniform(k1, (dim, hidden_dim), dtype, -bound1, bound1)
    b1 = jax.random.uniform(k2, (hidden_dim,), dtype, -bound1, bound1)
    w2 = jax.random.uniform(k3, (hidden_dim, dim), dtype, -bound2, bound2)
    b2 = jax.random.uniform(k4, (dim,), dtype, -bound2, bound2)
    return w1, b1, w2, b2


if __name__ == "__main__":
    key = jax.random.PRNGKey(0)
    kx, kp = jax.random.split(key)

    # Small but lane-dense ViT-like shapes.
    B, S, D, H = 2, 64, 256, 512
    x = jax.random.normal(kx, (B, S, D), dtype=jnp.float32)
    w1, b1, w2, b2 = init_ffn_params(kp, D, H)

    # Pure-JAX reference (exact erf GELU, dropout = identity).
    y_ref = jax.nn.gelu(x @ w1 + b1, approximate=False) @ w2 + b2

    # 1) Weight-resident fast path (default: weights DMA'd once).
    y = jax.block_until_ready(ffn_forward(x, w1, b1, w2, b2))
    assert y.shape == (B, S, D)
    assert jnp.allclose(y, y_ref, atol=2e-2, rtol=2e-2), (
        float(jnp.max(jnp.abs(y - y_ref))))

    # 2) H-tiled accumulator fallback (forced via th) with a padded-row M.
    x_odd = x[:, :50]  # M = 100 -> exercises row padding + out slice
    y2 = jax.block_until_ready(ffn_forward(x_odd, w1, b1, w2, b2, th=128))
    y2_ref = jax.nn.gelu(x_odd @ w1 + b1, approximate=False) @ w2 + b2
    assert y2.shape == x_odd.shape
    assert jnp.allclose(y2, y2_ref, atol=2e-2, rtol=2e-2), (
        float(jnp.max(jnp.abs(y2 - y2_ref))))

    print("KERNEL_OK")
</pallas_src>

<mosaic_0001>
module attributes {stable_mosaic.version = 11 : i64} {
  func.func @_ffn_resident_kernel(%arg0: i32, %arg1: memref<64x256xf32, #tpu.memory_space<vmem>>, %arg2: memref<256x512xf32, #tpu.memory_space<vmem>>, %arg3: memref<1x512xf32, #tpu.memory_space<vmem>>, %arg4: memref<512x256xf32, #tpu.memory_space<vmem>>, %arg5: memref<1x256xf32, #tpu.memory_space<vmem>>, %arg6: memref<64x256xf32, #tpu.memory_space<vmem>>) attributes {dimension_semantics = [#tpu.dimension_semantics<parallel>], iteration_bounds = array<i64: 2>, scalar_prefetch = 0 : i64, scratch_operands = 0 : i64, tpu.core_type = #tpu.core_type<tc>, window_params = [{transform_indices = @transform_0, window_bounds = array<i64: 64, 256>}, {pipeline_mode = #tpu.pipeline_mode<synchronous>, transform_indices = @transform_1, window_bounds = array<i64: 256, 512>}, {pipeline_mode = #tpu.pipeline_mode<synchronous>, transform_indices = @transform_2, window_bounds = array<i64: 1, 512>}, {pipeline_mode = #tpu.pipeline_mode<synchronous>, transform_indices = @transform_3, window_bounds = array<i64: 512, 256>}, {pipeline_mode = #tpu.pipeline_mode<synchronous>, transform_indices = @transform_4, window_bounds = array<i64: 1, 256>}, {transform_indices = @transform_5, window_bounds = array<i64: 64, 256>}]} {
    %c0 = arith.constant 0 : index
    %c0_0 = arith.constant 0 : index
    %0 = vector.load %arg1[%c0, %c0_0] : memref<64x256xf32, #tpu.memory_space<vmem>>, vector<64x256xf32>
    %c0_1 = arith.constant 0 : index
    %c0_2 = arith.constant 0 : index
    %1 = vector.load %arg2[%c0_1, %c0_2] : memref<256x512xf32, #tpu.memory_space<vmem>>, vector<256x512xf32>
    %cst = arith.constant dense<0.000000e+00> : vector<64x512xf32>
    %2 = tpu.matmul %0, %1, %cst {dimension_numbers = #tpu.dot_dimension_numbers<[1], [0], [0], [1], [0, 0, 1, 1], [], []>} : vector<64x256xf32>, vector<256x512xf32>, vector<64x512xf32> -> vector<64x512xf32>
    %c0_3 = arith.constant 0 : index
    %c0_4 = arith.constant 0 : index
    %3 = vector.load %arg3[%c0_3, %c0_4] : memref<1x512xf32, #tpu.memory_space<vmem>>, vector<1x512xf32>
    %4 = vector.broadcast %3 : vector<1x512xf32> to vector<64x512xf32>
    %5 = arith.addf %2, %4 : vector<64x512xf32>
    %cst_5 = arith.constant 5.000000e-01 : f32
    %6 = vector.broadcast %cst_5 : f32 to vector<64x512xf32>
    %7 = arith.mulf %6, %5 : vector<64x512xf32>
    %cst_6 = arith.constant 0.707106769 : f32
    %8 = vector.broadcast %cst_6 : f32 to vector<64x512xf32>
    %9 = arith.mulf %5, %8 : vector<64x512xf32>
    %10 = math.erf %9 : vector<64x512xf32>
    %cst_7 = arith.constant 1.000000e+00 : f32
    %11 = vector.broadcast %cst_7 : f32 to vector<64x512xf32>
    %12 = arith.addf %11, %10 : vector<64x512xf32>
    %13 = arith.mulf %7, %12 : vector<64x512xf32>
    %c0_8 = arith.constant 0 : index
    %c0_9 = arith.constant 0 : index
    %14 = vector.load %arg4[%c0_8, %c0_9] : memref<512x256xf32, #tpu.memory_space<vmem>>, vector<512x256xf32>
    %cst_10 = arith.constant dense<0.000000e+00> : vector<64x256xf32>
    %15 = tpu.matmul %13, %14, %cst_10 {dimension_numbers = #tpu.dot_dimension_numbers<[1], [0], [0], [1], [0, 0, 1, 1], [], []>} : vector<64x512xf32>, vector<512x256xf32>, vector<64x256xf32> -> vector<64x256xf32>
    %c0_11 = arith.constant 0 : index
    %c0_12 = arith.constant 0 : index
    %16 = vector.load %arg5[%c0_11, %c0_12] : memref<1x256xf32, #tpu.memory_space<vmem>>, vector<1x256xf32>
    %17 = vector.broadcast %16 : vector<1x256xf32> to vector<64x256xf32>
    %18 = arith.addf %15, %17 : vector<64x256xf32>
    %c0_13 = arith.constant 0 : index
    %c0_14 = arith.constant 0 : index
    %19 = vector.load %arg6[%c0_13, %c0_14] : memref<64x256xf32, #tpu.memory_space<vmem>>, vector<64x256xf32>
    tpu.vector_store %arg6[%c0_13, %c0_14], %18 {strides = array<i32>} : memref<64x256xf32, #tpu.memory_space<vmem>>, vector<64x256xf32>,
    return
  }
  func.func @transform_0(%arg0: i32) -> (i32, i32) {
    %c0_i32 = arith.constant 0 : i32
    %c0_i32_0 = arith.constant 0 : i32
    return %arg0, %c0_i32 : i32, i32
  }
  func.func @transform_1(%arg0: i32) -> (i32, i32) {
    %c0_i32 = arith.constant 0 : i32
    %c0_i32_0 = arith.constant 0 : i32
    %c0_i32_1 = arith.constant 0 : i32
    return %c0_i32, %c0_i32_0 : i32, i32
  }
  func.func @transform_2(%arg0: i32) -> (i32, i32) {
    %c0_i32 = arith.constant 0 : i32
    %c0_i32_0 = arith.constant 0 : i32
    %c0_i32_1 = arith.constant 0 : i32
    return %c0_i32, %c0_i32_0 : i32, i32
  }
  func.func @transform_3(%arg0: i32) -> (i32, i32) {
    %c0_i32 = arith.constant 0 : i32
    %c0_i32_0 = arith.constant 0 : i32
    %c0_i32_1 = arith.constant 0 : i32
    return %c0_i32, %c0_i32_0 : i32, i32
  }
  func.func @transform_4(%arg0: i32) -> (i32, i32) {
    %c0_i32 = arith.constant 0 : i32
    %c0_i32_0 = arith.constant 0 : i32
    %c0_i32_1 = arith.constant 0 : i32
    return %c0_i32, %c0_i32_0 : i32, i32
  }
  func.func @transform_5(%arg0: i32) -> (i32, i32) {
    %c0_i32 = arith.constant 0 : i32
    %c0_i32_0 = arith.constant 0 : i32
    return %arg0, %c0_i32 : i32, i32
  }
}

</mosaic_0001>

<bundles_post_ra>
// kernel: ffn_forward.1
= control target key start
LH: loop header
LB: loop body
LE: loop exit
PB: predicated region body
PF: predicated region fallthrough
CT: control target
= control target key end

     0   :  { %10 = vsyncpa [#allocation3], 0  ;;  %s4895_s0 = inlined_call_operand.hbm [shape: f32[128,256], index: 0, kind: input, shape index: {}]   ;;  %s4896_s1 = inlined_call_operand.hbm [shape: f32[256,512], index: 1, kind: input, shape index: {}]   ;;  %s4897_s2 = inlined_call_operand.vmem [shape: f32[1,512], index: 2, kind: input, shape index: {}]   ;;  %s4898_s3 = inlined_call_operand.hbm [shape: f32[512,256], index: 3, kind: input, shape index: {}]   ;;  %s4899_s4 = inlined_call_operand.vmem [shape: f32[1,256], index: 4, kind: input, shape index: {}]   ;;  %s4900_s5 = inlined_call_operand.hbm [shape: f32[128,256], index: 5, kind: output, shape index: {}]  }
   0x1   :  { %12 = vsyncpa [#allocation3 + $0x1], 0 }
   0x2   :  { %13 = vsyncpa [#allocation6], 0 }
   0x3   :  { %14 = vsyncpa [#allocation4], 0 }
   0x4   :  { %16 = vsyncpa [#allocation4 + $0x1], 0  ;;  %s3151_s18 = smov 0   ;;  %s3153_s19 = smov 0  }
   0x5   :  { %s3155_s20 = smov 0   ;;  %s3157_s21 = smov 0  }
   0x6 LB: > { %s3172_s22 = sadd.s32 4294967295, %s3111_s21   ;;  %s2758_s23 = sadd.s32 4294967294, %s3111_s21   ;;  %s3111_s21 = sphi %s3157_s21, %s5057_s21   ;;  %s3107_s20 = sphi %s3155_s20, %s5056_s20   ;;  %s3103_s19 = sphi %s3153_s19, %s5055_s19   ;;  %s3099_s18 = sphi %s3151_s18, %s5054_s18  }
   0x7   : > { %p42_p0 = scmp.ne.s32.totalorder %s3103_s19, %s3099_s18  ;;  %p43_p1 = scmp.eq.s32.totalorder %s3172_s22, 0 }
   0x8   : > { %p150_p2 = scmp.eq.s32.totalorder %s3172_s22, 1  ;;  %p156_p3 = scmp.eq.s32.totalorder %s2758_s23, 1 }
   0x9   : > { %p3181_p4 = por %p43_p1, %p42_p0  ;;  %p2759_p5 = scmp.ge.s32.totalorder %s3111_s21, 1 }
   0xa   : > { %p3186_p6 = por %p156_p3, %p42_p0  ;;  %p163_p7 = scmp.lt.s32.totalorder %s3111_s21, 3 }
   0xb   : > { %s174_s28 = sshll.u32 %s4896_s1, 4  ;;  %s3113_s30 = smov [#allocation5]   ;;  %s175_s28 = int_to_ptr.hbm [resolvable:$true] %s174_s28 }
   0xc   : > { %p3194_p8 = pnand %p2759_p5, %p163_p7  ;;  %s176_s6 = sshll.u32 %s3113_s30, 4  ;;  %s177_s6 = int_to_ptr.vmem [resolvable:$true] %s176_s6 }
   0xd   : > { %s191_s9 = sshll.u32 %s4898_s3, 4  ;;  %s3114_s10 = smov 512   ;;  %s192_s9 = int_to_ptr.hbm [resolvable:$true] %s191_s9 }
   0xe   : > { %p2826_p9 = pneg %p3194_p8  ;;  %s3115_s11 = smov 32  }
   0xf   : > { %s3116_s12 = smov [#allocation7]   ;;  %s4901_s14 = smov 256  }
  0x10   : > { %p2827_p10 = pnand %p2826_p9, %p43_p1  ;;  %s193_s13 = sshll.u32 %s3116_s12, 4  ;;  %s194_s13 = int_to_ptr.vmem [resolvable:$true] %s193_s13 }
  0x11   : > { %s3118_s15 = smov 16   ;;  %s3210_s16 = sadd.s32 1, %s3111_s21  }
  0x12   : > { %2829 = dma.hbm_to_vmem [thread:$0]  (!%p2827_p10), %s175_s28, 16384, %s177_s6, [#allocation6], %s3114_s10, %s3114_s10, %s3115_s11  }
  0x13   : > { %2832 = dma.hbm_to_vmem [thread:$0]  (!%p2827_p10), %s192_s9, 16384, %s194_s13, [#allocation6], %s4901_s14, %s4901_s14, %s3118_s15  }
  0x14   : > { %s26_s17 = ssub.s32 %s3111_s21, %s3210_s16  ;;  %s29_s23 = sadd.s32 1, %s3107_s20 }
  0x15   : > { %p27_p12 = scmp.eq.s32.totalorder %s26_s17, 0  ;;  %p36_p13 = scmp.ne.s32.totalorder %s3107_s20, %s3103_s19 }
  0x16   : > { %p37_p0 = scmp.eq.s32.totalorder %s3111_s21, 0  ;;  %p2843_p7 = scmp.lt.s32.totalorder %s3111_s21, 2 }
  0x17   : > { %s3219_s26 = scalar_select %p27_p12, %s3107_s20, %s29_s23  }
  0x18   : > { %p38_p3 = por %p37_p0, %p36_p13  ;;  %p3223_p5 = por %p150_p2, %p36_p13 }
  0x19   : > { %s210_s28 = sand.u32 1, %s3107_s20   ;;  %s2811_s6 = sshll.u32 %s3111_s21, 7 }
  0x1a   : > { %s2763_s30 = sshll.u32 %s210_s28, 7  ;;  %s220_s9 = scalar_lea.hbm %s4895_s0, %s2811_s6 }
  0x1b   : > { %s214_s10 = scalar_lea.vmem [#allocation2], %s2763_s30  ;;  %s221_s12 = sshll.u32 %s220_s9, 4  ;;  %s222_s12 = int_to_ptr.hbm [resolvable:$true] %s221_s12 }
  0x1c   : > { %s223_s11 = sshll.u32 %s214_s10, 4  ;;  %p3233_p9 = pnand %p2843_p7, %p38_p3  ;;  %s224_s11 = int_to_ptr.vmem [resolvable:$true] %s223_s11 }
  0x1d   : > { %s211_s17 = scalar_lea.sflag [#allocation3], %s210_s28  ;;  %s3011_s23 = sshra.s32 %s222_s12, 4  ;;  %s3012_s23 = int_to_ptr.hbm [resolvable:$true] %s3011_s23 }
  0x1e   : > { %s3013_s14 = scalar_lea.hbm %s3012_s23, 128  ;;  %p3015_p10 = pneg %p3233_p9 }
  0x1f   : > { %p3014_p2 = scmp.ne.s32.totalorder %s3012_s23, %s3013_s14  ;;  %s3018_s7 = scalar_lea.hbm %s4895_s0, 256 }
  0x20   : > { %p3019_p0 = scmp.lt.s32.totalorder %s3012_s23, %s4895_s0  ;;  %p3020_p3 = scmp.lt.s32.totalorder %s3018_s7, %s3013_s14 }
  0x21   : > { %p3016_p12 = pnand %p3015_p10, %p3014_p2 }
  0x22   : > { %p3021_p7 = por %p3020_p3, %p3019_p0 }
  0x23   : > { %p3017_p13 = pneg %p3016_p12 }
  0x25   : > { %p3022_p11 = pnand %p3021_p7, %p3017_p13 }
  0x27   : > { %3025 = shalt.err (!%p3022_p11)
}
  0x28   : > { %s4940_s28 = smov 256   ;;  %235 = sbr.rel (%p3194_p8) target bundleno = 793 (0x319), region = 40 }
  0x29   : > { %2836 = dma.hbm_to_vmem [thread:$0]  (!%p3233_p9), %s222_s12, 2048, %s224_s11, %s211_s17, %s4940_s28, %s4940_s28, %s3118_s15  }
  0x2d   : > { %s3253_s10 = sand.u32 1, %s3103_s19  }
  0x2e   : > { %s2768_s14 = sshll.u32 %s3253_s10, 7  ;;  %s238_s23 = scalar_lea.sflag [#allocation3], %s3253_s10 }
  0x2f   : > { %s3259_s6 = scalar_lea.vmem [#allocation2], %s2768_s14 }
  0x30   : > { %3086 = dma.done.wait (%p3181_p4), %s238_s23, 2048  }
  0x31   : > { %3088 = vsyncadd (%p3181_p4), %s238_s23, 4294965248 }
  0x32   : > { %3090 = dma.done.wait (%p43_p1), [#allocation6], 32768  }
  0x33   : > { %3092 = vsyncadd (%p43_p1), [#allocation6], 4294934528  ;;  %v357_v0 = vld [vmem:[#allocation5 + $0x1e0] sm:$0xff]  ;;  %v358_v1 = vld [vmem:[#allocation5 + $0x1e8] sm:$0xff]  ;;  %s4822_s12 = scalar_lea.vmem [#allocation8], %s2768_s14  ;;  %s2813_s13 = sshll.u32 %s3172_s22, 7 }
  0x34   : > { %v353_v2 = vld [vmem:[#allocation5 + $0x1c0] sm:$0xff]  ;;  %435 = vmatpush.msra.mxu0 %v357_v0  ;;  %517 = vmatpush.msra.mxu2 %v358_v1  ;;  %v354_v4 = vld [vmem:[#allocation5 + $0x1c8] sm:$0xff]  ;;  %v360_v63 = vld [vmem:[#allocation5 + $0x1f8] sm:$0xff]  ;;  %s2662_s7 = scalar_lea.hbm %s4900_s5, %s2813_s13  ;;  %s2663_s8 = sshll.u32 %s4822_s12, 4  ;;  %s2664_s8 = int_to_ptr.vmem [resolvable:$true] %s2663_s8 }
  0x35   : > { %v421_v3 = vld [vmem:[#allocation5 + $0x3e0] sm:$0xff]  ;;  %v422_v5 = vld [vmem:[#allocation5 + $0x3e8] sm:$0xff]  ;;  %s2665_s9 = sshll.u32 %s2662_s7, 4  ;;  %s2650_s22 = scalar_lea.sflag [#allocation4], %s3253_s10  ;;  %s2666_s9 = int_to_ptr.hbm [resolvable:$true] %s2665_s9 }
  0x36   : > { %476 = vmatpush.msra.mxu1 %v421_v3  ;;  %558 = vmatpush.msra.mxu3 %v422_v5  ;;  %v349_v6 = vld [vmem:[#allocation5 + $0x1a0] sm:$0xff]  ;;  %v350_v8 = vld [vmem:[#allocation5 + $0x1a8] sm:$0xff]  ;;  %v359_v3 = vld [vmem:[#allocation5 + $0x1f0] sm:$0xff]  ;;  %s3055_s28 = sshra.s32 %s2666_s9, 4  ;;  %s3061_s24 = scalar_lea.hbm %s4900_s5, 256  ;;  %s3056_s28 = int_to_ptr.hbm [resolvable:$true] %s3055_s28 }
  0x37   : > { %v417_v7 = vld [vmem:[#allocation5 + $0x3c0] sm:$0xff]  ;;  %436 = vmatpush.msra.mxu0 %v353_v2  ;;  %518 = vmatpush.msra.mxu2 %v354_v4  ;;  %v418_v9 = vld [vmem:[#allocation5 + $0x3c8] sm:$0xff]  ;;  %v424_v4 = vld [vmem:[#allocation5 + $0x3f8] sm:$0xff]  ;;  %s3057_s14 = scalar_lea.hbm %s3056_s28, 128  ;;  %p3062_p11 = scmp.lt.s32.totalorder %s3056_s28, %s4900_s5 }
  0x38   : > { %v413_v10 = vld [vmem:[#allocation5 + $0x3a0] sm:$0xff]  ;;  %477 = vmatpush.msra.mxu1 %v417_v7  ;;  %559 = vmatpush.msra.mxu3 %v418_v9  ;;  %v346_v12 = vld [vmem:[#allocation5 + $0x188] sm:$0xff]  ;;  %v356_v5 = vld [vmem:[#allocation5 + $0x1d8] sm:$0xff]  ;;  %p3058_p1 = scmp.ne.s32.totalorder %s3056_s28, %s3057_s14  ;;  %p3063_p9 = scmp.lt.s32.totalorder %s3061_s24, %s3057_s14 }
  0x39   : > { %v345_v11 = vld [vmem:[#allocation5 + $0x180] sm:$0xff]  ;;  %v414_v13 = vld [vmem:[#allocation5 + $0x3a8] sm:$0xff]  ;;  %437 = vmatpush.msra.mxu0 %v349_v6  ;;  %519 = vmatpush.msra.mxu2 %v350_v8  ;;  %v423_v6 = vld [vmem:[#allocation5 + $0x3f0] sm:$0xff] }
  0x3a   : > { %v409_v14 = vld [vmem:[#allocation5 + $0x380] sm:$0xff]  ;;  %v410_v15 = vld [vmem:[#allocation5 + $0x388] sm:$0xff]  ;;  %478 = vmatpush.msra.mxu1 %v413_v10  ;;  %560 = vmatpush.msra.mxu3 %v414_v13  ;;  %v355_v7 = vld [vmem:[#allocation5 + $0x1d0] sm:$0xff]  ;;  %p3059_p4 = pnand %p3058_p1, %p3223_p5  ;;  %p3064_p2 = por %p3063_p9, %p3062_p11 }
  0x3b   : > { %v341_v16 = vld [vmem:[#allocation5 + $0x160] sm:$0xff]  ;;  %v342_v17 = vld [vmem:[#allocation5 + $0x168] sm:$0xff]  ;;  %438 = vmatpush.msra.mxu0 %v345_v11  ;;  %520 = vmatpush.msra.mxu2 %v346_v12  ;;  %v420_v8 = vld [vmem:[#allocation5 + $0x3d8] sm:$0xff] }
  0x3c   : > { %v405_v18 = vld [vmem:[#allocation5 + $0x360] sm:$0xff]  ;;  %v406_v19 = vld [vmem:[#allocation5 + $0x368] sm:$0xff]  ;;  %479 = vmatpush.msra.mxu1 %v409_v14  ;;  %561 = vmatpush.msra.mxu3 %v410_v15  ;;  %v352_v9 = vld [vmem:[#allocation5 + $0x1b8] sm:$0xff]  ;;  %p3060_p8 = pneg %p3059_p4 }
  0x3d   : > { %v337_v20 = vld [vmem:[#allocation5 + $0x140] sm:$0xff]  ;;  %v338_v21 = vld [vmem:[#allocation5 + $0x148] sm:$0xff]  ;;  %439 = vmatpush.msra.mxu0 %v341_v16  ;;  %521 = vmatpush.msra.mxu2 %v342_v17  ;;  %v419_v10 = vld [vmem:[#allocation5 + $0x3d0] sm:$0xff] }
  0x3e   : > { %v401_v22 = vld [vmem:[#allocation5 + $0x340] sm:$0xff]  ;;  %v402_v23 = vld [vmem:[#allocation5 + $0x348] sm:$0xff]  ;;  %480 = vmatpush.msra.mxu1 %v405_v18  ;;  %562 = vmatpush.msra.mxu3 %v406_v19  ;;  %v351_v11 = vld [vmem:[#allocation5 + $0x1b0] sm:$0xff]  ;;  %p3065_p10 = pnand %p3064_p2, %p3060_p8 }
  0x3f   : > { %v333_v24 = vld [vmem:[#allocation5 + $0x120] sm:$0xff]  ;;  %v334_v25 = vld [vmem:[#allocation5 + $0x128] sm:$0xff]  ;;  %440 = vmatpush.msra.mxu0 %v337_v20  ;;  %522 = vmatpush.msra.mxu2 %v338_v21  ;;  %v3280_v12 = vld [vmem:[%s3259_s6 + $0x10] sm:$0xff] }
  0x40   : > { %v397_v26 = vld [vmem:[#allocation5 + $0x320] sm:$0xff]  ;;  %v398_v27 = vld [vmem:[#allocation5 + $0x328] sm:$0xff]  ;;  %481 = vmatpush.msra.mxu1 %v401_v22  ;;  %563 = vmatpush.msra.mxu3 %v402_v23  ;;  %v416_v13 = vld [vmem:[#allocation5 + $0x3b8] sm:$0xff] }
  0x41   : > { %v329_v28 = vld [vmem:[#allocation5 + $0x100] sm:$0xff]  ;;  %v330_v29 = vld [vmem:[#allocation5 + $0x108] sm:$0xff]  ;;  %441 = vmatpush.msra.mxu0 %v333_v24  ;;  %523 = vmatpush.msra.mxu2 %v334_v25  ;;  %v348_v14 = vld [vmem:[#allocation5 + $0x198] sm:$0xff] }
  0x42   : > { %v393_v30 = vld [vmem:[#allocation5 + $0x300] sm:$0xff]  ;;  %v394_v31 = vld [vmem:[#allocation5 + $0x308] sm:$0xff]  ;;  %482 = vmatpush.msra.mxu1 %v397_v26  ;;  %564 = vmatpush.msra.mxu3 %v398_v27  ;;  %v3283_v15 = vld [vmem:[%s3259_s6 + $0x18] sm:$0xff] }
  0x43   : > { %v325_v32 = vld [vmem:[#allocation5 + $0xe0] sm:$0xff]  ;;  %v326_v33 = vld [vmem:[#allocation5 + $0xe8] sm:$0xff]  ;;  %442 = vmatpush.msra.mxu0 %v329_v28  ;;  %524 = vmatpush.msra.mxu2 %v330_v29  ;;  %v347_v16 = vld [vmem:[#allocation5 + $0x190] sm:$0xff] }
  0x44   : > { %v389_v34 = vld [vmem:[#allocation5 + $0x2e0] sm:$0xff]  ;;  %v390_v35 = vld [vmem:[#allocation5 + $0x2e8] sm:$0xff]  ;;  %483 = vmatpush.msra.mxu1 %v393_v30  ;;  %565 = vmatpush.msra.mxu3 %v394_v31  ;;  %v415_v17 = vld [vmem:[#allocation5 + $0x3b0] sm:$0xff] }
  0x45   : > { %v321_v36 = vld [vmem:[#allocation5 + $0xc0] sm:$0xff]  ;;  %v322_v37 = vld [vmem:[#allocation5 + $0xc8] sm:$0xff]  ;;  %443 = vmatpush.msra.mxu0 %v325_v32  ;;  %525 = vmatpush.msra.mxu2 %v326_v33  ;;  %v412_v18 = vld [vmem:[#allocation5 + $0x398] sm:$0xff] }
  0x46   : > { %v385_v38 = vld [vmem:[#allocation5 + $0x2c0] sm:$0xff]  ;;  %v386_v39 = vld [vmem:[#allocation5 + $0x2c8] sm:$0xff]  ;;  %484 = vmatpush.msra.mxu1 %v389_v34  ;;  %566 = vmatpush.msra.mxu3 %v390_v35  ;;  %v344_v19 = vld [vmem:[#allocation5 + $0x178] sm:$0xff] }
  0x47   : > { %v317_v40 = vld [vmem:[#allocation5 + $0xa0] sm:$0xff]  ;;  %v318_v41 = vld [vmem:[#allocation5 + $0xa8] sm:$0xff]  ;;  %444 = vmatpush.msra.mxu0 %v321_v36  ;;  %526 = vmatpush.msra.mxu2 %v322_v37  ;;  %v411_v20 = vld [vmem:[#allocation5 + $0x390] sm:$0xff] }
  0x48   : > { %v381_v42 = vld [vmem:[#allocation5 + $0x2a0] sm:$0xff]  ;;  %v382_v43 = vld [vmem:[#allocation5 + $0x2a8] sm:$0xff]  ;;  %485 = vmatpush.msra.mxu1 %v385_v38  ;;  %567 = vmatpush.msra.mxu3 %v386_v39  ;;  %v343_v21 = vld [vmem:[#allocation5 + $0x170] sm:$0xff] }
  0x49   : > { %v313_v44 = vld [vmem:[#allocation5 + $0x80] sm:$0xff]  ;;  %v314_v45 = vld [vmem:[#allocation5 + $0x88] sm:$0xff]  ;;  %445 = vmatpush.msra.mxu0 %v317_v40  ;;  %527 = vmatpush.msra.mxu2 %v318_v41  ;;  %v408_v22 = vld [vmem:[#allocation5 + $0x378] sm:$0xff] }
  0x4a   : > { %v377_v46 = vld [vmem:[#allocation5 + $0x280] sm:$0xff]  ;;  %v378_v47 = vld [vmem:[#allocation5 + $0x288] sm:$0xff]  ;;  %486 = vmatpush.msra.mxu1 %v381_v42  ;;  %568 = vmatpush.msra.mxu3 %v382_v43  ;;  %v340_v23 = vld [vmem:[#allocation5 + $0x158] sm:$0xff] }
  0x4b   : > { %v309_v48 = vld [vmem:[#allocation5 + $0x60] sm:$0xff]  ;;  %v310_v49 = vld [vmem:[#allocation5 + $0x68] sm:$0xff]  ;;  %446 = vmatpush.msra.mxu0 %v313_v44  ;;  %528 = vmatpush.msra.mxu2 %v314_v45  ;;  %v407_v24 = vld [vmem:[#allocation5 + $0x370] sm:$0xff] }
  0x4c   : > { %v373_v50 = vld [vmem:[#allocation5 + $0x260] sm:$0xff]  ;;  %v374_v51 = vld [vmem:[#allocation5 + $0x268] sm:$0xff]  ;;  %487 = vmatpush.msra.mxu1 %v377_v46  ;;  %569 = vmatpush.msra.mxu3 %v378_v47  ;;  %v339_v25 = vld [vmem:[#allocation5 + $0x150] sm:$0xff] }
  0x4d   : > { %v305_v52 = vld [vmem:[#allocation5 + $0x40] sm:$0xff]  ;;  %v306_v53 = vld [vmem:[#allocation5 + $0x48] sm:$0xff]  ;;  %447 = vmatpush.msra.mxu0 %v309_v48  ;;  %529 = vmatpush.msra.mxu2 %v310_v49  ;;  %v404_v27 = vld [vmem:[#allocation5 + $0x358] sm:$0xff] }
  0x4e   : > { %v369_v54 = vld [vmem:[#allocation5 + $0x240] sm:$0xff]  ;;  %v370_v55 = vld [vmem:[#allocation5 + $0x248] sm:$0xff]  ;;  %488 = vmatpush.msra.mxu1 %v373_v50  ;;  %570 = vmatpush.msra.mxu3 %v374_v51  ;;  %v336_v28 = vld [vmem:[#allocation5 + $0x138] sm:$0xff] }
  0x4f   : > { %v301_v56 = vld [vmem:[#allocation5 + $0x20] sm:$0xff]  ;;  %v302_v57 = vld [vmem:[#allocation5 + $0x28] sm:$0xff]  ;;  %448 = vmatpush.msra.mxu0 %v305_v52  ;;  %530 = vmatpush.msra.mxu2 %v306_v53  ;;  %v335_v30 = vld [vmem:[#allocation5 + $0x130] sm:$0xff] }
  0x50   : > { %v365_v58 = vld [vmem:[#allocation5 + $0x220] sm:$0xff]  ;;  %v366_v59 = vld [vmem:[#allocation5 + $0x228] sm:$0xff]  ;;  %489 = vmatpush.msra.mxu1 %v369_v54  ;;  %571 = vmatpush.msra.mxu3 %v370_v55  ;;  %v403_v31 = vld [vmem:[#allocation5 + $0x350] sm:$0xff] }
  0x51   : > { %v297_v60 = vld [vmem:[#allocation5] sm:$0xff]  ;;  %v298_v61 = vld [vmem:[#allocation5 + $0x8] sm:$0xff]  ;;  %449 = vmatpush.msra.mxu0 %v301_v56  ;;  %531 = vmatpush.msra.mxu2 %v302_v57  ;;  %v400_v32 = vld [vmem:[#allocation5 + $0x338] sm:$0xff] }
  0x52   : > { %v3270_v62 = vld [vmem:[%s3259_s6] sm:$0xff]  ;;  %490 = vmatpush.msra.mxu1 %v365_v58  ;;  %572 = vmatpush.msra.mxu3 %v366_v59  ;;  %v362_v1 = vld [vmem:[#allocation5 + $0x208] sm:$0xff]  ;;  %v332_v33 = vld [vmem:[#allocation5 + $0x118] sm:$0xff] }
  0x53   : > { %v361_v0 = vld [vmem:[#allocation5 + $0x200] sm:$0xff]  ;;  %450 = vmatpush.msra.mxu0 %v297_v60  ;;  %532 = vmatpush.msra.mxu2 %v298_v61  ;;  %v3273_v2 = vld [vmem:[%s3259_s6 + $0x8] sm:$0xff]  ;;  %v399_v34 = vld [vmem:[#allocation5 + $0x330] sm:$0xff] }
  0x54   : > { %451 = vmatmul.f32.vlgmr.msra.gmra.mxu0 %v3270_v62  ;;  %533 = vmatmul.f32.vlgmr.msra.gmra.mxu2 %v3270_v62  ;;  %v3290_v26 = vld [vmem:[%s3259_s6 + $0x20] sm:$0xff]  ;;  %v3293_v29 = vld [vmem:[%s3259_s6 + $0x28] sm:$0xff]  ;;  %v331_v35 = vld [vmem:[#allocation5 + $0x110] sm:$0xff] }
  0x55   : > { %681 = vmatpush.msrb.mxu2 %v360_v63  ;;  %491 = vmatpush.msra.mxu1 %v361_v0  ;;  %v396_v36 = vld [vmem:[#allocation5 + $0x318] sm:$0xff]  ;;  %v395_v38 = vld [vmem:[#allocation5 + $0x310] sm:$0xff]  ;;  %v3310_v54 = vld [vmem:[%s3259_s6 + $0x40] sm:$0xff] }
  0x56   : > { %573 = vmatpush.msra.mxu3 %v362_v1  ;;  %492 = vmatmul.f32.vlgmr.msra.gmra.mxu1 %v3273_v2  ;;  %v328_v37 = vld [vmem:[#allocation5 + $0xf8] sm:$0xff]  ;;  %v327_v39 = vld [vmem:[#allocation5 + $0xf0] sm:$0xff]  ;;  %v3313_v57 = vld [vmem:[%s3259_s6 + $0x48] sm:$0xff] }
  0x57   : > { %574 = vmatmul.f32.vlgmr.msra.gmra.mxu3 %v3273_v2  ;;  %599 = vmatpush.msrb.mxu0 %v359_v3  ;;  %v3300_v40 = vld [vmem:[%s3259_s6 + $0x30] sm:$0xff]  ;;  %v392_v41 = vld [vmem:[#allocation5 + $0x2f8] sm:$0xff] }
  0x58   : > { %722 = vmatpush.msrb.mxu3 %v424_v4  ;;  %682 = vmatpush.msrb.mxu2 %v356_v5  ;;  %v324_v42 = vld [vmem:[#allocation5 + $0xd8] sm:$0xff]  ;;  %v323_v44 = vld [vmem:[#allocation5 + $0xd0] sm:$0xff] }
  0x59   : > { %640 = vmatpush.msrb.mxu1 %v423_v6  ;;  %600 = vmatpush.msrb.mxu0 %v355_v7  ;;  %v3303_v43 = vld [vmem:[%s3259_s6 + $0x38] sm:$0xff]  ;;  %v391_v45 = vld [vmem:[#allocation5 + $0x2f0] sm:$0xff] }
  0x5a   : > { %723 = vmatpush.msrb.mxu3 %v420_v8  ;;  %683 = vmatpush.msrb.mxu2 %v352_v9  ;;  %v388_v46 = vld [vmem:[#allocation5 + $0x2d8] sm:$0xff]  ;;  %v387_v48 = vld [vmem:[#allocation5 + $0x2d0] sm:$0xff] }
  0x5b   : > { %641 = vmatpush.msrb.mxu1 %v419_v10  ;;  %601 = vmatpush.msrb.mxu0 %v351_v11  ;;  %v320_v47 = vld [vmem:[#allocation5 + $0xb8] sm:$0xff]  ;;  %v319_v49 = vld [vmem:[#allocation5 + $0xb0] sm:$0xff] }
  0x5c   : > { %454 = vmatmul.f32.gmra.mxu0 %v3280_v12  ;;  %536 = vmatmul.f32.gmra.mxu2 %v3280_v12  ;;  %v384_v50 = vld [vmem:[#allocation5 + $0x2b8] sm:$0xff]  ;;  %v383_v52 = vld [vmem:[#allocation5 + $0x2b0] sm:$0xff] }
  0x5d   : > { %724 = vmatpush.msrb.mxu3 %v416_v13  ;;  %684 = vmatpush.msrb.mxu2 %v348_v14  ;;  %v316_v51 = vld [vmem:[#allocation5 + $0x98] sm:$0xff]  ;;  %v315_v53 = vld [vmem:[#allocation5 + $0x90] sm:$0xff] }
  0x5e   : > { %495 = vmatmul.f32.gmra.mxu1 %v3283_v15  ;;  %602 = vmatpush.msrb.mxu0 %v347_v16  ;;  %v380_v55 = vld [vmem:[#allocation5 + $0x298] sm:$0xff]  ;;  %v311_v58 = vld [vmem:[#allocation5 + $0x70] sm:$0xff]  ;;  %v293_v16 = vld [vmem:[%s3259_s6 + $0x60] sm:$0xff] }
  0x5f   : > { %577 = vmatmul.f32.gmra.mxu3 %v3283_v15  ;;  %642 = vmatpush.msrb.mxu1 %v415_v17  ;;  %v312_v56 = vld [vmem:[#allocation5 + $0x78] sm:$0xff]  ;;  %v379_v59 = vld [vmem:[#allocation5 + $0x290] sm:$0xff]  ;;  %v294_v17 = vld [vmem:[%s3259_s6 + $0x68] sm:$0xff] }
  0x60   : > { %725 = vmatpush.msrb.mxu3 %v412_v18  ;;  %685 = vmatpush.msrb.mxu2 %v344_v19  ;;  %v376_v60 = vld [vmem:[#allocation5 + $0x278] sm:$0xff]  ;;  %v375_v63 = vld [vmem:[#allocation5 + $0x270] sm:$0xff] }
  0x61   : > { %643 = vmatpush.msrb.mxu1 %v411_v20  ;;  %603 = vmatpush.msrb.mxu0 %v343_v21  ;;  %v308_v61 = vld [vmem:[#allocation5 + $0x58] sm:$0xff]  ;;  %v307_v0 = vld [vmem:[#allocation5 + $0x50] sm:$0xff] }
  0x62   : > { %726 = vmatpush.msrb.mxu3 %v408_v22  ;;  %686 = vmatpush.msrb.mxu2 %v340_v23  ;;  %v372_v1 = vld [vmem:[#allocation5 + $0x258] sm:$0xff]  ;;  %v371_v4 = vld [vmem:[#allocation5 + $0x250] sm:$0xff] }
  0x63   : > { %644 = vmatpush.msrb.mxu1 %v407_v24  ;;  %604 = vmatpush.msrb.mxu0 %v339_v25  ;;  %v304_v3 = vld [vmem:[#allocation5 + $0x38] sm:$0xff]  ;;  %v303_v5 = vld [vmem:[#allocation5 + $0x30] sm:$0xff]  ;;  %v2199_v24 = vld [vmem:[#allocation7 + $0xe0] sm:$0xff] }
  0x64   : > { %457 = vmatmul.f32.gmra.mxu0 %v3290_v26  ;;  %539 = vmatmul.f32.gmra.mxu2 %v3290_v26  ;;  %v291_v6 = vld [vmem:[%s3259_s6 + $0x50] sm:$0xff]  ;;  %v368_v7 = vld [vmem:[#allocation5 + $0x238] sm:$0xff] }
  0x65   : > { %727 = vmatpush.msrb.mxu3 %v404_v27  ;;  %687 = vmatpush.msrb.mxu2 %v336_v28  ;;  %v300_v8 = vld [vmem:[#allocation5 + $0x18] sm:$0xff]  ;;  %v299_v10 = vld [vmem:[#allocation5 + $0x10] sm:$0xff] }
  0x66   : > { %498 = vmatmul.f32.gmra.mxu1 %v3293_v29  ;;  %605 = vmatpush.msrb.mxu0 %v335_v30  ;;  %v292_v9 = vld [vmem:[%s3259_s6 + $0x58] sm:$0xff]  ;;  %v367_v11 = vld [vmem:[#allocation5 + $0x230] sm:$0xff]  ;;  %v2195_v30 = vld [vmem:[#allocation7 + $0xc0] sm:$0xff] }
  0x67   : > { %580 = vmatmul.f32.gmra.mxu3 %v3293_v29  ;;  %645 = vmatpush.msrb.mxu1 %v403_v31  ;;  %v364_v13 = vld [vmem:[#allocation5 + $0x218] sm:$0xff]  ;;  %v363_v14 = vld [vmem:[#allocation5 + $0x210] sm:$0xff] }
  0x68   : > { %728 = vmatpush.msrb.mxu3 %v400_v32  ;;  %688 = vmatpush.msrb.mxu2 %v332_v33  ;;  %v295_v18 = vld [vmem:[%s3259_s6 + $0x70] sm:$0xff]  ;;  %v296_v19 = vld [vmem:[%s3259_s6 + $0x78] sm:$0xff] }
  0x69   : > { %646 = vmatpush.msrb.mxu1 %v399_v34  ;;  %606 = vmatpush.msrb.mxu0 %v331_v35  ;;  %v2201_v20 = vld [vmem:[#allocation7 + $0xf0] sm:$0xff] }
  0x6a   : > { %729 = vmatpush.msrb.mxu3 %v396_v36  ;;  %689 = vmatpush.msrb.mxu2 %v328_v37  ;;  %v2233_v31 = vld [vmem:[#allocation7 + $0x1f0] sm:$0xff] }
  0x6b   : > { %647 = vmatpush.msrb.mxu1 %v395_v38  ;;  %607 = vmatpush.msrb.mxu0 %v327_v39  ;;  %v2193_v38 = vld [vmem:[#allocation7 + $0xb0] sm:$0xff]  ;;  %v2231_v39 = vld [vmem:[#allocation7 + $0x1e0] sm:$0xff] }
  0x6c   : > { %460 = vmatmul.f32.gmra.mxu0 %v3300_v40  ;;  %542 = vmatmul.f32.gmra.mxu2 %v3300_v40 }
  0x6d   : > { %730 = vmatpush.msrb.mxu3 %v392_v41  ;;  %690 = vmatpush.msrb.mxu2 %v324_v42 }
  0x6e   : > { %501 = vmatmul.f32.gmra.mxu1 %v3303_v43  ;;  %608 = vmatpush.msrb.mxu0 %v323_v44 }
  0x6f   : > { %583 = vmatmul.f32.gmra.mxu3 %v3303_v43  ;;  %648 = vmatpush.msrb.mxu1 %v391_v45 }
  0x70   : > { %731 = vmatpush.msrb.mxu3 %v388_v46  ;;  %691 = vmatpush.msrb.mxu2 %v320_v47 }
  0x71   : > { %649 = vmatpush.msrb.mxu1 %v387_v48  ;;  %609 = vmatpush.msrb.mxu0 %v319_v49 }
  0x72   : > { %732 = vmatpush.msrb.mxu3 %v384_v50  ;;  %692 = vmatpush.msrb.mxu2 %v316_v51  ;;  %v2191_v51 = vld [vmem:[#allocation7 + $0xa0] sm:$0xff] }
  0x73   : > { %650 = vmatpush.msrb.mxu1 %v383_v52  ;;  %610 = vmatpush.msrb.mxu0 %v315_v53  ;;  %v2229_v52 = vld [vmem:[#allocation7 + $0x1d0] sm:$0xff] }
  0x74   : > { %463 = vmatmul.f32.gmra.mxu0 %v3310_v54  ;;  %545 = vmatmul.f32.gmra.mxu2 %v3310_v54 }
  0x75   : > { %733 = vmatpush.msrb.mxu3 %v380_v55  ;;  %693 = vmatpush.msrb.mxu2 %v312_v56 }
  0x76   : > { %504 = vmatmul.f32.gmra.mxu1 %v3313_v57  ;;  %611 = vmatpush.msrb.mxu0 %v311_v58 }
  0x77   : > { %586 = vmatmul.f32.gmra.mxu3 %v3313_v57  ;;  %651 = vmatpush.msrb.mxu1 %v379_v59  ;;  %v2189_v59 = vld [vmem:[#allocation7 + $0x90] sm:$0xff] }
  0x78   : > { %734 = vmatpush.msrb.mxu3 %v376_v60  ;;  %694 = vmatpush.msrb.mxu2 %v308_v61 }
  0x79   : > { %652 = vmatpush.msrb.mxu1 %v375_v63  ;;  %612 = vmatpush.msrb.mxu0 %v307_v0  ;;  %v2227_v0 = vld [vmem:[#allocation7 + $0x1c0] sm:$0xff] }
  0x7a   : > { %735 = vmatpush.msrb.mxu3 %v372_v1  ;;  %695 = vmatpush.msrb.mxu2 %v304_v3 }
  0x7b   : > { %653 = vmatpush.msrb.mxu1 %v371_v4  ;;  %613 = vmatpush.msrb.mxu0 %v303_v5  ;;  %v2187_v5 = vld [vmem:[#allocation7 + $0x80] sm:$0xff] }
  0x7c   : > { %466 = vmatmul.f32.gmra.mxu0 %v291_v6  ;;  %548 = vmatmul.f32.gmra.mxu2 %v291_v6 }
  0x7d   : > { %736 = vmatpush.msrb.mxu3 %v368_v7  ;;  %696 = vmatpush.msrb.mxu2 %v300_v8 }
  0x7e   : > { %507 = vmatmul.f32.gmra.mxu1 %v292_v9  ;;  %614 = vmatpush.msrb.mxu0 %v299_v10 }
  0x7f   : > { %589 = vmatmul.f32.gmra.mxu3 %v292_v9  ;;  %654 = vmatpush.msrb.mxu1 %v367_v11 }
  0x80   : > { %737 = vmatpush.msrb.mxu3 %v364_v13  ;;  %2305 = vmatpush.msra.mxu0 %v2201_v20  ;;  %v2183_v20 = vld [vmem:[#allocation7 + $0x60] sm:$0xff] }
  0x81   : > { %655 = vmatpush.msrb.mxu1 %v363_v14 }
  0x82   : > { %2306 = vmatpush.msra.mxu0 %v2199_v24 }
  0x83   : > { %2346 = vmatpush.msra.mxu1 %v2233_v31 }
  0x84   : > { %469 = vmatmul.f32.gmra.mxu0 %v293_v16  ;;  %551 = vmatmul.f32.gmra.mxu2 %v293_v16 }
  0x85   : > { %2347 = vmatpush.msra.mxu1 %v2231_v39 }
  0x86   : > { %510 = vmatmul.f32.gmra.mxu1 %v294_v17 }
  0x87   : > { %592 = vmatmul.f32.gmra.mxu3 %v294_v17  ;;  %2348 = vmatpush.msra.mxu1 %v2229_v52 }
  0x89   : > { %2349 = vmatpush.msra.mxu1 %v2227_v0 }
  0x8c   : > { %472 = vmatmul.f32.gmra.mxu0 %v295_v18  ;;  %554 = vmatmul.f32.gmra.mxu2 %v295_v18 }
  0x8e   : > { %513 = vmatmul.f32.gmra.mxu1 %v296_v19 }
  0x8f   : > { %595 = vmatmul.f32.gmra.mxu3 %v296_v19 }
  0x94   : > { %615 = vmatmul.f32.vlgmr.msrb.gmra.mxu0 %v3270_v62  ;;  %697 = vmatmul.f32.vlgmr.msrb.gmra.mxu2 %v3270_v62  ;;  %v3348_v62 = vld [vmem:[%s4897_s2] sm:$0xf] }
  0x95   : > { %v3357_v23 = vperm.slane %v3348_v62, 1 }
  0x96   : > { %656 = vmatmul.f32.vlgmr.msrb.gmra.mxu1 %v3273_v2 }
  0x97   : > { %738 = vmatmul.f32.vlgmr.msrb.gmra.mxu3 %v3273_v2  ;;  %v3351_v2 = vperm.slane %v3348_v62, 0 }
  0x9c   : > { %618 = vmatmul.f32.gmra.mxu0 %v3280_v12  ;;  %700 = vmatmul.f32.gmra.mxu2 %v3280_v12 }
  0x9e   : > { %659 = vmatmul.f32.gmra.mxu1 %v3283_v15 }
  0x9f   : > { %741 = vmatmul.f32.gmra.mxu3 %v3283_v15 }
  0xa4   : > { %621 = vmatmul.f32.gmra.mxu0 %v3290_v26  ;;  %703 = vmatmul.f32.gmra.mxu2 %v3290_v26  ;;  %v2197_v26 = vld [vmem:[#allocation7 + $0xd0] sm:$0xff] }
  0xa5   : > { %2307 = vmatpush.msra.mxu0 %v2197_v26 }
  0xa6   : > { %662 = vmatmul.f32.gmra.mxu1 %v3293_v29 }
  0xa7   : > { %744 = vmatmul.f32.gmra.mxu3 %v3293_v29  ;;  %2308 = vmatpush.msra.mxu0 %v2195_v30 }
  0xa9   : > { %2309 = vmatpush.msra.mxu0 %v2193_v38  ;;  %v2219_v38 = vld [vmem:[#allocation7 + $0x180] sm:$0xff] }
  0xab   : > { %2310 = vmatpush.msra.mxu0 %v2191_v51  ;;  %v2177_v51 = vld [vmem:[#allocation7 + $0x30] sm:$0xff] }
  0xac   : > { %624 = vmatmul.f32.gmra.mxu0 %v3300_v40  ;;  %706 = vmatmul.f32.gmra.mxu2 %v3300_v40 }
  0xad   : > { %2311 = vmatpush.msra.mxu0 %v2189_v59 }
  0xae   : > { %665 = vmatmul.f32.gmra.mxu1 %v3303_v43 }
  0xaf   : > { %747 = vmatmul.f32.gmra.mxu3 %v3303_v43  ;;  %2312 = vmatpush.msra.mxu0 %v2187_v5 }
  0xb4   : > { %627 = vmatmul.f32.gmra.mxu0 %v3310_v54  ;;  %709 = vmatmul.f32.gmra.mxu2 %v3310_v54 }
  0xb6   : > { %668 = vmatmul.f32.gmra.mxu1 %v3313_v57 }
  0xb7   : > { %750 = vmatmul.f32.gmra.mxu3 %v3313_v57 }
  0xbc   : > { %630 = vmatmul.f32.gmra.mxu0 %v291_v6  ;;  %712 = vmatmul.f32.gmra.mxu2 %v291_v6  ;;  %v2225_v6 = vld [vmem:[#allocation7 + $0x1b0] sm:$0xff] }
  0xbd   : > { %2350 = vmatpush.msra.mxu1 %v2225_v6 }
  0xbe   : > { %671 = vmatmul.f32.gmra.mxu1 %v292_v9 }
  0xbf   : > { %753 = vmatmul.f32.gmra.mxu3 %v292_v9 }
  0xc4   : > { %633 = vmatmul.f32.gmra.mxu0 %v293_v16  ;;  %715 = vmatmul.f32.gmra.mxu2 %v293_v16 }
  0xc6   : > { %674 = vmatmul.f32.gmra.mxu1 %v294_v17 }
  0xc7   : > { %756 = vmatmul.f32.gmra.mxu3 %v294_v17  ;;  %v2185_v17 = vld [vmem:[#allocation7 + $0x70] sm:$0xff] }
  0xc8   : > { %2313 = vmatpush.msra.mxu0 %v2185_v17 }
  0xca   : > { %2314 = vmatpush.msra.mxu0 %v2183_v20 }
  0xcc   : > { %636 = vmatmul.f32.gmra.mxu0 %v295_v18  ;;  %718 = vmatmul.f32.gmra.mxu2 %v295_v18  ;;  %v2223_v18 = vld [vmem:[#allocation7 + $0x1a0] sm:$0xff] }
  0xcd   : > { %2351 = vmatpush.msra.mxu1 %v2223_v18  ;;  %v2171_v18 = vld [vmem:[#allocation7] sm:$0xff] }
  0xce   : > { %677 = vmatmul.f32.gmra.mxu1 %v296_v19 }
  0xcf   : > { %759 = vmatmul.f32.gmra.mxu3 %v296_v19 }
  0xd1   : > { %v452_v12 = vpop.f32.mrf.mxu0 }
  0xd2   : > { %v453_v15 = vadd.f32 %v452_v12, %v3351_v2 }
  0xd3   : > { %v493_v21 = vpop.f32.mrf.mxu1 }
  0xd4   : > { %v3354_v22 = vadd.f32 %v493_v21, %v453_v15  ;;  %v2221_v21 = vld [vmem:[#allocation7 + $0x190] sm:$0xff] }
  0xd5   : > { %2352 = vmatpush.msra.mxu1 %v2221_v21 }
  0xd6   : > { %v3360_v25 = vmul.f32 0.70710677, %v3354_v22 }
  0xd7   : > { %v534_v27 = vpop.f32.mrf.mxu2  ;;  %2353 = vmatpush.msra.mxu1 %v2219_v38  ;;  %v2205_v38 = vld [vmem:[#allocation7 + $0x110] sm:$0xff] }
  0xd8   : > { %v827_v28 = vmul.f32 %v3360_v25, %v3360_v25  ;;  %v535_v29 = vadd.f32 %v534_v27, %v3357_v23 }
  0xd9   : > { %v455_v32 = vpop.f32.mrf.mxu0 }
  0xda   : > { %v3365_v33 = vmin.f32 %v827_v28, 16.0  ;;  %v456_v34 = vadd.f32 %v455_v32, %v3351_v2  ;;  %v575_v35 = vpop.f32.mrf.mxu3 }
  0xdb   : > { %v3368_v36 = vadd.f32 %v575_v35, %v535_v29  ;;  %v496_v37 = vpop.f32.mrf.mxu1 }
  0xdc   : > { %v829_v40 = vmul.f32 2.1237322e-06, %v3365_v33  ;;  %v840_v41 = vmul.f32 3.8918573e-05, %v3365_v33  ;;  %v3375_v43 = vadd.f32 %v496_v37, %v456_v34  ;;  %v2181_v37 = vld [vmem:[#allocation7 + $0x50] sm:$0xff] }
  0xdd   : > { %v3373_v42 = vmul.f32 0.70710677, %v3368_v36  ;;  %2315 = vmatpush.msra.mxu0 %v2181_v37 }
  0xde   : > { %v830_v44 = vadd.f32 0.00028619796, %v829_v40  ;;  %v841_v45 = vadd.f32 0.001143296, %v840_v41  ;;  %v3385_v54 = vmul.f32 0.70710677, %v3375_v43 }
  0xdf   : > { %v867_v46 = vmul.f32 %v3373_v42, %v3373_v42  ;;  %v537_v47 = vpop.f32.mrf.mxu2 }
  0xe0   : > { %v831_v48 = vmul.f32 %v830_v44, %v3365_v33  ;;  %v842_v49 = vmul.f32 %v841_v45, %v3365_v33  ;;  %v538_v50 = vadd.f32 %v537_v47, %v3357_v23  ;;  %v987_v14 = vmul.f32 %v3385_v54, %v3385_v54  ;;  %v2179_v44 = vld [vmem:[#allocation7 + $0x40] sm:$0xff]  ;;  %v2217_v45 = vld [vmem:[#allocation7 + $0x170] sm:$0xff] }
  0xe1   : > { %v3382_v53 = vmin.f32 %v867_v46, 16.0  ;;  %v458_v55 = vpop.f32.mrf.mxu0  ;;  %2316 = vmatpush.msra.mxu0 %v2179_v44  ;;  %2354 = vmatpush.msra.mxu1 %v2217_v45  ;;  %v3452_v44 = vmul.f32 0.5, %v3354_v22 }
  0xe2   : > { %v832_v56 = vadd.f32 0.0036580483, %v831_v48  ;;  %v843_v57 = vadd.f32 0.014752088, %v842_v49  ;;  %v578_v58 = vpop.f32.mrf.mxu3  ;;  %v459_v10 = vadd.f32 %v458_v55, %v3351_v2  ;;  %v3406_v34 = vmin.f32 %v987_v14, 16.0 }
  0xe3   : > { %v869_v60 = vmul.f32 2.1237322e-06, %v3382_v53  ;;  %v880_v61 = vmul.f32 3.8918573e-05, %v3382_v53  ;;  %v499_v63 = vpop.f32.mrf.mxu1  ;;  %v3391_v4 = vadd.f32 %v578_v58, %v538_v50  ;;  %v2215_v58 = vld [vmem:[#allocation7 + $0x160] sm:$0xff]  ;;  %2317 = vmatpush.msra.mxu0 %v2177_v51 }
  0xe4   : > { %v833_v1 = vmul.f32 %v832_v56, %v3365_v33  ;;  %v844_v3 = vmul.f32 %v843_v57, %v3365_v33  ;;  %v3402_v29 = vadd.f32 %v499_v63, %v459_v10  ;;  %v989_v56 = vmul.f32 2.1237322e-06, %v3406_v34  ;;  %v2213_v63 = vld [vmem:[#allocation7 + $0x150] sm:$0xff]  ;;  %2355 = vmatpush.msra.mxu1 %v2215_v58  ;;  %v2203_v51 = vld [vmem:[#allocation7 + $0x100] sm:$0xff] }
  0xe5   : > { %v870_v7 = vadd.f32 0.00028619796, %v869_v60  ;;  %v881_v8 = vadd.f32 0.001143296, %v880_v61  ;;  %v3400_v15 = vmul.f32 0.70710677, %v3391_v4 }
  0xe6   : > { %v845_v9 = vadd.f32 0.112945676, %v844_v3  ;;  %v834_v19 = vadd.f32 0.05243302, %v833_v1  ;;  %v3416_v49 = vmul.f32 0.70710677, %v3402_v29  ;;  %2356 = vmatpush.msra.mxu1 %v2213_v63 }
  0xe7   : > { %v871_v11 = vmul.f32 %v870_v7, %v3382_v53  ;;  %v882_v13 = vmul.f32 %v881_v8, %v3382_v53  ;;  %v540_v16 = vpop.f32.mrf.mxu2  ;;  %v1027_v41 = vmul.f32 %v3400_v15, %v3400_v15  ;;  %v2175_v61 = vld [vmem:[#allocation7 + $0x20] sm:$0xff]  ;;  %v2173_v8 = vld [vmem:[#allocation7 + $0x10] sm:$0xff] }
  0xe8   : > { %v846_v12 = vmul.f32 %v845_v9, %v3365_v33  ;;  %v835_v39 = vmul.f32 %v834_v19, %v3365_v33  ;;  %v541_v47 = vadd.f32 %v540_v16, %v3357_v23  ;;  %v1147_v5 = vmul.f32 %v3416_v49, %v3416_v49  ;;  %2318 = vmatpush.msra.mxu0 %v2175_v61  ;;  %v2209_v19 = vld [vmem:[#allocation7 + $0x130] sm:$0xff] }
  0xe9   : > { %v872_v24 = vadd.f32 0.0036580483, %v871_v11  ;;  %v883_v26 = vadd.f32 0.014752088, %v882_v13  ;;  %v461_v27 = vpop.f32.mrf.mxu0  ;;  %v3422_v60 = vmin.f32 %v1027_v41, 16.0  ;;  %v2211_v13 = vld [vmem:[#allocation7 + $0x140] sm:$0xff] }
  0xea   : > { %v847_v28 = vadd.f32 0.4994258, %v846_v12  ;;  %v581_v30 = vpop.f32.mrf.mxu3  ;;  %v462_v50 = vadd.f32 %v461_v27, %v3351_v2  ;;  %v836_v59 = vadd.f32 0.18741608, %v835_v39  ;;  %v990_v16 = vadd.f32 0.00028619796, %v989_v56  ;;  %2319 = vmatpush.msra.mxu0 %v2173_v8  ;;  %2357 = vmatpush.msra.mxu1 %v2211_v13 }
  0xeb   : > { %v873_v31 = vmul.f32 %v872_v24, %v3382_v53  ;;  %v884_v32 = vmul.f32 %v883_v26, %v3382_v53  ;;  %v502_v35 = vpop.f32.mrf.mxu1  ;;  %v3424_v1 = vadd.f32 %v581_v30, %v541_v47  ;;  %v1029_v17 = vmul.f32 2.1237322e-06, %v3422_v60 }
  0xec   : > { %v848_v40 = vmul.f32 %v847_v28, %v3365_v33  ;;  %v3428_v6 = vadd.f32 %v502_v35, %v462_v50  ;;  %v837_v14 = vmul.f32 %v836_v59, %v3365_v33  ;;  %v3439_v24 = vmin.f32 %v1147_v5, 16.0  ;;  %2320 = vmatpush.msra.mxu0 %v2171_v18  ;;  %v2207_v33 = vld [vmem:[#allocation7 + $0x120] sm:$0xff]  ;;  %2358 = vmatpush.msra.mxu1 %v2209_v19 }
  0xed   : > { %v885_v46 = vadd.f32 0.112945676, %v884_v32  ;;  %v874_v52 = vadd.f32 0.05243302, %v873_v31  ;;  %v3437_v20 = vmul.f32 0.70710677, %v3424_v1  ;;  %v991_v32 = vmul.f32 %v990_v16, %v3406_v34 }
  0xee   : > { %v3413_v48 = vadd.f32 1.0, %v848_v40  ;;  %v3442_v26 = vmul.f32 0.70710677, %v3428_v6  ;;  %v838_v31 = vadd.f32 1.1283791, %v837_v14  ;;  %2359 = vmatpush.msra.mxu1 %v2207_v33 }
  0xef   : > { %v886_v55 = vmul.f32 %v885_v46, %v3382_v53  ;;  %v543_v57 = vpop.f32.mrf.mxu2  ;;  %v875_v9 = vmul.f32 %v874_v52, %v3382_v53  ;;  %v1030_v35 = vadd.f32 0.00028619796, %v1029_v17  ;;  %v1187_v41 = vmul.f32 %v3437_v20, %v3437_v20 }
  0xf0   : > { %2887 = vrcp.f32 %v3413_v48  ;;  %v544_v37 = vadd.f32 %v543_v57, %v3357_v23  ;;  %v861_v40 = vand.u32 2147483648, %v3413_v48  ;;  %v1149_v45 = vmul.f32 2.1237322e-06, %v3439_v24  ;;  %2360 = vmatpush.msra.mxu1 %v2205_v38 }
  0xf1   : > { %v887_v0 = vadd.f32 0.4994258, %v886_v55  ;;  %v464_v3 = vpop.f32.mrf.mxu0  ;;  %v876_v28 = vadd.f32 0.18741608, %v875_v9  ;;  %v1307_v46 = vmul.f32 %v3442_v26, %v3442_v26  ;;  %v859_v55 = vand.u32 2147483647, %v3413_v48 }
  0xf2   : > { %v584_v7 = vpop.f32.mrf.mxu3  ;;  %v465_v47 = vadd.f32 %v464_v3, %v3351_v2  ;;  %v839_v22 = vmul.f32 %v838_v31, %v3360_v25  ;;  %v3461_v58 = vadd.f32 0.0036580483, %v991_v32  ;;  %v1031_v59 = vmul.f32 %v1030_v35, %v3422_v60  ;;  %2361 = vmatpush.msra.mxu1 %v2203_v51 }
  0xf3   : > { %v888_v10 = vmul.f32 %v887_v0, %v3382_v53  ;;  %v505_v11 = vpop.f32.mrf.mxu1  ;;  %v877_v56 = vmul.f32 %v876_v28, %v3382_v53  ;;  %v3464_v61 = vadd.f32 %v584_v7, %v544_v37  ;;  %vm855_vm1 = vweird.f32 %v3413_v48 }
  0xf4   : > { %v862_v3 = vor.u32 1.1754944e-38, %v861_v40  ;;  %v3467_v5 = vmin.f32 %v1187_v41, 16.0  ;;  %v3471_v25 = vmin.f32 %v1307_v46, 16.0  ;;  %v3476_v7 = vadd.f32 %v505_v11, %v465_v47 }
  0xf5   : > { %v3434_v12 = vadd.f32 1.0, %v888_v10  ;;  %v3474_v9 = vmul.f32 0.70710677, %v3464_v61  ;;  %vm860_vm3 = vcmp.eq.f32.partialorder %v859_v55, 8.507059e+37  ;;  %v878_v13 = vadd.f32 1.1283791, %v877_v56 }
  0xf6   : > { %v2888_v21 = vpop.eup %2887  ;;  %4941 = vst [vmem:[#allocation12_spill] sm:$0xff] %v3476_v7  ;;  %v1189_v28 = vmul.f32 2.1237322e-06, %v3467_v5  ;;  %v3486_v32 = vmul.f32 0.70710677, %v3476_v7 }
  0xf7   : > { %v851_v27 = vmul.f32 %v2888_v21, %v3413_v48  ;;  %2889 = vrcp.f32 %v3434_v12  ;;  %v546_v30 = vpop.f32.mrf.mxu2  ;;  %vm856_vm0 = vweird.f32 %v2888_v21  ;;  %v1150_v48 = vadd.f32 0.00028619796, %v1149_v45 }
  0xf8   : > { %vm857_vm2 = vmor %vm855_vm1, %vm856_vm0  ;;  %v901_v18 = vand.u32 2147483648, %v3434_v12  ;;  %v1347_v19 = vmul.f32 %v3474_v9, %v3474_v9  ;;  %v547_v11 = vadd.f32 %v546_v30, %v3357_v23  ;;  %v879_v37 = vmul.f32 %v878_v13, %v3373_v42 }
  0xf9   : > { %v852_v39 = vsub.f32 1.0, %v851_v27  ;;  %v467_v57 = vpop.f32.mrf.mxu0  ;;  %v899_v27 = vand.u32 2147483647, %v3434_v12  ;;  %v1151_v38 = vmul.f32 %v1150_v48, %v3439_v24  ;;  %vm895_vm5 = vweird.f32 %v3434_v12 }
  0xfa   : > { %v587_v50 = vpop.f32.mrf.mxu3  ;;  %v902_v45 = vor.u32 1.1754944e-38, %v901_v18  ;;  %v1467_v30 = vmul.f32 %v3486_v32, %v3486_v32  ;;  %v1190_v47 = vadd.f32 0.00028619796, %v1189_v28  ;;  %v468_v51 = vadd.f32 %v467_v57, %v3351_v2 }
  0xfb   : > { %v853_v52 = vmul.f32 %v2888_v21, %v852_v39  ;;  %v508_v8 = vpop.f32.mrf.mxu1  ;;  %v3490_v39 = vmin.f32 %v1347_v19, 16.0  ;;  %vm900_vm7 = vcmp.eq.f32.partialorder %v899_v27, 8.507059e+37  ;;  %v1032_v57 = vadd.f32 0.0036580483, %v1031_v59 }
  0xfc   : > { %v1152_v48 = vadd.f32 0.0036580483, %v1151_v38  ;;  %v993_v19 = vmul.f32 %v3461_v58, %v3406_v34  ;;  %v764_v59 = vmul.f32 0.5, %v3368_v36 }
  0xfd   : > { %v2890_v63 = vpop.eup %2889  ;;  %v854_v0 = vadd.f32 %v2888_v21, %v853_v52  ;;  %v3496_v52 = vadd.f32 %v587_v50, %v547_v11 }
  0xfe   : > { %v891_v53 = vmul.f32 %v2890_v63, %v3434_v12  ;;  %vm896_vm4 = vweird.f32 %v2890_v63  ;;  %v1153_v58 = vmul.f32 %v1152_v48, %v3439_v24 }
  0xff   : > { %v858_v10 = vsel %vm857_vm2, %v2888_v21, %v854_v0  ;;  %v549_v14 = vpop.f32.mrf.mxu2  ;;  %v1309_v21 = vmul.f32 2.1237322e-06, %v3471_v25  ;;  %vm897_vm6 = vmor %vm895_vm5, %vm896_vm4  ;;  %4942 = vst [vmem:[#allocation13_spill] sm:$0xff] %v3496_v52 }
 0x100   : > { %v863_v16 = vsel %vm860_vm3, %v862_v3, %v858_v10  ;;  %v892_v17 = vsub.f32 1.0, %v891_v53  ;;  %v1349_v3 = vmul.f32 2.1237322e-06, %v3490_v39  ;;  %v3505_v53 = vmul.f32 0.70710677, %v3496_v52 }
 0x101   : > { %v864_v33 = vmul.f32 %v863_v16, %v839_v22  ;;  %v470_v42 = vpop.f32.mrf.mxu0  ;;  %v1310_v56 = vadd.f32 0.00028619796, %v1309_v21  ;;  %v3498_v22 = vmin.f32 %v1467_v30, 16.0  ;;  %v3509_v16 = vadd.f32 %v508_v8, %v468_v51 }
 0x102   : > { %v893_v31 = vmul.f32 %v2890_v63, %v892_v17  ;;  %v590_v40 = vpop.f32.mrf.mxu3  ;;  %v550_v17 = vadd.f32 %v549_v14, %v3357_v23  ;;  %v1350_v28 = vadd.f32 0.00028619796, %v1349_v3 }
 0x103   : > { %v2772_v35 = vclamps-f32 %v864_v33, 1.0  ;;  %v511_v10 = vpop.f32.mrf.mxu1  ;;  %v1469_v50 = vmul.f32 2.1237322e-06, %v3498_v22  ;;  %4944 = vst [vmem:[#allocation15_spill] sm:$0xff] %v3509_v16  ;;  %v1507_v33 = vmul.f32 %v3505_v53, %v3505_v53  ;;  %v1311_v27 = vmul.f32 %v1310_v56, %v3471_v25 }
 0x104   : > { %v894_v41 = vadd.f32 %v2890_v63, %v893_v31  ;;  %v3520_v8 = vmul.f32 0.70710677, %v3509_v16  ;;  %v471_v31 = vadd.f32 %v470_v42, %v3351_v2  ;;  %v3523_v21 = vadd.f32 %v590_v40, %v550_v17 }
 0x105   : > { %v2107_v46 = vadd.f32 1.0, %v2772_v35  ;;  %v1470_v14 = vadd.f32 0.00028619796, %v1469_v50  ;;  %v1033_v35 = vmul.f32 %v1032_v57, %v3422_v60  ;;  %v3531_v30 = vmin.f32 %v1507_v33, 16.0 }
 0x106   : > { %v898_v55 = vsel %vm897_vm6, %v2890_v63, %v894_v41  ;;  %v1191_v63 = vmul.f32 %v1190_v47, %v3467_v5  ;;  %4945 = vst [vmem:[#allocation16_spill] sm:$0xff] %v3523_v21  ;;  %v1627_v36 = vmul.f32 %v3520_v8, %v3520_v8  ;;  %v1312_v47 = vadd.f32 0.0036580483, %v1311_v27 }
 0x107   : > { %v3501_v0 = vmul.f32 %v2107_v46, %v3452_v44  ;;  %v903_v12 = vsel %vm900_vm7, %v902_v45, %v898_v55  ;;  %v552_v44 = vpop.f32.mrf.mxu2  ;;  %v994_v45 = vadd.f32 0.05243302, %v993_v19  ;;  %4947 = vst [vmem:[#allocation18_spill] sm:$0xff] %v3531_v30  ;;  %v3534_v46 = vmul.f32 0.70710677, %v3523_v21 }
 0x108   : > { %v904_v13 = vmul.f32 %v903_v12, %v879_v37  ;;  %v1192_v37 = vadd.f32 0.0036580483, %v1191_v63  ;;  %v1351_v40 = vmul.f32 %v1350_v28, %v3490_v39  ;;  %v1471_v42 = vmul.f32 %v1470_v14, %v3498_v22 }
 0x109   : > { %4943 = vst [vmem:[#allocation14_spill] sm:$0xff] %v3501_v0  ;;  %2321 = vmatmul.f32.vlgmr.msra.gmra.mxu0 %v3501_v0  ;;  %v473_v51 = vpop.f32.mrf.mxu0  ;;  %v3538_v55 = vmin.f32 %v1627_v36, 16.0  ;;  %v1667_v56 = vmul.f32 %v3534_v46, %v3534_v46  ;;  %v3542_v12 = vadd.f32 %v511_v10, %v471_v31  ;;  %v1034_v3 = vadd.f32 0.05243302, %v1033_v35  ;;  %v2265_v31 = vld [vmem:[#allocation7 + $0x2f0] sm:$0xff] }
 0x10a   : > { %v2773_v18 = vclamps-f32 %v904_v13, 1.0  ;;  %v593_v38 = vpop.f32.mrf.mxu3  ;;  %v1154_v13 = vadd.f32 0.05243302, %v1153_v58  ;;  %v1193_v57 = vmul.f32 %v1192_v37, %v3467_v5  ;;  %v553_v50 = vadd.f32 %v552_v44, %v3357_v23  ;;  %v2297_v35 = vld [vmem:[#allocation7 + $0x3f0] sm:$0xff]  ;;  %2387 = vmatpush.msra.mxu2 %v2265_v31 }
 0x10b   : > { %4948 = vst [vmem:[#allocation19_spill] sm:$0xff] %v3538_v55  ;;  %v514_v48 = vpop.f32.mrf.mxu1  ;;  %v995_v63 = vmul.f32 %v994_v45, %v3406_v34  ;;  %v1509_v17 = vmul.f32 2.1237322e-06, %v3531_v30  ;;  %v474_v19 = vadd.f32 %v473_v51, %v3351_v2  ;;  %v1313_v10 = vmul.f32 %v1312_v47, %v3471_v25  ;;  %2428 = vmatpush.msra.mxu3 %v2297_v35 }
 0x10c   : > { %v2108_v11 = vadd.f32 1.0, %v2773_v18  ;;  %4949 = vst [vmem:[#allocation20_spill] sm:$0xff] %v3542_v12  ;;  %v3549_v18 = vmin.f32 %v1667_v56, 16.0  ;;  %v1352_v33 = vadd.f32 0.0036580483, %v1351_v40  ;;  %v3556_v27 = vadd.f32 %v593_v38, %v553_v50 }
 0x10d   : > { %v1629_v44 = vmul.f32 2.1237322e-06, %v3538_v55  ;;  %v3559_v14 = vadd.f32 %v514_v48, %v474_v19  ;;  %v1035_v58 = vmul.f32 %v1034_v3, %v3422_v60  ;;  %v1155_v2 = vmul.f32 %v1154_v13, %v3439_v24 }
 0x10e   : > { %v3529_v41 = vmul.f32 %v2108_v11, %v764_v59  ;;  %4950 = vst [vmem:[#allocation21_spill] sm:$0xff] %v3549_v18  ;;  %v3554_v59 = vmul.f32 0.70710677, %v3542_v12  ;;  %v1472_v11 = vadd.f32 0.0036580483, %v1471_v42  ;;  %v1353_v13 = vmul.f32 %v1352_v33, %v3490_v39 }
 0x10f   : > { %4951 = vst [vmem:[#allocation22_spill] sm:$0xff] %v3556_v27  ;;  %v555_v28 = vpop.f32.mrf.mxu2  ;;  %v1194_v37 = vadd.f32 0.05243302, %v1193_v57  ;;  %v3564_v36 = vmul.f32 0.70710677, %v3556_v27 }
 0x110   : > { %4946 = vst [vmem:[#allocation17_spill] sm:$0xff] %v3529_v41  ;;  %2362 = vmatmul.f32.vlgmr.msra.gmra.mxu1 %v3529_v41  ;;  %v1510_v38 = vadd.f32 0.00028619796, %v1509_v17  ;;  %v1669_v45 = vmul.f32 2.1237322e-06, %v3549_v18  ;;  %v556_v47 = vadd.f32 %v555_v28, %v3357_v23  ;;  %v1787_v42 = vmul.f32 %v3554_v59, %v3554_v59 }
 0x111   : > { %4952 = vst [vmem:[#allocation23_spill] sm:$0xff] %v3559_v14  ;;  %v996_v40 = vadd.f32 0.18741608, %v995_v63  ;;  %v1314_v51 = vadd.f32 0.05243302, %v1313_v10  ;;  %v1827_v56 = vmul.f32 %v3564_v36, %v3564_v36  ;;  %v1473_v57 = vmul.f32 %v1472_v11, %v3498_v22 }
 0x112   : > { %v596_v3 = vpop.f32.mrf.mxu3  ;;  %v1630_v50 = vadd.f32 0.00028619796, %v1629_v44  ;;  %v3575_v48 = vmul.f32 0.70710677, %v3559_v14  ;;  %v1036_v17 = vadd.f32 0.18741608, %v1035_v58  ;;  %v1195_v23 = vmul.f32 %v1194_v37, %v3467_v5 }
 0x113   : > { %v1156_v19 = vadd.f32 0.18741608, %v1155_v2  ;;  %v1511_v63 = vmul.f32 %v1510_v38, %v3531_v30  ;;  %v1670_v10 = vadd.f32 0.00028619796, %v1669_v45  ;;  %v3581_v31 = vadd.f32 %v596_v3, %v556_v47 }
 0x114   : > { %v1947_v28 = vmul.f32 %v3575_v48, %v3575_v48  ;;  %v997_v33 = vmul.f32 %v996_v40, %v3406_v34  ;;  %v3584_v35 = vmin.f32 %v1787_v42, 16.0  ;;  %v3586_v11 = vmin.f32 %v1827_v56, 16.0 }
 0x115   : > { %4953 = vst [vmem:[#allocation24_spill] sm:$0xff] %v3581_v31  ;;  %v1315_v44 = vmul.f32 %v1314_v51, %v3471_v25  ;;  %v1354_v58 = vadd.f32 0.05243302, %v1353_v13  ;;  %v1474_v2 = vadd.f32 0.05243302, %v1473_v57  ;;  %v1631_v37 = vmul.f32 %v1630_v50, %v3538_v55 }
 0x116   : > { %4954 = vst [vmem:[#allocation25_spill] sm:$0xff] %v3584_v35  ;;  %v1037_v38 = vmul.f32 %v1036_v17, %v3422_v60  ;;  %v3591_v45 = vmin.f32 %v1947_v28, 16.0  ;;  %v3594_v41 = vmul.f32 0.70710677, %v3581_v31  ;;  %v1157_v47 = vmul.f32 %v1156_v19, %v3439_v24 }
 0x117   : > { %v1196_v40 = vadd.f32 0.18741608, %v1195_v23  ;;  %v1512_v42 = vadd.f32 0.0036580483, %v1511_v63  ;;  %v1671_v56 = vmul.f32 %v1670_v10, %v3549_v18  ;;  %v998_v3 = vadd.f32 1.1283791, %v997_v33 }
 0x118   : > { %v1789_v51 = vmul.f32 2.1237322e-06, %v3584_v35  ;;  %v1829_v13 = vmul.f32 2.1237322e-06, %v3586_v11  ;;  %v1316_v57 = vadd.f32 0.18741608, %v1315_v44  ;;  %v1355_v50 = vmul.f32 %v1354_v58, %v3490_v39 }
 0x119   : > { %v1475_v17 = vmul.f32 %v1474_v2, %v3498_v22  ;;  %v1632_v28 = vadd.f32 0.0036580483, %v1631_v37  ;;  %v1038_v0 = vadd.f32 1.1283791, %v1037_v38  ;;  %v1949_v31 = vmul.f32 2.1237322e-06, %v3591_v45 }
 0x11a   : > { %v1987_v19 = vmul.f32 %v3594_v41, %v3594_v41  ;;  %v3606_v23 = vmul.f32 0.5, %v3375_v43  ;;  %v1158_v63 = vadd.f32 1.1283791, %v1157_v47  ;;  %v1197_v10 = vmul.f32 %v1196_v40, %v3467_v5 }
 0x11b   : > { %v1513_v33 = vmul.f32 %v1512_v42, %v3531_v30  ;;  %v1672_v44 = vadd.f32 0.0036580483, %v1671_v56  ;;  %v3611_v58 = vmul.f32 %v998_v3, %v3385_v54  ;;  %v1790_v2 = vadd.f32 0.00028619796, %v1789_v51 }
 0x11c   : > { %v1830_v37 = vadd.f32 0.00028619796, %v1829_v13  ;;  %v1000_v38 = vmul.f32 3.8918573e-05, %v3406_v34  ;;  %v1317_v14 = vmul.f32 %v1316_v57, %v3471_v25  ;;  %v1356_v27 = vadd.f32 0.18741608, %v1355_v50 }
 0x11d   : > { %v1476_v12 = vadd.f32 0.18741608, %v1475_v17  ;;  %v1633_v43 = vmul.f32 %v1632_v28, %v3538_v55  ;;  %v3617_v47 = vmul.f32 %v1038_v0, %v3400_v15  ;;  %v1950_v40 = vadd.f32 0.00028619796, %v1949_v31 }
 0x11e   : > { %v3619_v21 = vmin.f32 %v1987_v19, 16.0  ;;  %v1001_v42 = vadd.f32 0.001143296, %v1000_v38  ;;  %v3622_v54 = vmul.f32 %v1158_v63, %v3416_v49  ;;  %v1198_v56 = vadd.f32 1.1283791, %v1197_v10 }
 0x11f   : > { %v1514_v3 = vadd.f32 0.05243302, %v1513_v33  ;;  %v1673_v51 = vmul.f32 %v1672_v44, %v3549_v18  ;;  %v1791_v13 = vmul.f32 %v1790_v2, %v3584_v35  ;;  %v1831_v57 = vmul.f32 %v1830_v37, %v3586_v11 }
 0x120   : > { %v1002_v50 = vmul.f32 %v1001_v42, %v3406_v34  ;;  %v1040_v15 = vmul.f32 3.8918573e-05, %v3422_v60  ;;  %v1318_v0 = vadd.f32 1.1283791, %v1317_v14  ;;  %v1357_v31 = vmul.f32 %v1356_v27, %v3490_v39  ;;  %v616_v14 = vpop.f32.mrf.mxu0 }
 0x121   : > { %v1477_v17 = vmul.f32 %v1476_v12, %v3498_v22  ;;  %v1634_v28 = vadd.f32 0.05243302, %v1633_v43  ;;  %v1951_v49 = vmul.f32 %v1950_v40, %v3591_v45  ;;  %v1989_v19 = vmul.f32 2.1237322e-06, %v3619_v21 }
 0x122   : > { %v3634_v63 = vperm.slane %v3348_v62, 2  ;;  %v1003_v10 = vadd.f32 0.014752088, %v1002_v50  ;;  %v3637_v33 = vmul.f32 %v1198_v56, %v3437_v20  ;;  %v1515_v44 = vmul.f32 %v1514_v3, %v3531_v30 }
 0x123   : > { %v1674_v2 = vadd.f32 0.05243302, %v1673_v51  ;;  %v1041_v37 = vadd.f32 0.001143296, %v1040_v15  ;;  %v1792_v27 = vadd.f32 0.0036580483, %v1791_v13  ;;  %v1635_v16 = vmul.f32 %v1634_v28, %v3538_v55 }
 0x124   : > { %v1832_v38 = vadd.f32 0.0036580483, %v1831_v57  ;;  %v1004_v12 = vmul.f32 %v1003_v10, %v3406_v34  ;;  %v1160_v43 = vmul.f32 3.8918573e-05, %v3439_v24  ;;  %v1358_v40 = vadd.f32 1.1283791, %v1357_v31 }
 0x125   : > { %v1478_v42 = vadd.f32 1.1283791, %v1477_v17  ;;  %v1042_v50 = vmul.f32 %v1041_v37, %v3422_v60  ;;  %v1952_v52 = vadd.f32 0.0036580483, %v1951_v49  ;;  %v1990_v20 = vadd.f32 0.00028619796, %v1989_v19  ;;  %v657_v37 = vpop.f32.mrf.mxu1 }
 0x126   : > { %v617_v56 = vadd.f32 %v616_v14, %v3634_v63  ;;  %v1005_v3 = vadd.f32 0.112945676, %v1004_v12  ;;  %v3646_v51 = vmul.f32 %v1318_v0, %v3442_v26  ;;  %v1516_v13 = vadd.f32 0.18741608, %v1515_v44  ;;  %v2263_v14 = vld [vmem:[#allocation7 + $0x2e0] sm:$0xff] }
 0x127   : > { %v1043_v57 = vadd.f32 0.014752088, %v1042_v50  ;;  %v1161_v15 = vadd.f32 0.001143296, %v1160_v43  ;;  %v1675_v10 = vmul.f32 %v1674_v2, %v3549_v18  ;;  %v1793_v31 = vmul.f32 %v1792_v27, %v3584_v35  ;;  %2388 = vmatpush.msra.mxu2 %v2263_v14 }
 0x128   : > { %4955 = vst [vmem:[#allocation26_spill] sm:$0xff] %v3646_v51  ;;  %v1833_v17 = vmul.f32 %v1832_v38, %v3586_v11  ;;  %v1006_v28 = vmul.f32 %v1005_v3, %v3406_v34  ;;  %v3653_v49 = vmul.f32 %v1358_v40, %v3474_v9  ;;  %v1636_v19 = vadd.f32 0.18741608, %v1635_v16 }
 0x129   : > { %v1044_v26 = vmul.f32 %v1043_v57, %v3422_v60  ;;  %v1162_v0 = vmul.f32 %v1161_v15, %v3439_v24  ;;  %v1953_v44 = vmul.f32 %v1952_v52, %v3591_v45  ;;  %v1991_v2 = vmul.f32 %v1990_v20, %v3619_v21 }
 0x12a   : > { %4956 = vst [vmem:[#allocation27_spill] sm:$0xff] %v3653_v49  ;;  %v1007_v12 = vadd.f32 0.4994258, %v1006_v28  ;;  %v3659_v27 = vadd.f32 %v657_v37, %v617_v56  ;;  %v3662_v38 = vmul.f32 %v1478_v42, %v3486_v32  ;;  %v1517_v9 = vmul.f32 %v1516_v13, %v3531_v30 }
 0x12b   : > { %v1045_v16 = vadd.f32 0.112945676, %v1044_v26  ;;  %v1163_v43 = vadd.f32 0.014752088, %v1162_v0  ;;  %v1676_v40 = vadd.f32 0.18741608, %v1675_v10  ;;  %v1637_v32 = vmul.f32 %v1636_v19, %v3538_v55  ;;  %v698_v0 = vpop.f32.mrf.mxu2  ;;  %v619_v55 = vpop.f32.mrf.mxu0 }
 0x12c   : > { %4957 = vst [vmem:[#allocation28_spill] sm:$0xff] %v3662_v38  ;;  %v1794_v50 = vadd.f32 0.05243302, %v1793_v31  ;;  %v1834_v3 = vadd.f32 0.05243302, %v1833_v17  ;;  %v1008_v57 = vmul.f32 %v1007_v12, %v3406_v34  ;;  %v3676_v31 = vperm.slane %v3348_v62, 3 }
 0x12d   : > { %v3667_v52 = vmul.f32 0.70710677, %v3659_v27  ;;  %v1046_v20 = vmul.f32 %v1045_v16, %v3422_v60  ;;  %v1164_v56 = vmul.f32 %v1163_v43, %v3439_v24  ;;  %v1200_v15 = vmul.f32 3.8918573e-05, %v3467_v5 }
 0x12e   : > { %v1954_v42 = vadd.f32 0.05243302, %v1953_v44  ;;  %v1992_v13 = vadd.f32 0.0036580483, %v1991_v2  ;;  %v1009_v28 = vadd.f32 1.0, %v1008_v57  ;;  %v1677_v14 = vmul.f32 %v1676_v40, %v3549_v18  ;;  %v739_v57 = vpop.f32.mrf.mxu3 }
 0x12f   : > { %v907_v10 = vmul.f32 %v3667_v52, %v3667_v52  ;;  %v1047_v34 = vadd.f32 0.4994258, %v1046_v20  ;;  %v1165_v17 = vadd.f32 0.112945676, %v1164_v56  ;;  %v1795_v37 = vmul.f32 %v1794_v50, %v3584_v35 }
 0x130   : > { %v1835_v26 = vmul.f32 %v1834_v3, %v3586_v11  ;;  %2891 = vrcp.f32 %v1009_v28  ;;  %v699_v44 = vadd.f32 %v698_v0, %v3676_v31  ;;  %v1201_v12 = vadd.f32 0.001143296, %v1200_v15 }
 0x131   : > { %v3681_v19 = vmin.f32 %v907_v10, 16.0  ;;  %v1048_v2 = vmul.f32 %v1047_v34, %v3422_v60  ;;  %v1518_v16 = vadd.f32 1.1283791, %v1517_v9  ;;  %v3685_v62 = vadd.f32 1.1283791, %v1637_v32 }
 0x132   : > { %v1955_v43 = vmul.f32 %v1954_v42, %v3591_v45  ;;  %v1166_v40 = vmul.f32 %v1165_v17, %v3439_v24  ;;  %v1993_v50 = vmul.f32 %v1992_v13, %v3619_v21  ;;  %v3694_v10 = vadd.f32 1.1283791, %v1677_v14 }
 0x133   : > { %v909_v3 = vmul.f32 2.1237322e-06, %v3681_v19  ;;  %v920_v20 = vmul.f32 3.8918573e-05, %v3681_v19  ;;  %v3692_v56 = vadd.f32 1.0, %v1048_v2  ;;  %v3696_v15 = vadd.f32 %v739_v57, %v699_v44 }
 0x134   : > { %v1796_v60 = vadd.f32 0.18741608, %v1795_v37  ;;  %v1167_v9 = vadd.f32 0.4994258, %v1166_v40  ;;  %v3698_v32 = vadd.f32 0.18741608, %v1835_v26  ;;  %v1202_v34 = vmul.f32 %v1201_v12, %v3467_v5 }
 0x135   : > { %v921_v42 = vadd.f32 0.001143296, %v920_v20  ;;  %2893 = vrcp.f32 %v3692_v56  ;;  %v3703_v17 = vmul.f32 %v1518_v16, %v3505_v53  ;;  %v3705_v0 = vadd.f32 0.18741608, %v1955_v43 }
 0x136   : > { %v2892_v13 = vpop.eup %2891  ;;  %v910_v2 = vadd.f32 0.00028619796, %v909_v3  ;;  %v3708_v14 = vmul.f32 0.70710677, %v3696_v15  ;;  %v3710_v37 = vadd.f32 0.05243302, %v1993_v50  ;;  %v1168_v20 = vmul.f32 %v1167_v9, %v3439_v24 }
 0x137   : > { %4958 = vst [vmem:[#allocation29_spill] sm:$0xff] %v3703_v17  ;;  %v1011_v44 = vmul.f32 %v2892_v13, %v1009_v28  ;;  %v1019_v26 = vand.u32 2147483647, %v1009_v28  ;;  %v922_v57 = vmul.f32 %v921_v42, %v3681_v19  ;;  %v1021_v40 = vand.u32 2147483648, %v1009_v28 }
 0x138   : > { %4959 = vst [vmem:[#allocation30_spill] sm:$0xff] %v3708_v14  ;;  %v947_v12 = vmul.f32 %v3708_v14, %v3708_v14  ;;  %v1320_v53 = vmul.f32 3.8918573e-05, %v3471_v25  ;;  %v3718_v3 = vmul.f32 0.5, %v3391_v4  ;;  %v1203_v17 = vadd.f32 0.014752088, %v1202_v34 }
 0x139   : > { %v1012_v16 = vsub.f32 1.0, %v1011_v44  ;;  %v923_v43 = vadd.f32 0.014752088, %v922_v57  ;;  %vm1016_vm8 = vweird.f32 %v2892_v13  ;;  %v911_v50 = vmul.f32 %v910_v2, %v3681_v19  ;;  %v2293_v14 = vld [vmem:[#allocation7 + $0x3d0] sm:$0xff] }
 0x13a   : > { %v3721_v38 = vmin.f32 %v947_v12, 16.0  ;;  %v3723_v42 = vadd.f32 1.0, %v1168_v20  ;;  %vm1015_vm9 = vweird.f32 %v1009_v28  ;;  %vm3725_vm10 = vcmp.eq.f32.partialorder %v1019_v26, 8.507059e+37 }
 0x13b   : > { %v2894_v49 = vpop.eup %2893  ;;  %v1013_v18 = vmul.f32 %v2892_v13, %v1012_v16  ;;  %v924_v9 = vmul.f32 %v923_v43, %v3681_v19  ;;  %v1022_v44 = vor.u32 1.1754944e-38, %v1021_v40  ;;  %v1321_v57 = vadd.f32 0.001143296, %v1320_v53  ;;  %vm3732_vm11 = vmor %vm1015_vm9, %vm1016_vm8  ;;  %v2295_v40 = vld [vmem:[#allocation7 + $0x3e0] sm:$0xff]  ;;  %v2261_v43 = vld [vmem:[#allocation7 + $0x2d0] sm:$0xff] }
 0x13c   : > { %v1051_v4 = vmul.f32 %v2894_v49, %v3692_v56  ;;  %v960_v34 = vmul.f32 3.8918573e-05, %v3721_v38  ;;  %v1061_v28 = vand.u32 2147483648, %v3692_v56  ;;  %2895 = vrcp.f32 %v3723_v42  ;;  %2429 = vmatpush.msra.mxu3 %v2295_v40  ;;  %2389 = vmatpush.msra.mxu2 %v2261_v43 }
 0x13d   : > { %v1014_v2 = vadd.f32 %v2892_v13, %v1013_v18  ;;  %v925_v20 = vadd.f32 0.112945676, %v924_v9  ;;  %v3739_v26 = vmul.f32 %v1796_v60, %v3584_v35  ;;  %v912_v16 = vadd.f32 0.0036580483, %v911_v50 }
 0x13e   : > { %v1052_v7 = vsub.f32 1.0, %v1051_v4  ;;  %v1204_v18 = vmul.f32 %v1203_v17, %v3467_v5  ;;  %v949_v51 = vmul.f32 2.1237322e-06, %v3721_v38  ;;  %v961_v30 = vadd.f32 0.001143296, %v960_v34  ;;  %2430 = vmatpush.msra.mxu3 %v2293_v14 }
 0x13f   : > { %v1018_v53 = vsel %vm3732_vm11, %v2892_v13, %v1014_v2  ;;  %v926_v9 = vmul.f32 %v925_v20, %v3681_v19  ;;  %vm1056_vm12 = vweird.f32 %v2894_v49  ;;  %v1059_v4 = vand.u32 2147483647, %v3692_v56 }
 0x140   : > { %v1023_v60 = vsel %vm3725_vm10, %v1022_v44, %v1018_v53  ;;  %v1053_v50 = vmul.f32 %v2894_v49, %v1052_v7  ;;  %v620_v13 = vadd.f32 %v619_v55, %v3634_v63  ;;  %v962_v2 = vmul.f32 %v961_v30, %v3721_v38 }
 0x141   : > { %v1024_v35 = vmul.f32 %v1023_v60, %v3611_v58  ;;  %v927_v17 = vadd.f32 0.4994258, %v926_v9  ;;  %v913_v12 = vmul.f32 %v912_v16, %v3681_v19  ;;  %vm1055_vm13 = vweird.f32 %v3692_v56 }
 0x142   : > { %v1054_v20 = vadd.f32 %v2894_v49, %v1053_v50  ;;  %v1062_v34 = vor.u32 1.1754944e-38, %v1061_v28  ;;  %v3754_v24 = vpop.eup %2895  ;;  %vm1057_vm14 = vmor %vm1055_vm13, %vm1056_vm12  ;;  %v950_v40 = vadd.f32 0.00028619796, %v949_v51  ;;  %v963_v58 = vadd.f32 0.014752088, %v962_v2  ;;  %v660_v51 = vpop.f32.mrf.mxu1 }
 0x143   : > { %v2776_v7 = vclamps-f32 %v1024_v35, 1.0  ;;  %v928_v44 = vmul.f32 %v927_v17, %v3681_v19  ;;  %vm1060_vm15 = vcmp.eq.f32.partialorder %v1059_v4, 8.507059e+37  ;;  %v1171_v55 = vmul.f32 %v3754_v24, %v3723_v42 }
 0x144   : > { %v1058_v43 = vsel %vm1057_vm14, %v2894_v49, %v1054_v20  ;;  %v1205_v30 = vadd.f32 0.112945676, %v1204_v18  ;;  %v1322_v56 = vmul.f32 %v1321_v57, %v3471_v25  ;;  %v914_v28 = vadd.f32 0.05243302, %v913_v12 }
 0x145   : > { %v2111_v14 = vadd.f32 1.0, %v2776_v7  ;;  %v3759_v16 = vadd.f32 1.0, %v928_v44  ;;  %v1063_v53 = vsel %vm1060_vm15, %v1062_v34, %v1058_v43  ;;  %v964_v9 = vmul.f32 %v963_v58, %v3721_v38  ;;  %v2259_v34 = vld [vmem:[#allocation7 + $0x2c0] sm:$0xff]  ;;  %v701_v7 = vpop.f32.mrf.mxu2 }
 0x146   : > { %v1064_v35 = vmul.f32 %v1063_v53, %v3617_v47  ;;  %v1172_v60 = vsub.f32 1.0, %v1171_v55  ;;  %v1995_v49 = vmul.f32 %v3710_v37, %v3619_v21  ;;  %v951_v18 = vmul.f32 %v950_v40, %v3721_v38  ;;  %2390 = vmatpush.msra.mxu2 %v2259_v34 }
 0x147   : > { %v3767_v50 = vmul.f32 %v2111_v14, %v3606_v23  ;;  %2897 = vrcp.f32 %v3759_v16  ;;  %v1179_v57 = vand.u32 2147483647, %v3723_v42  ;;  %v1181_v17 = vand.u32 2147483648, %v3723_v42 }
 0x148   : > { %v2777_v4 = vclamps-f32 %v1064_v35, 1.0  ;;  %v1206_v47 = vmul.f32 %v1205_v30, %v3467_v5  ;;  %v965_v2 = vadd.f32 0.112945676, %v964_v9  ;;  %v1173_v12 = vmul.f32 %v3754_v24, %v1172_v60  ;;  %v2291_v30 = vld [vmem:[#allocation7 + $0x3c0] sm:$0xff] }
 0x149   : > { %4964 = vst [vmem:[#allocation31_spill] sm:$0xff] %v3767_v50  ;;  %2324 = vmatmul.f32.gmra.mxu0 %v3767_v50  ;;  %vm1176_vm0 = vweird.f32 %v3754_v24  ;;  %v3777_v23 = vadd.f32 %v660_v51, %v620_v13  ;;  %v915_v37 = vmul.f32 %v914_v28, %v3681_v19  ;;  %vm1175_vm1 = vweird.f32 %v3723_v42  ;;  %v2257_v13 = vld [vmem:[#allocation7 + $0x2b0] sm:$0xff]  ;;  %2431 = vmatpush.msra.mxu3 %v2291_v30 }
 0x14a   : > { %v2112_v20 = vadd.f32 1.0, %v2777_v4  ;;  %v1323_v44 = vadd.f32 0.014752088, %v1322_v56  ;;  %v952_v40 = vadd.f32 0.0036580483, %v951_v18  ;;  %v966_v58 = vmul.f32 %v965_v2, %v3721_v38  ;;  %vm3791_vm2 = vmor %vm1175_vm1, %vm1176_vm0  ;;  %2391 = vmatpush.msra.mxu2 %v2257_v13  ;;  %v2289_v51 = vld [vmem:[#allocation7 + $0x3b0] sm:$0xff] }
 0x14b   : > { %v1174_v43 = vadd.f32 %v3754_v24, %v1173_v12  ;;  %v3784_v55 = vmul.f32 0.70710677, %v3777_v23  ;;  %vm1180_vm3 = vcmp.eq.f32.partialorder %v1179_v57, 8.507059e+37  ;;  %v1182_v53 = vor.u32 1.1754944e-38, %v1181_v17  ;;  %2432 = vmatpush.msra.mxu3 %v2289_v51 }
 0x14c   : > { %v3787_v14 = vmul.f32 %v2112_v20, %v3718_v3  ;;  %v1207_v56 = vadd.f32 0.4994258, %v1206_v47  ;;  %v967_v35 = vadd.f32 0.4994258, %v966_v58  ;;  %v702_v60 = vadd.f32 %v701_v7, %v3676_v31 }
 0x14d   : > { %v3795_v28 = vpop.eup %2897  ;;  %v1178_v9 = vsel %vm3791_vm2, %v3754_v24, %v1174_v43  ;;  %v1067_v3 = vmul.f32 %v3784_v55, %v3784_v55  ;;  %v1996_v18 = vadd.f32 0.18741608, %v1995_v49  ;;  %v1324_v17 = vmul.f32 %v1323_v44, %v3471_v25  ;;  %v742_v44 = vpop.f32.mrf.mxu3 }
 0x14e   : > { %4965 = vst [vmem:[#allocation32_spill] sm:$0xff] %v3787_v14  ;;  %v931_v4 = vmul.f32 %v3795_v28, %v3759_v16  ;;  %2365 = vmatmul.f32.gmra.mxu1 %v3787_v14  ;;  %v1183_v57 = vsel %vm1180_vm3, %v1182_v53, %v1178_v9  ;;  %v968_v47 = vmul.f32 %v967_v35, %v3721_v38  ;;  %v1798_v20 = vadd.f32 1.1283791, %v3739_v26 }
 0x14f   : > { %v1184_v24 = vmul.f32 %v1183_v57, %v3622_v54  ;;  %v3809_v2 = vmin.f32 %v1067_v3, 16.0  ;;  %v1208_v12 = vmul.f32 %v1207_v56, %v3467_v5  ;;  %v3814_v49 = vmul.f32 %v3685_v62, %v3520_v8 }
 0x150   : > { %v1837_v34 = vmul.f32 %v3698_v32, %v3586_v11  ;;  %v953_v7 = vmul.f32 %v952_v40, %v3721_v38  ;;  %v1957_v58 = vmul.f32 %v3705_v0, %v3591_v45  ;;  %v916_v54 = vadd.f32 0.18741608, %v915_v37 }
 0x151   : > { %v2780_v43 = vclamps-f32 %v1184_v24, 1.0  ;;  %v3822_v30 = vadd.f32 1.0, %v1208_v12  ;;  %v3826_v5 = vmul.f32 %v3694_v10, %v3534_v46  ;;  %v1997_v8 = vmul.f32 %v1996_v18, %v3619_v21 }
 0x152   : > { %v932_v62 = vsub.f32 1.0, %v931_v4  ;;  %v1069_v26 = vmul.f32 2.1237322e-06, %v3809_v2  ;;  %v3830_v32 = vadd.f32 1.0, %v968_v47  ;;  %v771_v40 = vmul.f32 0.5, %v3402_v29  ;;  %v2255_v4 = vld [vmem:[#allocation7 + $0x2a0] sm:$0xff] }
 0x153   : > { %v3833_v13 = vadd.f32 %v742_v44, %v702_v60  ;;  %v1325_v0 = vadd.f32 0.112945676, %v1324_v17  ;;  %v3836_v37 = vmul.f32 %v1798_v20, %v3554_v59  ;;  %v954_v42 = vadd.f32 0.05243302, %v953_v7  ;;  %2392 = vmatpush.msra.mxu2 %v2255_v4  ;;  %v2253_v20 = vld [vmem:[#allocation7 + $0x290] sm:$0xff] }
 0x154   : > { %v2115_v53 = vadd.f32 1.0, %v2780_v43  ;;  %2899 = vrcp.f32 %v3822_v30  ;;  %v1838_v46 = vadd.f32 1.1283791, %v1837_v34  ;;  %v1958_v10 = vadd.f32 1.1283791, %v1957_v58 }
 0x155   : > { %v917_v56 = vmul.f32 %v916_v54, %v3681_v19  ;;  %v3841_v35 = vmul.f32 0.5, %v3424_v1  ;;  %v1998_v9 = vadd.f32 1.1283791, %v1997_v8  ;;  %v933_v29 = vmul.f32 %v3795_v28, %v932_v62  ;;  %2393 = vmatpush.msra.mxu2 %v2253_v20 }
 0x156   : > { %v3844_v3 = vmul.f32 %v2115_v53, %v771_v40  ;;  %v1070_v60 = vadd.f32 0.00028619796, %v1069_v26  ;;  %2901 = vrcp.f32 %v3830_v32  ;;  %v3848_v59 = vmul.f32 0.70710677, %v3833_v13 }
 0x157   : > { %v3851_v51 = vmul.f32 0.5, %v3428_v6  ;;  %v1326_v18 = vmul.f32 %v1325_v0, %v3471_v25  ;;  %v3855_v19 = vmul.f32 0.5, %v3659_v27  ;;  %v955_v1 = vmul.f32 %v954_v42, %v3721_v38  ;;  %v2287_v27 = vld [vmem:[#allocation7 + $0x3a0] sm:$0xff] }
 0x158   : > { %4968 = vst [vmem:[#allocation33_spill] sm:$0xff] %v3844_v3  ;;  %2327 = vmatmul.f32.gmra.mxu0 %v3844_v3  ;;  %v3860_v57 = vmul.f32 0.5, %v3464_v61  ;;  %v1360_v17 = vmul.f32 3.8918573e-05, %v3490_v39  ;;  %v3864_v47 = vmul.f32 %v1838_v46, %v3564_v36  ;;  %v3867_v6 = vmul.f32 %v1958_v10, %v3575_v48  ;;  %2433 = vmatpush.msra.mxu3 %v2287_v27 }
 0x159   : > { %v918_v24 = vadd.f32 1.1283791, %v917_v56  ;;  %v1327_v12 = vadd.f32 0.4994258, %v1326_v18  ;;  %v3870_v7 = vmul.f32 %v1998_v9, %v3594_v41  ;;  %v934_v61 = vadd.f32 %v3795_v28, %v933_v29 }
 0x15a   : > { %v2900_v34 = vpop.eup %2899  ;;  %vm936_vm4 = vweird.f32 %v3795_v28  ;;  %v1071_v44 = vmul.f32 %v1070_v60, %v3809_v2  ;;  %v3876_v36 = vmul.f32 0.5, %v3696_v15  ;;  %v1107_v58 = vmul.f32 %v3848_v59, %v3848_v59 }
 0x15b   : > { %v1211_v48 = vmul.f32 %v2900_v34, %v3822_v30  ;;  %v1328_v54 = vmul.f32 %v1327_v12, %v3471_v25  ;;  %vm935_vm5 = vweird.f32 %v3759_v16  ;;  %v939_v41 = vand.u32 2147483647, %v3759_v16 }
 0x15c   : > { %v941_v43 = vand.u32 2147483648, %v3759_v16  ;;  %v956_v8 = vadd.f32 0.18741608, %v955_v1  ;;  %v3885_v62 = vpop.eup %2901  ;;  %v919_v15 = vmul.f32 %v918_v24, %v3667_v52  ;;  %vm3888_vm6 = vmor %vm935_vm5, %vm936_vm4  ;;  %v1361_v25 = vadd.f32 0.001143296, %v1360_v17  ;;  %v622_v52 = vpop.f32.mrf.mxu0 }
 0x15d   : > { %v1212_v40 = vsub.f32 1.0, %v1211_v48  ;;  %v3892_v0 = vadd.f32 1.0, %v1328_v54  ;;  %v938_v42 = vsel %vm3888_vm6, %v3795_v28, %v934_v61  ;;  %v1072_v53 = vadd.f32 0.0036580483, %v1071_v44  ;;  %v663_v61 = vpop.f32.mrf.mxu1 }
 0x15e   : > { %v1219_v16 = vand.u32 2147483647, %v3822_v30  ;;  %v1221_v46 = vand.u32 2147483648, %v3822_v30  ;;  %vm1216_vm7 = vweird.f32 %v2900_v34  ;;  %v3899_v56 = vmin.f32 %v1107_v58, 16.0 }
 0x15f   : > { %v1213_v10 = vmul.f32 %v2900_v34, %v1212_v40  ;;  %2903 = vrcp.f32 %v3892_v0  ;;  %vm940_vm8 = vcmp.eq.f32.partialorder %v939_v41, 8.507059e+37  ;;  %v942_v9 = vor.u32 1.1754944e-38, %v941_v43 }
 0x160   : > { %v957_v29 = vmul.f32 %v956_v8, %v3721_v38  ;;  %v971_v60 = vmul.f32 %v3885_v62, %v3830_v32  ;;  %v981_v28 = vand.u32 2147483648, %v3830_v32  ;;  %vm1215_vm9 = vweird.f32 %v3822_v30  ;;  %v704_v8 = vpop.f32.mrf.mxu2 }
 0x161   : > { %v1214_v18 = vadd.f32 %v2900_v34, %v1213_v10  ;;  %v1362_v1 = vmul.f32 %v1361_v25, %v3490_v39  ;;  %v943_v4 = vsel %vm940_vm8, %v942_v9, %v938_v42  ;;  %v3909_v17 = vmul.f32 0.5, %v3777_v23  ;;  %vm1217_vm10 = vmor %vm1215_vm9, %vm1216_vm7 }
 0x162   : > { %v1222_v24 = vor.u32 1.1754944e-38, %v1221_v46  ;;  %v623_v12 = vadd.f32 %v622_v52, %v3634_v63  ;;  %v1073_v38 = vmul.f32 %v1072_v53, %v3809_v2  ;;  %vm1220_vm11 = vcmp.eq.f32.partialorder %v1219_v16, 8.507059e+37 }
 0x163   : > { %4971 = vst [vmem:[#allocation34_spill] sm:$0xff] %v3909_v17  ;;  %v1218_v27 = vsel %vm1217_vm10, %v2900_v34, %v1214_v18  ;;  %v1109_v20 = vmul.f32 2.1237322e-06, %v3899_v56  ;;  %v3914_v44 = vadd.f32 1.1283791, %v957_v29  ;;  %v972_v30 = vsub.f32 1.0, %v971_v60 }
 0x164   : > { %v1223_v48 = vsel %vm1220_vm11, %v1222_v24, %v1218_v27  ;;  %v1363_v58 = vadd.f32 0.014752088, %v1362_v1  ;;  %v979_v23 = vand.u32 2147483647, %v3830_v32  ;;  %v3917_v41 = vor.u32 1.1754944e-38, %v981_v28  ;;  %v2245_v17 = vld [vmem:[#allocation7 + $0x250] sm:$0xff] }
 0x165   : > { %v2904_v54 = vpop.eup %2903  ;;  %v1224_v43 = vmul.f32 %v1223_v48, %v3637_v33  ;;  %v1480_v26 = vmul.f32 3.8918573e-05, %v3498_v22  ;;  %v3921_v34 = vmul.f32 %v943_v4, %v919_v15  ;;  %vm976_vm12 = vweird.f32 %v3885_v62  ;;  %v4972_v4 = vld [vmem:[#allocation18_spill] sm:$0xff]  ;;  %v745_v48 = vpop.f32.mrf.mxu3 }
 0x166   : > { %v1331_v40 = vmul.f32 %v2904_v54, %v3892_v0  ;;  %v3925_v25 = vadd.f32 %v663_v61, %v623_v12  ;;  %vm975_vm13 = vweird.f32 %v3830_v32  ;;  %v1074_v42 = vadd.f32 0.05243302, %v1073_v38 }
 0x167   : > { %v2781_v53 = vclamps-f32 %v1224_v43, 1.0  ;;  %v1110_v16 = vadd.f32 0.00028619796, %v1109_v20  ;;  %v1364_v46 = vmul.f32 %v1363_v58, %v3490_v39  ;;  %v973_v33 = vmul.f32 %v3885_v62, %v972_v30  ;;  %v2285_v30 = vld [vmem:[#allocation7 + $0x390] sm:$0xff]  ;;  %vm3959_vm2 = vmor %vm975_vm13, %vm976_vm12 }
 0x168   : > { %v1332_v10 = vsub.f32 1.0, %v1331_v40  ;;  %v705_v52 = vadd.f32 %v704_v8, %v3676_v31  ;;  %v1481_v15 = vadd.f32 0.001143296, %v1480_v26  ;;  %v1339_v29 = vand.u32 2147483647, %v3892_v0  ;;  %2434 = vmatpush.msra.mxu3 %v2285_v30 }
 0x169   : > { %v2116_v9 = vadd.f32 1.0, %v2781_v53  ;;  %v1341_v60 = vand.u32 2147483648, %v3892_v0  ;;  %v1365_v28 = vadd.f32 0.112945676, %v1364_v46  ;;  %vm1336_vm14 = vweird.f32 %v2904_v54  ;;  %v625_v53 = vpop.f32.mrf.mxu0 }
 0x16a   : > { %v1333_v18 = vmul.f32 %v2904_v54, %v1332_v10  ;;  %v1482_v1 = vmul.f32 %v1481_v15, %v3498_v22  ;;  %v1520_v24 = vmul.f32 3.8918573e-05, %v4972_v4  ;;  %v1075_v12 = vmul.f32 %v1074_v42, %v3809_v2 }
 0x16b   : > { %v3937_v38 = vmul.f32 %v2116_v9, %v3841_v35  ;;  %v3940_v27 = vmul.f32 0.70710677, %v3925_v25  ;;  %v1366_v20 = vmul.f32 %v1365_v28, %v3490_v39  ;;  %vm1335_vm15 = vweird.f32 %v3892_v0  ;;  %v4976_v9 = vld [vmem:[#allocation26_spill] sm:$0xff] }
 0x16c   : > { %v1334_v61 = vadd.f32 %v2904_v54, %v1333_v18  ;;  %v1483_v58 = vadd.f32 0.014752088, %v1482_v1  ;;  %v1521_v43 = vadd.f32 0.001143296, %v1520_v24  ;;  %v974_v8 = vadd.f32 %v3885_v62, %v973_v33  ;;  %vm1337_vm0 = vmor %vm1335_vm15, %vm1336_vm14 }
 0x16d   : > { %4973 = vst [vmem:[#allocation18_spill] sm:$0xff] %v3937_v38  ;;  %2368 = vmatmul.f32.gmra.mxu1 %v3937_v38  ;;  %v1111_v26 = vmul.f32 %v1110_v16, %v3899_v56  ;;  %v1342_v35 = vor.u32 1.1754944e-38, %v1341_v60  ;;  %v1367_v40 = vadd.f32 0.4994258, %v1366_v20  ;;  %vm1340_vm1 = vcmp.eq.f32.partialorder %v1339_v29, 8.507059e+37 }
 0x16e   : > { %v1338_v42 = vsel %vm1337_vm0, %v2904_v54, %v1334_v61  ;;  %v3948_v46 = vadd.f32 %v745_v48, %v705_v52  ;;  %v1484_v0 = vmul.f32 %v1483_v58, %v3498_v22  ;;  %v1227_v33 = vmul.f32 %v3940_v27, %v3940_v27  ;;  %v2202_v58 = vld [vmem:[#allocation7 + $0xf8] sm:$0xff] }
 0x16f   : > { %v1343_v10 = vsel %vm1340_vm1, %v1342_v35, %v1338_v42  ;;  %v1368_v15 = vmul.f32 %v1367_v40, %v3490_v39  ;;  %v1522_v16 = vmul.f32 %v1521_v43, %v4972_v4  ;;  %v1076_v52 = vadd.f32 0.18741608, %v1075_v12  ;;  %v666_v43 = vpop.f32.mrf.mxu1  ;;  %2469 = vmatpush.msrb.mxu0 %v2202_v58  ;;  %v2283_v40 = vld [vmem:[#allocation7 + $0x380] sm:$0xff]  ;;  %v4977_v42 = vld [vmem:[#allocation19_spill] sm:$0xff] }
 0x170   : > { %v1344_v29 = vmul.f32 %v1343_v10, %v4976_v9  ;;  %v3965_v60 = vmul.f32 0.70710677, %v3948_v46  ;;  %v1485_v28 = vadd.f32 0.112945676, %v1484_v0  ;;  %v978_v39 = vsel %vm3959_vm2, %v3885_v62, %v974_v8  ;;  %v2251_v62 = vld [vmem:[#allocation7 + $0x280] sm:$0xff]  ;;  %v4978_v0 = vld [vmem:[#allocation30_spill] sm:$0xff]  ;;  %2435 = vmatpush.msra.mxu3 %v2283_v40 }
 0x171   : > { %v1112_v18 = vadd.f32 0.0036580483, %v1111_v26  ;;  %v3970_v1 = vadd.f32 1.0, %v1368_v15  ;;  %v626_v24 = vadd.f32 %v625_v53, %v3634_v63  ;;  %v2774_v20 = vclamps-f32 %v3921_v34, 1.0  ;;  %2394 = vmatpush.msra.mxu2 %v2251_v62  ;;  %v2200_v15 = vld [vmem:[#allocation7 + $0xe8] sm:$0xff] }
 0x172   : > { %v2784_v61 = vclamps-f32 %v1344_v29, 1.0  ;;  %v1267_v12 = vmul.f32 %v3965_v60, %v3965_v60  ;;  %v1486_v30 = vmul.f32 %v1485_v28, %v3498_v22  ;;  %vm980_vm3 = vcmp.eq.f32.partialorder %v979_v23, 8.507059e+37  ;;  %2470 = vmatpush.msrb.mxu0 %v2200_v15 }
 0x173   : > { %v3979_v48 = vmin.f32 %v1227_v33, 16.0  ;;  %2905 = vrcp.f32 %v3970_v1  ;;  %v1523_v8 = vadd.f32 0.014752088, %v1522_v16  ;;  %v983_v26 = vsel %vm980_vm3, %v3917_v41, %v978_v39  ;;  %v2249_v16 = vld [vmem:[#allocation7 + $0x270] sm:$0xff] }
 0x174   : > { %v2119_v34 = vadd.f32 1.0, %v2784_v61  ;;  %v1487_v35 = vadd.f32 0.4994258, %v1486_v30  ;;  %v1640_v53 = vmul.f32 3.8918573e-05, %v4977_v42  ;;  %v959_v32 = vmul.f32 %v3914_v44, %v4978_v0  ;;  %2395 = vmatpush.msra.mxu2 %v2249_v16  ;;  %v2198_v44 = vld [vmem:[#allocation7 + $0xd8] sm:$0xff]  ;;  %v707_v61 = vpop.f32.mrf.mxu2 }
 0x175   : > { %v1077_v23 = vmul.f32 %v1076_v52, %v3809_v2  ;;  %v1113_v10 = vmul.f32 %v1112_v18, %v3899_v56  ;;  %v3988_v33 = vadd.f32 %v666_v43, %v626_v24  ;;  %v2109_v41 = vadd.f32 1.0, %v2774_v20  ;;  %2471 = vmatpush.msrb.mxu0 %v2198_v44  ;;  %v2196_v44 = vld [vmem:[#allocation7 + $0xc8] sm:$0xff] }
 0x176   : > { %v3991_v54 = vmul.f32 %v2119_v34, %v3851_v51  ;;  %v3993_v9 = vmin.f32 %v1267_v12, 16.0  ;;  %v1488_v29 = vmul.f32 %v1487_v35, %v3498_v22  ;;  %v984_v28 = vmul.f32 %v983_v26, %v959_v32  ;;  %v4981_v51 = vld [vmem:[#allocation12_spill] sm:$0xff] }
 0x177   : > { %v1229_v52 = vmul.f32 2.1237322e-06, %v3979_v48  ;;  %v3998_v39 = vmul.f32 0.70710677, %v3988_v33  ;;  %v1524_v18 = vmul.f32 %v1523_v8, %v4972_v4  ;;  %v4002_v24 = vmul.f32 0.5, %v3833_v13  ;;  %2472 = vmatpush.msrb.mxu0 %v2196_v44 }
 0x178   : > { %4979 = vst [vmem:[#allocation26_spill] sm:$0xff] %v3991_v54  ;;  %2330 = vmatmul.f32.gmra.mxu0 %v3991_v54  ;;  %v4006_v20 = vmul.f32 0.5, %v4981_v51  ;;  %v4008_v22 = vadd.f32 1.0, %v1488_v29  ;;  %v1641_v12 = vadd.f32 0.001143296, %v1640_v53  ;;  %v4013_v13 = vmul.f32 0.5, %v3925_v25 }
 0x179   : > { %4980 = vst [vmem:[#allocation19_spill] sm:$0xff] %v4002_v24  ;;  %v2906_v30 = vpop.eup %2905  ;;  %v1078_v62 = vadd.f32 1.1283791, %v1077_v23  ;;  %v1114_v58 = vadd.f32 0.05243302, %v1113_v10  ;;  %v1387_v43 = vmul.f32 %v3998_v39, %v3998_v39  ;;  %v4019_v35 = vmul.f32 %v2109_v41, %v3855_v19  ;;  %v2281_v41 = vld [vmem:[#allocation7 + $0x370] sm:$0xff] }
 0x17a   : > { %v1525_v8 = vadd.f32 0.112945676, %v1524_v18  ;;  %4982 = vst [vmem:[#allocation30_spill] sm:$0xff] %v4013_v13  ;;  %v1371_v26 = vmul.f32 %v2906_v30, %v3970_v1  ;;  %v1269_v34 = vmul.f32 2.1237322e-06, %v3993_v9  ;;  %2907 = vrcp.f32 %v4008_v22  ;;  %2436 = vmatpush.msra.mxu3 %v2281_v41 }
 0x17b   : > { %4983 = vst [vmem:[#allocation12_spill] sm:$0xff] %v4019_v35  ;;  %v2775_v40 = vclamps-f32 %v984_v28, 1.0  ;;  %v1230_v53 = vadd.f32 0.00028619796, %v1229_v52  ;;  %v708_v0 = vadd.f32 %v707_v61, %v3676_v31  ;;  %v4022_v23 = vmin.f32 %v1387_v43, 16.0  ;;  %v748_v28 = vpop.f32.mrf.mxu3  ;;  %v2234_v61 = vld [vmem:[#allocation7 + $0x1f8] sm:$0xff] }
 0x17c   : > { %v1372_v32 = vsub.f32 1.0, %v1371_v26  ;;  %v1526_v10 = vmul.f32 %v1525_v8, %v4972_v4  ;;  %v1642_v25 = vmul.f32 %v1641_v12, %v4977_v42  ;;  %v4027_v15 = vmul.f32 %v1078_v62, %v3784_v55  ;;  %2510 = vmatpush.msrb.mxu1 %v2234_v61 }
 0x17d   : > { %v1115_v16 = vmul.f32 %v1114_v58, %v3899_v56  ;;  %v1379_v29 = vand.u32 2147483647, %v3970_v1  ;;  %v1381_v19 = vand.u32 2147483648, %v3970_v1  ;;  %vm1376_vm4 = vweird.f32 %v2906_v30 }
 0x17e   : > { %4984 = vst [vmem:[#allocation35_spill] sm:$0xff] %v4027_v15  ;;  %v1373_v52 = vmul.f32 %v2906_v30, %v1372_v32  ;;  %v1270_v18 = vadd.f32 0.00028619796, %v1269_v34  ;;  %v1527_v51 = vadd.f32 0.4994258, %v1526_v10  ;;  %v4032_v12 = vadd.f32 1.0, %v2775_v40 }
 0x17f   : > { %v1231_v55 = vmul.f32 %v1230_v53, %v3979_v48  ;;  %v4035_v62 = vadd.f32 %v748_v28, %v708_v0  ;;  %v1643_v58 = vadd.f32 0.014752088, %v1642_v25  ;;  %vm1375_vm5 = vweird.f32 %v3970_v1  ;;  %v4985_v10 = vld [vmem:[#allocation21_spill] sm:$0xff] }
 0x180   : > { %v2908_v43 = vpop.eup %2907  ;;  %v1374_v8 = vadd.f32 %v2906_v30, %v1373_v52  ;;  %v1389_v26 = vmul.f32 2.1237322e-06, %v4022_v23  ;;  %v1528_v34 = vmul.f32 %v1527_v51, %v4972_v4  ;;  %vm1377_vm6 = vmor %vm1375_vm5, %vm1376_vm4  ;;  %vm1380_vm7 = vcmp.eq.f32.partialorder %v1379_v29, 8.507059e+37 }
 0x181   : > { %v1382_v32 = vor.u32 1.1754944e-38, %v1381_v19  ;;  %v1491_v40 = vmul.f32 %v2908_v43, %v4008_v22  ;;  %v1680_v53 = vmul.f32 3.8918573e-05, %v4985_v10  ;;  %v1271_v0 = vmul.f32 %v1270_v18, %v3993_v9  ;;  %v4986_v19 = vld [vmem:[#allocation27_spill] sm:$0xff] }
 0x182   : > { %v1378_v41 = vsel %vm1377_vm6, %v2906_v30, %v1374_v8  ;;  %v4044_v25 = vadd.f32 1.0, %v1528_v34  ;;  %v4047_v44 = vmul.f32 0.70710677, %v4035_v62  ;;  %v1501_v4 = vand.u32 2147483648, %v4008_v22  ;;  %v628_v8 = vpop.f32.mrf.mxu0  ;;  %v4987_v34 = vld [vmem:[#allocation25_spill] sm:$0xff] }
 0x183   : > { %v1383_v1 = vsel %vm1380_vm7, %v1382_v32, %v1378_v41  ;;  %v1492_v28 = vsub.f32 1.0, %v1491_v40  ;;  %v1644_v52 = vmul.f32 %v1643_v58, %v4977_v42  ;;  %v1232_v29 = vadd.f32 0.0036580483, %v1231_v55 }
 0x184   : > { %v1384_v51 = vmul.f32 %v1383_v1, %v4986_v19  ;;  %v1390_v61 = vadd.f32 0.00028619796, %v1389_v26  ;;  %2909 = vrcp.f32 %v4044_v25  ;;  %vm1496_vm8 = vweird.f32 %v2908_v43 }
 0x185   : > { %v1493_v30 = vmul.f32 %v2908_v43, %v1492_v28  ;;  %v1499_v18 = vand.u32 2147483647, %v4008_v22  ;;  %v1800_v13 = vmul.f32 3.8918573e-05, %v4987_v34  ;;  %vm1495_vm9 = vweird.f32 %v4008_v22 }
 0x186   : > { %v2785_v38 = vclamps-f32 %v1384_v51, 1.0  ;;  %v1427_v32 = vmul.f32 %v4047_v44, %v4047_v44  ;;  %v1645_v58 = vadd.f32 0.112945676, %v1644_v52  ;;  %v1272_v55 = vadd.f32 0.0036580483, %v1271_v0  ;;  %vm1497_vm10 = vmor %vm1495_vm9, %vm1496_vm8  ;;  %v4988_v51 = vld [vmem:[#allocation13_spill] sm:$0xff] }
 0x187   : > { %v1494_v40 = vadd.f32 %v2908_v43, %v1493_v30  ;;  %v1502_v41 = vor.u32 1.1754944e-38, %v1501_v4  ;;  %v1681_v26 = vadd.f32 0.001143296, %v1680_v53  ;;  %v1391_v28 = vmul.f32 %v1390_v61, %v4022_v23  ;;  %v4990_v61 = vld [vmem:[#allocation28_spill] sm:$0xff] }
 0x188   : > { %v2120_v1 = vadd.f32 1.0, %v2785_v38  ;;  %v629_v19 = vadd.f32 %v628_v8, %v3634_v63  ;;  %v1646_v24 = vmul.f32 %v1645_v58, %v4977_v42  ;;  %vm1500_vm11 = vcmp.eq.f32.partialorder %v1499_v18, 8.507059e+37  ;;  %v2247_v18 = vld [vmem:[#allocation7 + $0x260] sm:$0xff]  ;;  %v2194_v8 = vld [vmem:[#allocation7 + $0xb8] sm:$0xff]  ;;  %v2232_v58 = vld [vmem:[#allocation7 + $0x1e8] sm:$0xff] }
 0x189   : > { %v1498_v54 = vsel %vm1497_vm10, %v2908_v43, %v1494_v40  ;;  %v4062_v22 = vmul.f32 0.5, %v4988_v51  ;;  %v1801_v14 = vadd.f32 0.001143296, %v1800_v13  ;;  %v1116_v0 = vadd.f32 0.18741608, %v1115_v16  ;;  %v669_v13 = vpop.f32.mrf.mxu1  ;;  %2396 = vmatpush.msra.mxu2 %v2247_v18  ;;  %2473 = vmatpush.msrb.mxu0 %v2194_v8 }
 0x18a   : > { %v4064_v3 = vpop.eup %2909  ;;  %v4067_v4 = vmul.f32 %v2120_v1, %v3860_v57  ;;  %v1503_v38 = vsel %vm1500_vm11, %v1502_v41, %v1498_v54  ;;  %v4069_v53 = vmin.f32 %v1427_v32, 16.0  ;;  %v1233_v52 = vmul.f32 %v1232_v29, %v3979_v48  ;;  %v2279_v29 = vld [vmem:[#allocation7 + $0x360] sm:$0xff]  ;;  %v2192_v41 = vld [vmem:[#allocation7 + $0xa8] sm:$0xff]  ;;  %2511 = vmatpush.msrb.mxu1 %v2232_v58 }
 0x18b   : > { %v1504_v30 = vmul.f32 %v1503_v38, %v4990_v61  ;;  %v1531_v43 = vmul.f32 %v4064_v3, %v4044_v25  ;;  %v1682_v40 = vmul.f32 %v1681_v26, %v4985_v10  ;;  %v1273_v57 = vmul.f32 %v1272_v55, %v3993_v9  ;;  %v2230_v61 = vld [vmem:[#allocation7 + $0x1d8] sm:$0xff]  ;;  %2437 = vmatpush.msra.mxu3 %v2279_v29 }
 0x18c   : > { %4989 = vst [vmem:[#allocation21_spill] sm:$0xff] %v4067_v4  ;;  %2371 = vmatmul.f32.gmra.mxu1 %v4067_v4  ;;  %v1392_v54 = vadd.f32 0.0036580483, %v1391_v28  ;;  %v1647_v16 = vadd.f32 0.4994258, %v1646_v24  ;;  %v4078_v32 = vadd.f32 %v669_v13, %v629_v19  ;;  %v1802_v26 = vmul.f32 %v1801_v14, %v4987_v34  ;;  %2397 = vmatpush.msra.mxu2 %v2245_v17  ;;  %v2190_v19 = vld [vmem:[#allocation7 + $0x98] sm:$0xff] }
 0x18d   : > { %v2788_v1 = vclamps-f32 %v1504_v30, 1.0  ;;  %v1532_v51 = vsub.f32 1.0, %v1531_v43  ;;  %v1539_v38 = vand.u32 2147483647, %v4044_v25  ;;  %vm1536_vm12 = vweird.f32 %v4064_v3  ;;  %v2228_v30 = vld [vmem:[#allocation7 + $0x1c8] sm:$0xff]  ;;  %2474 = vmatpush.msrb.mxu0 %v2192_v41  ;;  %2512 = vmatpush.msrb.mxu1 %v2230_v61 }
 0x18e   : > { %v1541_v55 = vand.u32 2147483648, %v4044_v25  ;;  %v1429_v24 = vmul.f32 2.1237322e-06, %v4069_v53  ;;  %v1648_v28 = vmul.f32 %v1647_v16, %v4977_v42  ;;  %v4088_v8 = vmul.f32 0.70710677, %v4078_v32 }
 0x18f   : > { %v2123_v43 = vadd.f32 1.0, %v2788_v1  ;;  %v1533_v18 = vmul.f32 %v4064_v3, %v1532_v51  ;;  %v1683_v14 = vadd.f32 0.014752088, %v1682_v40  ;;  %v1117_v58 = vmul.f32 %v1116_v0, %v3899_v56  ;;  %2475 = vmatpush.msrb.mxu0 %v2190_v19  ;;  %2513 = vmatpush.msrb.mxu1 %v2228_v30 }
 0x190   : > { %v1234_v13 = vadd.f32 0.05243302, %v1233_v52  ;;  %v4091_v4 = vadd.f32 1.0, %v1648_v28  ;;  %v1803_v15 = vadd.f32 0.014752088, %v1802_v26  ;;  %vm1535_vm13 = vweird.f32 %v4044_v25  ;;  %v710_v25 = vpop.f32.mrf.mxu2 }
 0x191   : > { %v1274_v42 = vadd.f32 0.05243302, %v1273_v57  ;;  %v4094_v17 = vmul.f32 %v2123_v43, %v4006_v20  ;;  %v1534_v16 = vadd.f32 %v4064_v3, %v1533_v18  ;;  %v1393_v29 = vmul.f32 %v1392_v54, %v4022_v23  ;;  %vm1537_vm14 = vmor %vm1535_vm13, %vm1536_vm12 }
 0x192   : > { %v1542_v0 = vor.u32 1.1754944e-38, %v1541_v55  ;;  %v1430_v52 = vadd.f32 0.00028619796, %v1429_v24  ;;  %2911 = vrcp.f32 %v4091_v4  ;;  %vm1540_vm15 = vcmp.eq.f32.partialorder %v1539_v38, 8.507059e+37 }
 0x193   : > { %4991 = vst [vmem:[#allocation27_spill] sm:$0xff] %v4094_v17  ;;  %2333 = vmatmul.f32.gmra.mxu0 %v4094_v17  ;;  %v1538_v20 = vsel %vm1537_vm14, %v4064_v3, %v1534_v16  ;;  %v1547_v40 = vmul.f32 %v4088_v8, %v4088_v8  ;;  %v1684_v57 = vmul.f32 %v1683_v14, %v4985_v10  ;;  %v1118_v61 = vadd.f32 1.1283791, %v1117_v58  ;;  %v4993_v3 = vld [vmem:[#allocation29_spill] sm:$0xff]  ;;  %v2218_v17 = vld [vmem:[#allocation7 + $0x178] sm:$0xff] }
 0x194   : > { %v4109_v54 = vmul.f32 %v4032_v12, %v3876_v36  ;;  %v1235_v41 = vmul.f32 %v1234_v13, %v3979_v48  ;;  %v1543_v1 = vsel %vm1540_vm15, %v1542_v0, %v1538_v20  ;;  %v1804_v51 = vmul.f32 %v1803_v15, %v4987_v34  ;;  %v4994_v36 = vld [vmem:[#allocation15_spill] sm:$0xff] }
 0x195   : > { %v1275_v26 = vmul.f32 %v1274_v42, %v3993_v9  ;;  %v1544_v38 = vmul.f32 %v1543_v1, %v4993_v3  ;;  %v1685_v55 = vadd.f32 0.112945676, %v1684_v57  ;;  %v1394_v24 = vadd.f32 0.05243302, %v1393_v29  ;;  %v2226_v57 = vld [vmem:[#allocation7 + $0x1b8] sm:$0xff]  ;;  %v631_v1 = vpop.f32.mrf.mxu0 }
 0x196   : > { %4992 = vst [vmem:[#allocation25_spill] sm:$0xff] %v4109_v54  ;;  %v1431_v28 = vmul.f32 %v1430_v52, %v4069_v53  ;;  %v711_v19 = vadd.f32 %v710_v25, %v3676_v31  ;;  %v1805_v30 = vadd.f32 0.112945676, %v1804_v51  ;;  %v4118_v12 = vmul.f32 0.5, %v4994_v36  ;;  %v2188_v25 = vld [vmem:[#allocation7 + $0x88] sm:$0xff]  ;;  %2514 = vmatpush.msrb.mxu1 %v2226_v57 }
 0x197   : > { %v2789_v43 = vclamps-f32 %v1544_v38, 1.0  ;;  %v4120_v18 = vmin.f32 %v1547_v40, 16.0  ;;  %v1686_v15 = vmul.f32 %v1685_v55, %v4985_v10  ;;  %v1236_v58 = vadd.f32 0.18741608, %v1235_v41  ;;  %v2277_v40 = vld [vmem:[#allocation7 + $0x350] sm:$0xff]  ;;  %v751_v41 = vpop.f32.mrf.mxu3  ;;  %2476 = vmatpush.msrb.mxu0 %v2188_v25  ;;  %v2224_v36 = vld [vmem:[#allocation7 + $0x1a8] sm:$0xff] }
 0x198   : > { %v4123_v14 = vpop.eup %2911  ;;  %v4126_v13 = vmul.f32 0.5, %v3948_v46  ;;  %v1806_v42 = vmul.f32 %v1805_v30, %v4987_v34  ;;  %v1840_v16 = vmul.f32 3.8918573e-05, %v3586_v11  ;;  %v4131_v29 = vmul.f32 %v1118_v61, %v3848_v59  ;;  %2438 = vmatpush.msra.mxu3 %v2277_v40  ;;  %v2243_v59 = vld [vmem:[#allocation7 + $0x240] sm:$0xff]  ;;  %v2186_v61 = vld [vmem:[#allocation7 + $0x78] sm:$0xff]  ;;  %2515 = vmatpush.msrb.mxu1 %v2224_v36 }
 0x199   : > { %v1276_v0 = vadd.f32 0.18741608, %v1275_v26  ;;  %v2124_v52 = vadd.f32 1.0, %v2789_v43  ;;  %v1651_v20 = vmul.f32 %v4123_v14, %v4091_v4  ;;  %v1395_v46 = vmul.f32 %v1394_v24, %v4022_v23  ;;  %2398 = vmatpush.msra.mxu2 %v2243_v59  ;;  %2477 = vmatpush.msrb.mxu0 %v2186_v61 }
 0x19a   : > { %4995 = vst [vmem:[#allocation13_spill] sm:$0xff] %v4126_v13  ;;  %v1432_v51 = vadd.f32 0.0036580483, %v1431_v28  ;;  %v1687_v3 = vadd.f32 0.4994258, %v1686_v15  ;;  %v4136_v38 = vadd.f32 %v751_v41, %v711_v19  ;;  %v1661_v24 = vand.u32 2147483648, %v4091_v4 }
 0x19b   : > { %4996 = vst [vmem:[#allocation28_spill] sm:$0xff] %v4131_v29  ;;  %v4139_v26 = vmul.f32 %v2124_v52, %v4062_v22  ;;  %v1652_v55 = vsub.f32 1.0, %v1651_v20  ;;  %v1549_v30 = vmul.f32 2.1237322e-06, %v4120_v18  ;;  %v1807_v43 = vadd.f32 0.4994258, %v1806_v42  ;;  %v672_v20 = vpop.f32.mrf.mxu1 }
 0x19c   : > { %v1688_v28 = vmul.f32 %v1687_v3, %v4985_v10  ;;  %v632_v15 = vadd.f32 %v631_v1, %v3634_v63  ;;  %v1841_v19 = vadd.f32 0.001143296, %v1840_v16  ;;  %vm1656_vm0 = vweird.f32 %v4123_v14  ;;  %v2275_v16 = vld [vmem:[#allocation7 + $0x340] sm:$0xff]  ;;  %v2184_v1 = vld [vmem:[#allocation7 + $0x68] sm:$0xff]  ;;  %v2222_v41 = vld [vmem:[#allocation7 + $0x198] sm:$0xff] }
 0x19d   : > { %4997 = vst [vmem:[#allocation29_spill] sm:$0xff] %v4139_v26  ;;  %2374 = vmatmul.f32.gmra.mxu1 %v4139_v26  ;;  %v1653_v22 = vmul.f32 %v4123_v14, %v1652_v55  ;;  %v1659_v52 = vand.u32 2147483647, %v4091_v4  ;;  %v1808_v42 = vmul.f32 %v1807_v43, %v4987_v34  ;;  %v1237_v40 = vmul.f32 %v1236_v58, %v3979_v48  ;;  %v2241_v58 = vld [vmem:[#allocation7 + $0x230] sm:$0xff]  ;;  %v2220_v43 = vld [vmem:[#allocation7 + $0x188] sm:$0xff] }
 0x19e   : > { %v1277_v25 = vmul.f32 %v1276_v0, %v3993_v9  ;;  %v4152_v10 = vadd.f32 1.0, %v1688_v28  ;;  %v4155_v57 = vmul.f32 0.70710677, %v4136_v38  ;;  %vm1655_vm1 = vweird.f32 %v4091_v4  ;;  %2439 = vmatpush.msra.mxu3 %v2275_v16  ;;  %2478 = vmatpush.msrb.mxu0 %v2184_v1  ;;  %v2182_v0 = vld [vmem:[#allocation7 + $0x58] sm:$0xff] }
 0x19f   : > { %v1654_v3 = vadd.f32 %v4123_v14, %v1653_v22  ;;  %v1550_v59 = vadd.f32 0.00028619796, %v1549_v30  ;;  %v4159_v34 = vadd.f32 1.0, %v1808_v42  ;;  %vm1657_vm2 = vmor %vm1655_vm1, %vm1656_vm0  ;;  %v1662_v61 = vor.u32 1.1754944e-38, %v1661_v24  ;;  %2516 = vmatpush.msrb.mxu1 %v2222_v41  ;;  %2399 = vmatpush.msra.mxu2 %v2241_v58 }
 0x1a0   : > { %2913 = vrcp.f32 %v4152_v10  ;;  %v4164_v55 = vadd.f32 %v672_v20, %v632_v15  ;;  %v1842_v4 = vmul.f32 %v1841_v19, %v3586_v11  ;;  %v1396_v30 = vadd.f32 0.18741608, %v1395_v46  ;;  %2479 = vmatpush.msrb.mxu0 %v2182_v0 }
 0x1a1   : > { %v1658_v36 = vsel %vm1657_vm2, %v4123_v14, %v1654_v3  ;;  %vm1660_vm3 = vcmp.eq.f32.partialorder %v1659_v52, 8.507059e+37  ;;  %2915 = vrcp.f32 %v4159_v34  ;;  %v1433_v28 = vmul.f32 %v1432_v51, %v4069_v53  ;;  %2517 = vmatpush.msrb.mxu1 %v2220_v43  ;;  %v4998_v14 = vld [vmem:[#allocation16_spill] sm:$0xff] }
 0x1a2   : > { %v1663_v22 = vsel %vm1660_vm3, %v1662_v61, %v1658_v36  ;;  %v1587_v24 = vmul.f32 %v4155_v57, %v4155_v57  ;;  %v1960_v15 = vmul.f32 3.8918573e-05, %v3591_v45  ;;  %v4173_v42 = vadd.f32 1.1283791, %v1237_v40  ;;  %v5000_v51 = vld [vmem:[#allocation20_spill] sm:$0xff]  ;;  %v713_v61 = vpop.f32.mrf.mxu2 }
 0x1a3   : > { %v1664_v19 = vmul.f32 %v1663_v22, %v3814_v49  ;;  %v1551_v46 = vmul.f32 %v1550_v59, %v4120_v18  ;;  %v4178_v52 = vmul.f32 0.5, %v4998_v14  ;;  %v4181_v20 = vmul.f32 0.5, %v3988_v33  ;;  %2518 = vmatpush.msrb.mxu1 %v2218_v17 }
 0x1a4   : > { %v4184_v16 = vmul.f32 0.5, %v5000_v51  ;;  %v4187_v1 = vmul.f32 0.70710677, %v4164_v55  ;;  %v1843_v41 = vadd.f32 0.014752088, %v1842_v4  ;;  %v4192_v40 = vmul.f32 %v1396_v30, %v4022_v23 }
 0x1a5   : > { %4999 = vst [vmem:[#allocation15_spill] sm:$0xff] %v4181_v20  ;;  %v4189_v3 = vadd.f32 1.1283791, %v1277_v25  ;;  %v4195_v49 = vmul.f32 0.5, %v4035_v62  ;;  %v2792_v59 = vclamps-f32 %v1664_v19, 1.0  ;;  %v4197_v33 = vmin.f32 %v1587_v24, 16.0 }
 0x1a6   : > { %v2914_v58 = vpop.eup %2913  ;;  %v1434_v0 = vadd.f32 0.05243302, %v1433_v28  ;;  %v1844_v43 = vmul.f32 %v1843_v41, %v3586_v11  ;;  %v1961_v36 = vadd.f32 0.001143296, %v1960_v15  ;;  %v1552_v4 = vadd.f32 0.0036580483, %v1551_v46 }
 0x1a7   : > { %5001 = vst [vmem:[#allocation16_spill] sm:$0xff] %v4195_v49  ;;  %v2916_v22 = vpop.eup %2915  ;;  %v2127_v14 = vadd.f32 1.0, %v2792_v59  ;;  %v1691_v25 = vmul.f32 %v2914_v58, %v4152_v10  ;;  %v1707_v30 = vmul.f32 %v4187_v1, %v4187_v1  ;;  %vm1695_vm4 = vweird.f32 %v4152_v10 }
 0x1a8   : > { %v1699_v62 = vand.u32 2147483647, %v4152_v10  ;;  %v1701_v28 = vand.u32 2147483648, %v4152_v10  ;;  %v1811_v24 = vmul.f32 %v2916_v22, %v4159_v34  ;;  %v714_v51 = vadd.f32 %v713_v61, %v3676_v31 }
 0x1a9   : > { %v4208_v19 = vmul.f32 %v2127_v14, %v4118_v12  ;;  %v1692_v15 = vsub.f32 1.0, %v1691_v25  ;;  %v1845_v46 = vadd.f32 0.112945676, %v1844_v43  ;;  %v1589_v41 = vmul.f32 2.1237322e-06, %v4197_v33  ;;  %v2273_v25 = vld [vmem:[#allocation7 + $0x330] sm:$0xff] }
 0x1aa   : > { %v1812_v59 = vsub.f32 1.0, %v1811_v24  ;;  %v1821_v49 = vand.u32 2147483648, %v4159_v34  ;;  %v1962_v20 = vmul.f32 %v1961_v36, %v3591_v45  ;;  %vm1696_vm5 = vweird.f32 %v2914_v58  ;;  %v2180_v24 = vld [vmem:[#allocation7 + $0x48] sm:$0xff]  ;;  %v754_v36 = vpop.f32.mrf.mxu3  ;;  %2440 = vmatpush.msra.mxu3 %v2273_v25 }
 0x1ab   : > { %5002 = vst [vmem:[#allocation20_spill] sm:$0xff] %v4208_v19  ;;  %2336 = vmatmul.f32.gmra.mxu0 %v4208_v19  ;;  %v1693_v26 = vmul.f32 %v2914_v58, %v1692_v15  ;;  %v4215_v13 = vmin.f32 %v1707_v30, 16.0  ;;  %v1846_v12 = vmul.f32 %v1845_v46, %v3586_v11  ;;  %vm4218_vm6 = vcmp.eq.f32.partialorder %v1699_v62, 8.507059e+37  ;;  %vm1697_vm8 = vmor %vm1695_vm4, %vm1696_vm5 }
 0x1ac   : > { %v1813_v61 = vmul.f32 %v2916_v22, %v1812_v59  ;;  %vm1816_vm7 = vweird.f32 %v2916_v22  ;;  %v1819_v43 = vand.u32 2147483647, %v4159_v34  ;;  %v1702_v19 = vor.u32 1.1754944e-38, %v1701_v28  ;;  %2480 = vmatpush.msrb.mxu0 %v2180_v24 }
 0x1ad   : > { %v1694_v29 = vadd.f32 %v2914_v58, %v1693_v26  ;;  %v1847_v15 = vadd.f32 0.4994258, %v1846_v12  ;;  %v4223_v30 = vadd.f32 %v754_v36, %v714_v51  ;;  %vm1815_vm9 = vweird.f32 %v4159_v34 }
 0x1ae   : > { %v1814_v62 = vadd.f32 %v2916_v22, %v1813_v61  ;;  %v1822_v46 = vor.u32 1.1754944e-38, %v1821_v49  ;;  %v1963_v59 = vadd.f32 0.014752088, %v1962_v20  ;;  %vm1817_vm10 = vmor %vm1815_vm9, %vm1816_vm7  ;;  %v1709_v26 = vmul.f32 2.1237322e-06, %v4215_v13 }
 0x1af   : > { %v1698_v50 = vsel %vm1697_vm8, %v2914_v58, %v1694_v29  ;;  %v1848_v28 = vmul.f32 %v1847_v15, %v3586_v11  ;;  %v4233_v51 = vmul.f32 0.70710677, %v4223_v30  ;;  %v1590_v12 = vadd.f32 0.00028619796, %v1589_v41  ;;  %v634_v58 = vpop.f32.mrf.mxu0 }
 0x1b0   : > { %v1703_v10 = vsel %vm4218_vm6, %v1702_v19, %v1698_v50  ;;  %v1818_v61 = vsel %vm1817_vm10, %v2916_v22, %v1814_v62  ;;  %vm1820_vm11 = vcmp.eq.f32.partialorder %v1819_v43, 8.507059e+37  ;;  %v1435_v34 = vmul.f32 %v1434_v0, %v4069_v53  ;;  %v5005_v43 = vld [vmem:[#allocation22_spill] sm:$0xff] }
 0x1b1   : > { %v1704_v17 = vmul.f32 %v1703_v10, %v3826_v5  ;;  %v1823_v29 = vsel %vm1820_vm11, %v1822_v46, %v1818_v61  ;;  %v4239_v20 = vadd.f32 1.0, %v1848_v28  ;;  %v1553_v49 = vmul.f32 %v1552_v4, %v4120_v18 }
 0x1b2   : > { %v1824_v11 = vmul.f32 %v1823_v29, %v3836_v37  ;;  %v1747_v25 = vmul.f32 %v4233_v51, %v4233_v51  ;;  %v1964_v50 = vmul.f32 %v1963_v59, %v3591_v45  ;;  %v1710_v22 = vadd.f32 0.00028619796, %v1709_v26 }
 0x1b3   : > { %v2793_v19 = vclamps-f32 %v1704_v17, 1.0  ;;  %2917 = vrcp.f32 %v4239_v20  ;;  %v2000_v0 = vmul.f32 3.8918573e-05, %v3619_v21  ;;  %v4249_v5 = vadd.f32 1.1283791, %v4192_v40 }
 0x1b4   : > { %v4252_v41 = vmul.f32 0.5, %v4078_v32  ;;  %v1591_v37 = vmul.f32 %v1590_v12, %v4197_v33  ;;  %v2796_v4 = vclamps-f32 %v1824_v11, 1.0  ;;  %v4256_v24 = vmul.f32 0.5, %v5005_v43  ;;  %v2178_v11 = vld [vmem:[#allocation7 + $0x38] sm:$0xff] }
 0x1b5   : > { %v2128_v14 = vadd.f32 1.0, %v2793_v19  ;;  %v635_v36 = vadd.f32 %v634_v58, %v3634_v63  ;;  %v1965_v15 = vadd.f32 0.112945676, %v1964_v50  ;;  %v1436_v62 = vadd.f32 0.18741608, %v1435_v34  ;;  %v5006_v34 = vld [vmem:[#allocation23_spill] sm:$0xff]  ;;  %v675_v58 = vpop.f32.mrf.mxu1  ;;  %2481 = vmatpush.msrb.mxu0 %v2178_v11 }
 0x1b6   : > { %v1554_v46 = vadd.f32 0.05243302, %v1553_v49  ;;  %v2131_v59 = vadd.f32 1.0, %v2796_v4  ;;  %v4259_v26 = vmin.f32 %v1747_v25, 16.0  ;;  %v1711_v32 = vmul.f32 %v1710_v22, %v4215_v13  ;;  %v2239_v49 = vld [vmem:[#allocation7 + $0x220] sm:$0xff]  ;;  %v2214_v43 = vld [vmem:[#allocation7 + $0x158] sm:$0xff] }
 0x1b7   : > { %v4262_v40 = vmul.f32 %v2128_v14, %v4178_v52  ;;  %v1966_v28 = vmul.f32 %v1965_v15, %v3591_v45  ;;  %v2001_v10 = vadd.f32 0.001143296, %v2000_v0  ;;  %v4268_v12 = vmul.f32 %v4173_v42, %v3940_v27  ;;  %v2216_v52 = vld [vmem:[#allocation7 + $0x168] sm:$0xff]  ;;  %2400 = vmatpush.msra.mxu2 %v2239_v49  ;;  %v2271_v27 = vld [vmem:[#allocation7 + $0x320] sm:$0xff] }
 0x1b8   : > { %v1592_v61 = vadd.f32 0.0036580483, %v1591_v37  ;;  %v4271_v17 = vmul.f32 %v2131_v59, %v4184_v16  ;;  %v4274_v29 = vmul.f32 0.5, %v5006_v34  ;;  %v4279_v19 = vadd.f32 %v675_v58, %v635_v36  ;;  %v5008_v42 = vld [vmem:[#allocation24_spill] sm:$0xff]  ;;  %2519 = vmatpush.msrb.mxu1 %v2216_v52  ;;  %v2176_v14 = vld [vmem:[#allocation7 + $0x28] sm:$0xff]  ;;  %v2237_v36 = vld [vmem:[#allocation7 + $0x210] sm:$0xff]  ;;  %2441 = vmatpush.msra.mxu3 %v2271_v27 }
 0x1b9   : > { %v4276_v25 = vpop.eup %2917  ;;  %2377 = vmatmul.f32.gmra.mxu1 %v4262_v40  ;;  %v1967_v50 = vadd.f32 0.4994258, %v1966_v28  ;;  %v4282_v22 = vmul.f32 0.5, %v5008_v42  ;;  %v1080_v16 = vmul.f32 3.8918573e-05, %v3809_v2  ;;  %v1437_v0 = vmul.f32 %v1436_v62, %v4069_v53  ;;  %v2212_v49 = vld [vmem:[#allocation7 + $0x148] sm:$0xff]  ;;  %2401 = vmatpush.msra.mxu2 %v2237_v36 }
 0x1ba   : > { %5007 = vst [vmem:[#allocation22_spill] sm:$0xff] %v4279_v19  ;;  %2339 = vmatmul.f32.gmra.mxu0 %v4271_v17  ;;  %v1851_v37 = vmul.f32 %v4276_v25, %v4239_v20  ;;  %v1749_v4 = vmul.f32 2.1237322e-06, %v4259_v26  ;;  %v2002_v15 = vmul.f32 %v2001_v10, %v3619_v21  ;;  %v1555_v59 = vmul.f32 %v1554_v46, %v4120_v18  ;;  %v2174_v10 = vld [vmem:[#allocation7 + $0x18] sm:$0xff] }
 0x1bb   : > { %v1712_v28 = vadd.f32 0.0036580483, %v1711_v32  ;;  %v1968_v34 = vmul.f32 %v1967_v50, %v3591_v45  ;;  %v4294_v62 = vmul.f32 0.70710677, %v4279_v19  ;;  %v4298_v58 = vmul.f32 %v4189_v3, %v3965_v60  ;;  %2520 = vmatpush.msrb.mxu1 %v2214_v43  ;;  %2482 = vmatpush.msrb.mxu0 %v2176_v14  ;;  %v716_v50 = vpop.f32.mrf.mxu2 }
 0x1bc   : > { %v1852_v52 = vsub.f32 1.0, %v1851_v37  ;;  %v1859_v42 = vand.u32 2147483647, %v4239_v20  ;;  %v2003_v46 = vadd.f32 0.014752088, %v2002_v15  ;;  %v1861_v32 = vand.u32 2147483648, %v4239_v20 }
 0x1bd   : > { %5009 = vst [vmem:[#allocation23_spill] sm:$0xff] %v4294_v62  ;;  %v4302_v45 = vadd.f32 1.0, %v1968_v34  ;;  %v1867_v11 = vmul.f32 %v4294_v62, %v4294_v62  ;;  %v1081_v27 = vadd.f32 0.001143296, %v1080_v16  ;;  %vm1856_vm12 = vweird.f32 %v4276_v25  ;;  %2521 = vmatpush.msrb.mxu1 %v2212_v49  ;;  %2483 = vmatpush.msrb.mxu0 %v2174_v10 }
 0x1be   : > { %v1853_v60 = vmul.f32 %v4276_v25, %v1852_v52  ;;  %v1750_v3 = vadd.f32 0.00028619796, %v1749_v4  ;;  %v2004_v37 = vmul.f32 %v2003_v46, %v3619_v21  ;;  %v4309_v43 = vadd.f32 1.1283791, %v1437_v0 }
 0x1bf   : > { %v1556_v36 = vadd.f32 0.18741608, %v1555_v59  ;;  %v1593_v15 = vmul.f32 %v1592_v61, %v4197_v33  ;;  %2919 = vrcp.f32 %v4302_v45  ;;  %vm1855_vm13 = vweird.f32 %v4239_v20 }
 0x1c0   : > { %v1854_v14 = vadd.f32 %v4276_v25, %v1853_v60  ;;  %v4315_v16 = vmin.f32 %v1867_v11, 16.0  ;;  %v2005_v34 = vadd.f32 0.112945676, %v2004_v37  ;;  %v1713_v4 = vmul.f32 %v1712_v28, %v4215_v13  ;;  %vm1857_vm14 = vmor %vm1855_vm13, %vm1856_vm12  ;;  %v757_v37 = vpop.f32.mrf.mxu3 }
 0x1c1   : > { %v1862_v49 = vor.u32 1.1754944e-38, %v1861_v32  ;;  %v717_v0 = vadd.f32 %v716_v50, %v3676_v31  ;;  %v1082_v59 = vmul.f32 %v1081_v27, %v3809_v2  ;;  %vm1860_vm15 = vcmp.eq.f32.partialorder %v1859_v42, 8.507059e+37  ;;  %v2269_v27 = vld [vmem:[#allocation7 + $0x310] sm:$0xff]  ;;  %v637_v42 = vpop.f32.mrf.mxu0 }
 0x1c2   : > { %v1858_v61 = vsel %vm1857_vm14, %v4276_v25, %v1854_v14  ;;  %v1751_v52 = vmul.f32 %v1750_v3, %v4259_v26  ;;  %v2006_v10 = vmul.f32 %v2005_v34, %v3619_v21  ;;  %v1594_v46 = vadd.f32 0.05243302, %v1593_v15  ;;  %v2235_v25 = vld [vmem:[#allocation7 + $0x200] sm:$0xff]  ;;  %2442 = vmatpush.msra.mxu3 %v2269_v27 }
 0x1c3   : > { %v1863_v20 = vsel %vm1860_vm15, %v1862_v49, %v1858_v61  ;;  %v1869_v11 = vmul.f32 2.1237322e-06, %v4315_v16  ;;  %v1120_v60 = vmul.f32 3.8918573e-05, %v3899_v56  ;;  %v4327_v28 = vmul.f32 %v4249_v5, %v3998_v39  ;;  %2402 = vmatpush.msra.mxu2 %v2235_v25  ;;  %v2172_v49 = vld [vmem:[#allocation7 + $0x8] sm:$0xff]  ;;  %v2210_v61 = vld [vmem:[#allocation7 + $0x138] sm:$0xff] }
 0x1c4   : > { %v1864_v32 = vmul.f32 %v1863_v20, %v3864_v47  ;;  %v2007_v50 = vadd.f32 0.4994258, %v2006_v10  ;;  %v1083_v3 = vadd.f32 0.014752088, %v1082_v59  ;;  %v4333_v15 = vmul.f32 %v1556_v36, %v4120_v18  ;;  %v2208_v47 = vld [vmem:[#allocation7 + $0x128] sm:$0xff]  ;;  %2484 = vmatpush.msrb.mxu0 %v2172_v49  ;;  %2522 = vmatpush.msrb.mxu1 %v2210_v61  ;;  %v678_v36 = vpop.f32.mrf.mxu1  ;;  %v2266_v49 = vld [vmem:[#allocation7 + $0x2f8] sm:$0xff] }
 0x1c5   : > { %v4330_v14 = vpop.eup %2919  ;;  %v1714_v34 = vadd.f32 0.05243302, %v1713_v4  ;;  %v638_v39 = vadd.f32 %v637_v42, %v3634_v63  ;;  %v4336_v5 = vadd.f32 %v757_v37, %v717_v0  ;;  %v1752_v20 = vadd.f32 0.0036580483, %v1751_v52  ;;  %2403 = vmatmul.f32.vlgmr.msra.gmra.mxu2 %v4019_v35  ;;  %v2267_v63 = vld [vmem:[#allocation7 + $0x300] sm:$0xff]  ;;  %v2206_v0 = vld [vmem:[#allocation7 + $0x118] sm:$0xff]  ;;  %v719_v52 = vpop.f32.mrf.mxu2 }
 0x1c6   : > { %v2797_v10 = vclamps-f32 %v1864_v32, 1.0  ;;  %v1971_v59 = vmul.f32 %v4330_v14, %v4302_v45  ;;  %v1981_v19 = vand.u32 2147483648, %v4302_v45  ;;  %v1595_v4 = vmul.f32 %v1594_v46, %v4197_v33  ;;  %2523 = vmatpush.msrb.mxu1 %v2208_v47  ;;  %2443 = vmatpush.msra.mxu3 %v2267_v63  ;;  %v2204_v47 = vld [vmem:[#allocation7 + $0x108] sm:$0xff] }
 0x1c7   : > { %v2008_v27 = vmul.f32 %v2007_v50, %v3619_v21  ;;  %v4344_v25 = vmul.f32 0.70710677, %v4336_v5  ;;  %v1121_v32 = vadd.f32 0.001143296, %v1120_v60  ;;  %v1870_v62 = vadd.f32 0.00028619796, %v1869_v11  ;;  %2551 = vmatpush.msrb.mxu2 %v2266_v49  ;;  %2444 = vmatmul.f32.vlgmr.msra.gmra.mxu3 %v4109_v54 }
 0x1c8   : > { %v2132_v42 = vadd.f32 1.0, %v2797_v10  ;;  %v1972_v37 = vsub.f32 1.0, %v1971_v59  ;;  %v1084_v61 = vmul.f32 %v1083_v3, %v3809_v2  ;;  %v4352_v50 = vadd.f32 %v678_v36, %v638_v39  ;;  %2524 = vmatpush.msrb.mxu1 %v2206_v0  ;;  %v2298_v36 = vld [vmem:[#allocation7 + $0x3f8] sm:$0xff] }
 0x1c9   : > { %v4348_v46 = vadd.f32 1.0, %v2008_v27  ;;  %v1907_v21 = vmul.f32 %v4344_v25, %v4344_v25  ;;  %v720_v35 = vadd.f32 %v719_v52, %v3676_v31  ;;  %vm1976_vm0 = vweird.f32 %v4330_v14  ;;  %v760_v27 = vpop.f32.mrf.mxu3  ;;  %2592 = vmatpush.msrb.mxu3 %v2298_v36  ;;  %v2262_v36 = vld [vmem:[#allocation7 + $0x2d8] sm:$0xff] }
 0x1ca   : > { %v4357_v60 = vmul.f32 %v2132_v42, %v4256_v24  ;;  %v1973_v11 = vmul.f32 %v4330_v14, %v1972_v37  ;;  %v1979_v3 = vand.u32 2147483647, %v4302_v45  ;;  %v1715_v10 = vmul.f32 %v1714_v34, %v4215_v13  ;;  %2525 = vmatpush.msrb.mxu1 %v2204_v47 }
 0x1cb   : > { %v1753_v39 = vmul.f32 %v1752_v20, %v4259_v26  ;;  %vm1975_vm1 = vweird.f32 %v4302_v45  ;;  %2921 = vrcp.f32 %v4348_v46  ;;  %v1982_v24 = vor.u32 1.1754944e-38, %v1981_v19 }
 0x1cc   : > { %2380 = vmatmul.f32.gmra.mxu1 %v4357_v60  ;;  %v1974_v31 = vadd.f32 %v4330_v14, %v1973_v11  ;;  %v4368_v59 = vmin.f32 %v1907_v21, 16.0  ;;  %v1122_v63 = vmul.f32 %v1121_v32, %v3899_v56  ;;  %vm1977_vm2 = vmor %vm1975_vm1, %vm1976_vm0  ;;  %v1871_v34 = vmul.f32 %v1870_v62, %v4315_v16 }
 0x1cd   : > { %v4375_v45 = vmul.f32 0.70710677, %v4352_v50  ;;  %v4377_v20 = vadd.f32 %v760_v27, %v720_v35  ;;  %v1085_v0 = vadd.f32 0.112945676, %v1084_v61  ;;  %v1596_v19 = vadd.f32 0.18741608, %v1595_v4 }
 0x1ce   : > { %v1978_v52 = vsel %vm1977_vm2, %v4330_v14, %v1974_v31  ;;  %vm1980_vm3 = vcmp.eq.f32.partialorder %v1979_v3, 8.507059e+37  ;;  %v1909_v42 = vmul.f32 2.1237322e-06, %v4368_v59  ;;  %v4382_v32 = vmul.f32 0.5, %v4136_v38 }
 0x1cf   : > { %v1716_v37 = vadd.f32 0.18741608, %v1715_v10  ;;  %v1983_v49 = vsel %vm1980_vm3, %v1982_v24, %v1978_v52  ;;  %v2027_v62 = vmul.f32 %v4375_v45, %v4375_v45  ;;  %v1558_v21 = vadd.f32 1.1283791, %v4333_v15  ;;  %v2264_v24 = vld [vmem:[#allocation7 + $0x2e8] sm:$0xff] }
 0x1d0   : > { %v1754_v11 = vadd.f32 0.05243302, %v1753_v39  ;;  %v1984_v35 = vmul.f32 %v1983_v49, %v3867_v6  ;;  %v1086_v4 = vmul.f32 %v1085_v0, %v3809_v2  ;;  %v4391_v14 = vmul.f32 %v4309_v43, %v4047_v44  ;;  %v2296_v6 = vld [vmem:[#allocation7 + $0x3e8] sm:$0xff]  ;;  %2552 = vmatpush.msrb.mxu2 %v2264_v24 }
 0x1d1   : > { %v2922_v61 = vpop.eup %2921  ;;  %v1872_v3 = vadd.f32 0.0036580483, %v1871_v34  ;;  %v4394_v38 = vmul.f32 0.70710677, %v4377_v20  ;;  %v1123_v47 = vadd.f32 0.014752088, %v1122_v63  ;;  %v1597_v10 = vmul.f32 %v1596_v19, %v4197_v33  ;;  %2593 = vmatpush.msrb.mxu3 %v2296_v6 }
 0x1d2   : > { %v2800_v31 = vclamps-f32 %v1984_v35, 1.0  ;;  %v2011_v15 = vmul.f32 %v2922_v61, %v4348_v46  ;;  %v1910_v39 = vadd.f32 0.00028619796, %v1909_v42  ;;  %v1717_v27 = vmul.f32 %v1716_v37, %v4215_v13  ;;  %2553 = vmatpush.msrb.mxu2 %v2262_v36 }
 0x1d3   : > { %v2019_v0 = vand.u32 2147483647, %v4348_v46  ;;  %v4400_v44 = vmin.f32 %v2027_v62, 16.0  ;;  %v1087_v43 = vadd.f32 0.4994258, %v1086_v4  ;;  %v2021_v19 = vand.u32 2147483648, %v4348_v46 }
 0x1d4   : > { %v2135_v34 = vadd.f32 1.0, %v2800_v31  ;;  %v2012_v63 = vsub.f32 1.0, %v2011_v15  ;;  %v1124_v52 = vmul.f32 %v1123_v47, %v3899_v56  ;;  %vm2016_vm4 = vweird.f32 %v2922_v61 }
 0x1d5   : > { %v2067_v42 = vmul.f32 %v4394_v38, %v4394_v38  ;;  %v1088_v49 = vmul.f32 %v1087_v43, %v3809_v2  ;;  %v1240_v37 = vmul.f32 3.8918573e-05, %v3979_v48  ;;  %v1911_v4 = vmul.f32 %v1910_v39, %v4368_v59 }
 0x1d6   : > { %v4409_v62 = vmul.f32 %v2135_v34, %v4274_v29  ;;  %v2013_v35 = vmul.f32 %v2922_v61, %v2012_v63  ;;  %v1125_v31 = vadd.f32 0.112945676, %v1124_v52  ;;  %v1598_v15 = vadd.f32 1.1283791, %v1597_v10 }
 0x1d7   : > { %v1755_v24 = vmul.f32 %v1754_v11, %v4259_v26  ;;  %v2029_v47 = vmul.f32 2.1237322e-06, %v4400_v44  ;;  %v4414_v6 = vadd.f32 1.0, %v1088_v49  ;;  %v1873_v2 = vmul.f32 %v1872_v3, %v4315_v16 }
 0x1d8   : > { %2342 = vmatmul.f32.gmra.mxu0 %v4409_v62  ;;  %v2014_v36 = vadd.f32 %v2922_v61, %v2013_v35  ;;  %vm2015_vm5 = vweird.f32 %v4348_v46  ;;  %v1126_v29 = vmul.f32 %v1125_v31, %v3899_v56  ;;  %v2022_v39 = vor.u32 1.1754944e-38, %v2021_v19  ;;  %v2294_v35 = vld [vmem:[#allocation7 + $0x3d8] sm:$0xff] }
 0x1d9   : > { %vm2017_vm6 = vmor %vm2015_vm5, %vm2016_vm4  ;;  %v4421_v43 = vmin.f32 %v2067_v42, 16.0  ;;  %2923 = vrcp.f32 %v4414_v6  ;;  %v1241_v11 = vadd.f32 0.001143296, %v1240_v37  ;;  %v1718_v10 = vadd.f32 1.1283791, %v1717_v27  ;;  %2594 = vmatpush.msrb.mxu3 %v2294_v35 }
 0x1da   : > { %v2018_v34 = vsel %vm2017_vm6, %v2922_v61, %v2014_v36  ;;  %vm2020_vm7 = vcmp.eq.f32.partialorder %v2019_v0, 8.507059e+37  ;;  %v1912_v63 = vadd.f32 0.0036580483, %v1911_v4  ;;  %v4425_v52 = vmul.f32 0.5, %v4164_v55 }
 0x1db   : > { %v1756_v3 = vadd.f32 0.18741608, %v1755_v24  ;;  %v2023_v49 = vsel %vm2020_vm7, %v2022_v39, %v2018_v34  ;;  %v2030_v46 = vadd.f32 0.00028619796, %v2029_v47  ;;  %v4428_v31 = vmul.f32 %v1558_v21, %v4088_v8  ;;  %v5010_v39 = vld [vmem:[#allocation14_spill] sm:$0xff] }
 0x1dc   : > { %v2024_v19 = vmul.f32 %v2023_v49, %v3870_v7  ;;  %v1127_v42 = vadd.f32 0.4994258, %v1126_v29  ;;  %v1280_v37 = vmul.f32 3.8918573e-05, %v3993_v9  ;;  %v4433_v61 = vmul.f32 0.5, %v4223_v30 }
 0x1dd   : > { %v1874_v27 = vadd.f32 0.05243302, %v1873_v2  ;;  %v2069_v55 = vmul.f32 2.1237322e-06, %v4421_v43  ;;  %v1242_v0 = vmul.f32 %v1241_v11, %v3979_v48  ;;  %v4438_v4 = vmul.f32 %v1598_v15, %v4155_v57 }
 0x1de   : > { %v2801_v24 = vclamps-f32 %v2024_v19, 1.0  ;;  %v1913_v8 = vmul.f32 %v1912_v63, %v4368_v59  ;;  %v1128_v7 = vmul.f32 %v1127_v42, %v3899_v56  ;;  %v4443_v47 = vmul.f32 %v1718_v10, %v4187_v1 }
 0x1df   : > { %v2924_v21 = vpop.eup %2923  ;;  %v1757_v30 = vmul.f32 %v1756_v3, %v4259_v26  ;;  %v2031_v2 = vmul.f32 %v2030_v46, %v4400_v44  ;;  %v1243_v36 = vadd.f32 0.014752088, %v1242_v0  ;;  %v1281_v11 = vadd.f32 0.001143296, %v1280_v37 }
 0x1e0   : > { %v2136_v29 = vadd.f32 1.0, %v2801_v24  ;;  %2485 = vmatmul.f32.vlgmr.msrb.gmra.mxu0 %v5010_v39  ;;  %v1091_v57 = vmul.f32 %v2924_v21, %v4414_v6  ;;  %v4449_v15 = vadd.f32 1.0, %v1128_v7  ;;  %v1875_v34 = vmul.f32 %v1874_v27, %v4315_v16 }
 0x1e1   : > { %v2070_v56 = vadd.f32 0.00028619796, %v2069_v55  ;;  %v1244_v63 = vmul.f32 %v1243_v36, %v3979_v48  ;;  %v1400_v1 = vmul.f32 3.8918573e-05, %v4022_v23  ;;  %v1914_v3 = vadd.f32 0.05243302, %v1913_v8 }
 0x1e2   : > { %v4455_v10 = vmul.f32 %v2136_v29, %v4282_v22  ;;  %v1092_v49 = vsub.f32 1.0, %v1091_v57  ;;  %2925 = vrcp.f32 %v4449_v15  ;;  %v2032_v46 = vadd.f32 0.0036580483, %v2031_v2  ;;  %v2260_v57 = vld [vmem:[#allocation7 + $0x2c8] sm:$0xff] }
 0x1e3   : > { %vm1096_vm8 = vweird.f32 %v2924_v21  ;;  %v1099_v35 = vand.u32 2147483647, %v4414_v6  ;;  %v1101_v19 = vand.u32 2147483648, %v4414_v6  ;;  %v4460_v42 = vadd.f32 1.1283791, %v1757_v30  ;;  %2554 = vmatpush.msrb.mxu2 %v2260_v57 }
 0x1e4   : > { %2383 = vmatmul.f32.gmra.mxu1 %v4455_v10  ;;  %v1093_v37 = vmul.f32 %v2924_v21, %v1092_v49  ;;  %v1245_v27 = vadd.f32 0.112945676, %v1244_v63  ;;  %v1282_v55 = vmul.f32 %v1281_v11, %v3993_v9  ;;  %v4464_v22 = vadd.f32 0.18741608, %v1875_v34  ;;  %v2292_v11 = vld [vmem:[#allocation7 + $0x3c8] sm:$0xff] }
 0x1e5   : > { %v2071_v0 = vmul.f32 %v2070_v56, %v4421_v43  ;;  %vm1095_vm9 = vweird.f32 %v4414_v6  ;;  %v1401_v24 = vadd.f32 0.001143296, %v1400_v1  ;;  %v4469_v8 = vmul.f32 %v1914_v3, %v4368_v59  ;;  %v2258_v6 = vld [vmem:[#allocation7 + $0x2b8] sm:$0xff]  ;;  %2595 = vmatpush.msrb.mxu3 %v2292_v11 }
 0x1e6   : > { %v1094_v7 = vadd.f32 %v2924_v21, %v1093_v37  ;;  %vm4471_vm10 = vmor %vm1095_vm9, %vm1096_vm8  ;;  %v1246_v2 = vmul.f32 %v1245_v27, %v3979_v48  ;;  %v1283_v36 = vadd.f32 0.014752088, %v1282_v55  ;;  %v4477_v29 = vmul.f32 %v2032_v46, %v4400_v44  ;;  %v5013_v1 = vld [vmem:[#allocation31_spill] sm:$0xff]  ;;  %2555 = vmatpush.msrb.mxu2 %v2258_v6 }
 0x1e7   : > { %vm1100_vm11 = vcmp.eq.f32.partialorder %v1099_v35, 8.507059e+37  ;;  %v1102_v39 = vor.u32 1.1754944e-38, %v1101_v19  ;;  %v1402_v34 = vmul.f32 %v1401_v24, %v4022_v23  ;;  %v1440_v46 = vmul.f32 3.8918573e-05, %v4069_v53  ;;  %v5014_v55 = vld [vmem:[#allocation35_spill] sm:$0xff] }
 0x1e8   : > { %v2926_v56 = vpop.eup %2925  ;;  %v1098_v63 = vsel %vm4471_vm10, %v2924_v21, %v1094_v7  ;;  %2488 = vmatmul.f32.gmra.mxu0 %v5013_v1  ;;  %v1247_v3 = vadd.f32 0.4994258, %v1246_v2  ;;  %v1284_v49 = vmul.f32 %v1283_v36, %v3993_v9  ;;  %v4485_v37 = vadd.f32 0.0036580483, %v2071_v0  ;;  %v5015_v1 = vld [vmem:[#allocation17_spill] sm:$0xff] }
 0x1e9   : > { %v1103_v35 = vsel %vm1100_vm11, %v1102_v39, %v1098_v63  ;;  %v1131_v19 = vmul.f32 %v2926_v56, %v4449_v15  ;;  %v1139_v27 = vand.u32 2147483647, %v4449_v15  ;;  %v1403_v30 = vadd.f32 0.014752088, %v1402_v34 }
 0x1ea   : > { %v1104_v24 = vmul.f32 %v1103_v35, %v5014_v55  ;;  %v1248_v21 = vmul.f32 %v1247_v3, %v3979_v48  ;;  %v1285_v7 = vadd.f32 0.112945676, %v1284_v49  ;;  %v1141_v36 = vand.u32 2147483648, %v4449_v15  ;;  %v2290_v3 = vld [vmem:[#allocation7 + $0x3b8] sm:$0xff] }
 0x1eb   : > { %v1132_v2 = vsub.f32 1.0, %v1131_v19  ;;  %v1441_v57 = vadd.f32 0.001143296, %v1440_v46  ;;  %v1560_v0 = vmul.f32 3.8918573e-05, %v4120_v18  ;;  %v1404_v35 = vmul.f32 %v1403_v30, %v4022_v23  ;;  %2596 = vmatpush.msrb.mxu3 %v2290_v3 }
 0x1ec   : > { %2526 = vmatmul.f32.vlgmr.msrb.gmra.mxu1 %v5015_v1  ;;  %v2778_v39 = vclamps-f32 %v1104_v24, 1.0  ;;  %v4494_v63 = vadd.f32 1.0, %v1248_v21  ;;  %v1286_v11 = vmul.f32 %v1285_v7, %v3993_v9  ;;  %vm1136_vm12 = vweird.f32 %v2926_v56  ;;  %v5016_v21 = vld [vmem:[#allocation34_spill] sm:$0xff] }
 0x1ed   : > { %v1133_v55 = vmul.f32 %v2926_v56, %v1132_v2  ;;  %v1442_v48 = vmul.f32 %v1441_v57, %v4069_v53  ;;  %v1561_v6 = vadd.f32 0.001143296, %v1560_v0  ;;  %vm1135_vm13 = vweird.f32 %v4449_v15  ;;  %v5017_v2 = vld [vmem:[#allocation33_spill] sm:$0xff] }
 0x1ee   : > { %v2113_v34 = vadd.f32 1.0, %v2778_v39  ;;  %2927 = vrcp.f32 %v4494_v63  ;;  %v1600_v49 = vmul.f32 3.8918573e-05, %v4197_v33  ;;  %vm1140_vm14 = vcmp.eq.f32.partialorder %v1139_v27, 8.507059e+37  ;;  %vm1137_vm15 = vmor %vm1135_vm13, %vm1136_vm12 }
 0x1ef   : > { %v1134_v46 = vadd.f32 %v2926_v56, %v1133_v55  ;;  %v1287_v19 = vadd.f32 0.4994258, %v1286_v11  ;;  %v1405_v24 = vadd.f32 0.112945676, %v1404_v35  ;;  %v1142_v30 = vor.u32 1.1754944e-38, %v1141_v36 }
 0x1f0   : > { %v4503_v7 = vmul.f32 %v2113_v34, %v5016_v21  ;;  %2491 = vmatmul.f32.gmra.mxu0 %v5017_v2  ;;  %v1443_v57 = vadd.f32 0.014752088, %v1442_v48  ;;  %v1562_v15 = vmul.f32 %v1561_v6, %v4120_v18  ;;  %v1259_v1 = vand.u32 2147483647, %v4494_v63  ;;  %v5018_v48 = vld [vmem:[#allocation28_spill] sm:$0xff] }
 0x1f1   : > { %v1138_v0 = vsel %vm1137_vm15, %v2926_v56, %v1134_v46  ;;  %v1288_v39 = vmul.f32 %v1287_v19, %v3993_v9  ;;  %v1406_v27 = vmul.f32 %v1405_v24, %v4022_v23  ;;  %v1601_v34 = vadd.f32 0.001143296, %v1600_v49  ;;  %v2256_v46 = vld [vmem:[#allocation7 + $0x2a8] sm:$0xff]  ;;  %v2254_v19 = vld [vmem:[#allocation7 + $0x298] sm:$0xff] }
 0x1f2   : > { %2406 = vmatmul.f32.gmra.mxu2 %v4503_v7  ;;  %v1143_v11 = vsel %vm1140_vm14, %v1142_v30, %v1138_v0  ;;  %v1444_v35 = vmul.f32 %v1443_v57, %v4069_v53  ;;  %v1563_v55 = vadd.f32 0.014752088, %v1562_v15  ;;  %v4514_v36 = vmul.f32 %v4464_v22, %v4315_v16  ;;  %v2288_v9 = vld [vmem:[#allocation7 + $0x3a8] sm:$0xff]  ;;  %v5019_v30 = vld [vmem:[#allocation32_spill] sm:$0xff] }
 0x1f3   : > { %v1144_v6 = vmul.f32 %v1143_v11, %v5018_v48  ;;  %v4517_v56 = vadd.f32 1.0, %v1288_v39  ;;  %v1407_v3 = vadd.f32 0.4994258, %v1406_v27  ;;  %v4520_v21 = vadd.f32 0.18741608, %v4469_v8  ;;  %2556 = vmatpush.msrb.mxu2 %v2256_v46  ;;  %2597 = vmatpush.msrb.mxu3 %v2288_v9  ;;  %v5023_v9 = vld [vmem:[#allocation19_spill] sm:$0xff] }
 0x1f4   : > { %v2928_v24 = vpop.eup %2927  ;;  %2529 = vmatmul.f32.gmra.mxu1 %v5019_v30  ;;  %v1445_v49 = vadd.f32 0.112945676, %v1444_v35  ;;  %v1564_v2 = vmul.f32 %v1563_v55, %v4120_v18  ;;  %v1602_v22 = vmul.f32 %v1601_v34, %v4197_v33  ;;  %v4526_v57 = vadd.f32 0.05243302, %v4477_v29 }
 0x1f5   : > { %v2779_v15 = vclamps-f32 %v1144_v6, 1.0  ;;  %v1251_v0 = vmul.f32 %v2928_v24, %v4494_v63  ;;  %2929 = vrcp.f32 %v4517_v56  ;;  %vm1255_vm0 = vweird.f32 %v4494_v63  ;;  %2557 = vmatpush.msrb.mxu2 %v2254_v19  ;;  %v5022_v6 = vld [vmem:[#allocation26_spill] sm:$0xff] }
 0x1f6   : > { %vm4531_vm1 = vcmp.eq.f32.partialorder %v1259_v1, 8.507059e+37  ;;  %v1261_v39 = vand.u32 2147483648, %v4494_v63  ;;  %v1408_v27 = vmul.f32 %v1407_v3, %v4022_v23  ;;  %v1446_v35 = vmul.f32 %v1445_v49, %v4069_v53  ;;  %v2286_v1 = vld [vmem:[#allocation7 + $0x398] sm:$0xff] }
 0x1f7   : > { %v2114_v11 = vadd.f32 1.0, %v2779_v15  ;;  %v1252_v29 = vsub.f32 1.0, %v1251_v0  ;;  %v1565_v55 = vadd.f32 0.112945676, %v1564_v2  ;;  %vm1256_vm2 = vweird.f32 %v2928_v24  ;;  %2598 = vmatpush.msrb.mxu3 %v2286_v1 }
 0x1f8   : > { %v1299_v34 = vand.u32 2147483647, %v4517_v56  ;;  %v4539_v48 = vadd.f32 1.0, %v1408_v27  ;;  %2494 = vmatmul.f32.gmra.mxu0 %v5022_v6  ;;  %v1603_v46 = vadd.f32 0.014752088, %v1602_v22  ;;  %v1262_v19 = vor.u32 1.1754944e-38, %v1261_v39  ;;  %vm1257_vm3 = vmor %vm1255_vm0, %vm1256_vm2 }
 0x1f9   : > { %v4543_v30 = vmul.f32 %v2114_v11, %v5023_v9  ;;  %v1253_v54 = vmul.f32 %v2928_v24, %v1252_v29  ;;  %v1447_v23 = vadd.f32 0.4994258, %v1446_v35  ;;  %v1566_v3 = vmul.f32 %v1565_v55, %v4120_v18  ;;  %v2252_v11 = vld [vmem:[#allocation7 + $0x288] sm:$0xff]  ;;  %v2250_v35 = vld [vmem:[#allocation7 + $0x278] sm:$0xff] }
 0x1fa   : > { %v1301_v49 = vand.u32 2147483648, %v4517_v56  ;;  %2931 = vrcp.f32 %v4539_v48  ;;  %v1720_v2 = vmul.f32 3.8918573e-05, %v4215_v13  ;;  %v2284_v29 = vld [vmem:[#allocation7 + $0x388] sm:$0xff]  ;;  %v1604_v6 = vmul.f32 %v1603_v46, %v4197_v33  ;;  %2558 = vmatpush.msrb.mxu2 %v2252_v11 }
 0x1fb   : > { %5024 = vst [vmem:[#allocation24_spill] sm:$0xff] %v4543_v30  ;;  %v2930_v15 = vpop.eup %2929  ;;  %2447 = vmatmul.f32.gmra.mxu3 %v4543_v30  ;;  %v1254_v0 = vadd.f32 %v2928_v24, %v1253_v54  ;;  %v1448_v22 = vmul.f32 %v1447_v23, %v4069_v53  ;;  %v1567_v27 = vadd.f32 0.4994258, %v1566_v3  ;;  %vm1295_vm4 = vweird.f32 %v4517_v56  ;;  %v5027_v54 = vld [vmem:[#allocation18_spill] sm:$0xff] }
 0x1fc   : > { %v1291_v39 = vmul.f32 %v2930_v15, %v4517_v56  ;;  %vm4557_vm5 = vcmp.eq.f32.partialorder %v1299_v34, 8.507059e+37  ;;  %2532 = vmatmul.f32.gmra.mxu1 %v5027_v54  ;;  %v1419_v53 = vand.u32 2147483647, %v4539_v48  ;;  %2599 = vmatpush.msrb.mxu3 %v2284_v29  ;;  %v1605_v63 = vadd.f32 0.112945676, %v1604_v6 }
 0x1fd   : > { %v1258_v1 = vsel %vm1257_vm3, %v2928_v24, %v1254_v0  ;;  %v4563_v9 = vadd.f32 1.0, %v1448_v22  ;;  %v1568_v46 = vmul.f32 %v1567_v27, %v4120_v18  ;;  %v1302_v34 = vor.u32 1.1754944e-38, %v1301_v49  ;;  %2559 = vmatpush.msrb.mxu2 %v2250_v35  ;;  %v5028_v18 = vld [vmem:[#allocation27_spill] sm:$0xff] }
 0x1fe   : > { %v1263_v23 = vsel %vm4531_vm1, %v1262_v19, %v1258_v1  ;;  %v1292_v3 = vsub.f32 1.0, %v1291_v39  ;;  %v1421_v30 = vand.u32 2147483648, %v4539_v48  ;;  %vm1296_vm6 = vweird.f32 %v2930_v15 }
 0x1ff   : > { %v1264_v54 = vmul.f32 %v1263_v23, %v4268_v12  ;;  %2933 = vrcp.f32 %v4563_v9  ;;  %v1721_v24 = vadd.f32 0.001143296, %v1720_v2  ;;  %v4571_v11 = vadd.f32 1.0, %v1568_v46  ;;  %vm1297_vm9 = vmor %vm1295_vm4, %vm1296_vm6  ;;  %v2282_v23 = vld [vmem:[#allocation7 + $0x378] sm:$0xff] }
 0x200   : > { %v2932_v0 = vpop.eup %2931  ;;  %v1293_v22 = vmul.f32 %v2930_v15, %v1292_v3  ;;  %2497 = vmatmul.f32.gmra.mxu0 %v5028_v18  ;;  %v1606_v8 = vmul.f32 %v1605_v63, %v4197_v33  ;;  %v1760_v19 = vmul.f32 3.8918573e-05, %v4259_v26  ;;  %vm1415_vm7 = vweird.f32 %v4539_v48  ;;  %v5032_v18 = vld [vmem:[#allocation30_spill] sm:$0xff]  ;;  %2600 = vmatpush.msrb.mxu3 %v2282_v23 }
 0x201   : > { %v2782_v49 = vclamps-f32 %v1264_v54, 1.0  ;;  %v1411_v27 = vmul.f32 %v2932_v0, %v4539_v48  ;;  %vm4578_vm8 = vcmp.eq.f32.partialorder %v1419_v53, 8.507059e+37  ;;  %v1459_v29 = vand.u32 2147483647, %v4563_v9  ;;  %v5031_v53 = vld [vmem:[#allocation21_spill] sm:$0xff] }
 0x202   : > { %v1294_v2 = vadd.f32 %v2930_v15, %v1293_v22  ;;  %v1461_v35 = vand.u32 2147483648, %v4563_v9  ;;  %2935 = vrcp.f32 %v4571_v11  ;;  %vm1416_vm10 = vweird.f32 %v2932_v0 }
 0x203   : > { %v2117_v6 = vadd.f32 1.0, %v2782_v49  ;;  %v1412_v39 = vsub.f32 1.0, %v1411_v27  ;;  %v1422_v1 = vor.u32 1.1754944e-38, %v1421_v30  ;;  %vm1455_vm11 = vweird.f32 %v4563_v9  ;;  %vm1417_vm14 = vmor %vm1415_vm7, %vm1416_vm10 }
 0x204   : > { %v1298_v46 = vsel %vm1297_vm9, %v2930_v15, %v1294_v2  ;;  %2535 = vmatmul.f32.gmra.mxu1 %v5031_v53  ;;  %v1607_v63 = vadd.f32 0.4994258, %v1606_v8  ;;  %v1722_v3 = vmul.f32 %v1721_v24, %v4215_v13  ;;  %v1761_v54 = vadd.f32 0.001143296, %v1760_v19 }
 0x205   : > { %v2934_v22 = vpop.eup %2933  ;;  %v4592_v49 = vmul.f32 %v2117_v6, %v5032_v18  ;;  %v1303_v56 = vsel %vm4557_vm5, %v1302_v34, %v1298_v46  ;;  %v1413_v27 = vmul.f32 %v2932_v0, %v1412_v39  ;;  %v1579_v30 = vand.u32 2147483647, %v4571_v11 }
 0x206   : > { %v1304_v15 = vmul.f32 %v1303_v56, %v4298_v58  ;;  %v1451_v2 = vmul.f32 %v2934_v22, %v4563_v9  ;;  %vm4599_vm12 = vcmp.eq.f32.partialorder %v1459_v29, 8.507059e+37  ;;  %v1462_v24 = vor.u32 1.1754944e-38, %v1461_v35  ;;  %v5035_v29 = vld [vmem:[#allocation20_spill] sm:$0xff] }
 0x207   : > { %2409 = vmatmul.f32.gmra.mxu2 %v4592_v49  ;;  %v1414_v19 = vadd.f32 %v2932_v0, %v1413_v27  ;;  %vm1575_vm13 = vweird.f32 %v4571_v11  ;;  %v1581_v55 = vand.u32 2147483648, %v4571_v11  ;;  %v1608_v34 = vmul.f32 %v1607_v63, %v4197_v33 }
 0x208   : > { %v1723_v6 = vadd.f32 0.014752088, %v1722_v3  ;;  %v2936_v39 = vpop.eup %2935  ;;  %v2783_v46 = vclamps-f32 %v1304_v15, 1.0  ;;  %v1452_v58 = vsub.f32 1.0, %v1451_v2  ;;  %vm1456_vm15 = vweird.f32 %v2934_v22  ;;  %2500 = vmatmul.f32.gmra.mxu0 %v5035_v29 }
 0x209   : > { %v1762_v35 = vmul.f32 %v1761_v54, %v4259_v26  ;;  %v1418_v53 = vsel %vm1417_vm14, %v2932_v0, %v1414_v19  ;;  %v1571_v23 = vmul.f32 %v2936_v39, %v4571_v11  ;;  %vm4613_vm0 = vcmp.eq.f32.partialorder %v1579_v30, 8.507059e+37  ;;  %v5038_v30 = vld [vmem:[#allocation13_spill] sm:$0xff]  ;;  %vm1457_vm2 = vmor %vm1455_vm11, %vm1456_vm15 }
 0x20a   : > { %v4617_v33 = vadd.f32 1.0, %v1608_v34  ;;  %v1880_v63 = vmul.f32 3.8918573e-05, %v4315_v16  ;;  %v2118_v3 = vadd.f32 1.0, %v2783_v46  ;;  %v1423_v48 = vsel %vm4578_vm8, %v1422_v1, %v1418_v53  ;;  %v5039_v34 = vld [vmem:[#allocation29_spill] sm:$0xff] }
 0x20b   : > { %v1453_v56 = vmul.f32 %v2934_v22, %v1452_v58  ;;  %v1724_v27 = vmul.f32 %v1723_v6, %v4215_v13  ;;  %v1424_v54 = vmul.f32 %v1423_v48, %v4327_v28  ;;  %v1572_v0 = vsub.f32 1.0, %v1571_v23 }
 0x20c   : > { %v1582_v15 = vor.u32 1.1754944e-38, %v1581_v55  ;;  %2937 = vrcp.f32 %v4617_v33  ;;  %v4626_v2 = vmul.f32 %v2118_v3, %v5038_v30  ;;  %vm1576_vm1 = vweird.f32 %v2936_v39  ;;  %2538 = vmatmul.f32.gmra.mxu1 %v5039_v34 }
 0x20d   : > { %v1454_v19 = vadd.f32 %v2934_v22, %v1453_v56  ;;  %v1920_v46 = vmul.f32 3.8918573e-05, %v4368_v59  ;;  %v2786_v12 = vclamps-f32 %v1424_v54, 1.0  ;;  %v1573_v1 = vmul.f32 %v2936_v39, %v1572_v0  ;;  %vm4643_vm3 = vmor %vm1575_vm13, %vm1576_vm1  ;;  %v5042_v0 = vld [vmem:[#allocation15_spill] sm:$0xff] }
 0x20e   : > { %v1725_v28 = vadd.f32 0.112945676, %v1724_v27  ;;  %v1763_v6 = vadd.f32 0.014752088, %v1762_v35  ;;  %2450 = vmatmul.f32.gmra.mxu3 %v4626_v2  ;;  %v1619_v58 = vand.u32 2147483647, %v4617_v33  ;;  %vm1615_vm5 = vweird.f32 %v4617_v33 }
 0x20f   : > { %v1458_v55 = vsel %vm1457_vm2, %v2934_v22, %v1454_v19  ;;  %v1621_v29 = vand.u32 2147483648, %v4617_v33  ;;  %v1881_v53 = vadd.f32 0.001143296, %v1880_v63  ;;  %v2121_v23 = vadd.f32 1.0, %v2786_v12  ;;  %v2248_v22 = vld [vmem:[#allocation7 + $0x268] sm:$0xff]  ;;  %v2246_v19 = vld [vmem:[#allocation7 + $0x258] sm:$0xff] }
 0x210   : > { %v1463_v3 = vsel %vm4599_vm12, %v1462_v24, %v1458_v55  ;;  %v1574_v48 = vadd.f32 %v2936_v39, %v1573_v1  ;;  %v1726_v56 = vmul.f32 %v1725_v28, %v4215_v13  ;;  %v2280_v27 = vld [vmem:[#allocation7 + $0x368] sm:$0xff]  ;;  %v1764_v63 = vmul.f32 %v1763_v6, %v4259_v26  ;;  %2503 = vmatmul.f32.gmra.mxu0 %v4271_v17 }
 0x211   : > { %v1464_v9 = vmul.f32 %v1463_v3, %v4391_v14  ;;  %v1882_v54 = vmul.f32 %v1881_v53, %v4315_v16  ;;  %v1921_v8 = vadd.f32 0.001143296, %v1920_v46  ;;  %v4651_v30 = vmul.f32 %v2121_v23, %v5042_v0  ;;  %2560 = vmatpush.msrb.mxu2 %v2248_v22  ;;  %2601 = vmatpush.msrb.mxu3 %v2280_v27 }
 0x212   : > { %v2938_v24 = vpop.eup %2937  ;;  %v1578_v14 = vsel %vm4643_vm3, %v2936_v39, %v1574_v48  ;;  %v1727_v11 = vadd.f32 0.4994258, %v1726_v56  ;;  %v2040_v34 = vmul.f32 3.8918573e-05, %v4400_v44  ;;  %v1765_v39 = vadd.f32 0.112945676, %v1764_v63 }
 0x213   : > { %v2787_v12 = vclamps-f32 %v1464_v9, 1.0  ;;  %v1583_v1 = vsel %vm4613_vm0, %v1582_v15, %v1578_v14  ;;  %v1611_v17 = vmul.f32 %v2938_v24, %v4617_v33  ;;  %vm1616_vm4 = vweird.f32 %v2938_v24  ;;  %2412 = vmatmul.f32.gmra.mxu2 %v4651_v30 }
 0x214   : > { %v1584_v46 = vmul.f32 %v1583_v1, %v4428_v31  ;;  %v1728_v28 = vmul.f32 %v1727_v11, %v4215_v13  ;;  %v1883_v6 = vadd.f32 0.014752088, %v1882_v54  ;;  %2561 = vmatpush.msrb.mxu2 %v2246_v19  ;;  %2541 = vmatmul.f32.gmra.mxu1 %v4262_v40  ;;  %v1922_v23 = vmul.f32 %v1921_v8, %v4368_v59  ;;  %v5043_v31 = vld [vmem:[#allocation16_spill] sm:$0xff]  ;;  %v2278_v54 = vld [vmem:[#allocation7 + $0x358] sm:$0xff]  ;;  %vm1617_vm6 = vmor %vm1615_vm5, %vm1616_vm4 }
 0x215   : > { %v2122_v55 = vadd.f32 1.0, %v2787_v12  ;;  %v1612_v53 = vsub.f32 1.0, %v1611_v17  ;;  %v2041_v18 = vadd.f32 0.001143296, %v2040_v34  ;;  %v1766_v48 = vmul.f32 %v1765_v39, %v4259_v26  ;;  %2602 = vmatpush.msrb.mxu3 %v2278_v54  ;;  %v2242_v39 = vld [vmem:[#allocation7 + $0x238] sm:$0xff] }
 0x216   : > { %v2790_v15 = vclamps-f32 %v1584_v46, 1.0  ;;  %v4664_v3 = vadd.f32 1.0, %v1728_v28  ;;  %v1884_v56 = vmul.f32 %v1883_v6, %v4315_v16  ;;  %v1923_v35 = vadd.f32 0.014752088, %v1922_v23  ;;  %v2276_v28 = vld [vmem:[#allocation7 + $0x348] sm:$0xff] }
 0x217   : > { %v4669_v9 = vmul.f32 %v2122_v55, %v5043_v31  ;;  %v1613_v13 = vmul.f32 %v2938_v24, %v1612_v53  ;;  %v2042_v22 = vmul.f32 %v2041_v18, %v4400_v44  ;;  %v2035_v40 = vmul.f32 %v4526_v57, %v4400_v44  ;;  %2603 = vmatpush.msrb.mxu3 %v2276_v28 }
 0x218   : > { %v2073_v27 = vmul.f32 %v4485_v37, %v4421_v43  ;;  %v2125_v63 = vadd.f32 1.0, %v2790_v15  ;;  %2939 = vrcp.f32 %v4664_v3  ;;  %v1767_v0 = vadd.f32 0.4994258, %v1766_v48  ;;  %2506 = vmatmul.f32.gmra.mxu0 %v4409_v62 }
 0x219   : > { %2453 = vmatmul.f32.gmra.mxu3 %v4669_v9  ;;  %v1614_v8 = vadd.f32 %v2938_v24, %v1613_v13  ;;  %v1885_v14 = vadd.f32 0.112945676, %v1884_v56  ;;  %v1622_v57 = vor.u32 1.1754944e-38, %v1621_v29  ;;  %v1924_v37 = vmul.f32 %v1923_v35, %v4368_v59  ;;  %v2274_v56 = vld [vmem:[#allocation7 + $0x338] sm:$0xff] }
 0x21a   : > { %v4681_v11 = vmul.f32 %v2125_v63, %v4252_v41  ;;  %v2043_v19 = vadd.f32 0.014752088, %v2042_v22  ;;  %vm1620_vm7 = vcmp.eq.f32.partialorder %v1619_v58, 8.507059e+37  ;;  %v1768_v12 = vmul.f32 %v1767_v0, %v4259_v26  ;;  %v2244_v26 = vld [vmem:[#allocation7 + $0x248] sm:$0xff]  ;;  %2604 = vmatpush.msrb.mxu3 %v2274_v56  ;;  %v5044_v0 = vld [vmem:[#allocation23_spill] sm:$0xff] }
 0x21b   : > { %v1618_v34 = vsel %vm1617_vm6, %v2938_v24, %v1614_v8  ;;  %v1886_v1 = vmul.f32 %v1885_v14, %v4315_v16  ;;  %v1925_v41 = vadd.f32 0.112945676, %v1924_v37  ;;  %v2080_v29 = vmul.f32 3.8918573e-05, %v4421_v43  ;;  %2562 = vmatpush.msrb.mxu2 %v2244_v26 }
 0x21c   : > { %2415 = vmatmul.f32.gmra.mxu2 %v4681_v11  ;;  %v1623_v62 = vsel %vm1620_vm7, %v1622_v57, %v1618_v34  ;;  %v2044_v17 = vmul.f32 %v2043_v19, %v4400_v44  ;;  %v4694_v46 = vmul.f32 %v4460_v42, %v4233_v51  ;;  %v4697_v33 = vadd.f32 1.0, %v1768_v12  ;;  %2544 = vmatmul.f32.gmra.mxu1 %v4357_v60  ;;  %v2240_v12 = vld [vmem:[#allocation7 + $0x228] sm:$0xff] }
 0x21d   : > { %v1624_v24 = vmul.f32 %v1623_v62, %v4438_v4  ;;  %v1887_v58 = vadd.f32 0.4994258, %v1886_v1  ;;  %v1878_v55 = vadd.f32 1.1283791, %v4514_v36  ;;  %v1926_v53 = vmul.f32 %v1925_v41, %v4368_v59  ;;  %2563 = vmatpush.msrb.mxu2 %v2242_v39  ;;  %v2272_v1 = vld [vmem:[#allocation7 + $0x328] sm:$0xff] }
 0x21e   : > { %v2940_v6 = vpop.eup %2939  ;;  %v2045_v23 = vadd.f32 0.112945676, %v2044_v17  ;;  %v2081_v51 = vadd.f32 0.001143296, %v2080_v29  ;;  %v2074_v42 = vadd.f32 0.05243302, %v2073_v27  ;;  %2941 = vrcp.f32 %v4697_v33  ;;  %2605 = vmatpush.msrb.mxu3 %v2272_v1 }
 0x21f   : > { %v2791_v18 = vclamps-f32 %v1624_v24, 1.0  ;;  %v1731_v4 = vmul.f32 %v2940_v6, %v4664_v3  ;;  %v1917_v15 = vmul.f32 %v4520_v21, %v4368_v59  ;;  %v2036_v48 = vadd.f32 0.18741608, %v2035_v40  ;;  %2564 = vmatpush.msrb.mxu2 %v2240_v12  ;;  %v2268_v12 = vld [vmem:[#allocation7 + $0x308] sm:$0xff] }
 0x220   : > { %v1739_v60 = vand.u32 2147483647, %v4664_v3  ;;  %v1888_v36 = vmul.f32 %v1887_v58, %v4315_v16  ;;  %v1927_v35 = vadd.f32 0.4994258, %v1926_v53  ;;  %v2046_v22 = vmul.f32 %v2045_v23, %v4400_v44 }
 0x221   : > { %v2126_v31 = vadd.f32 1.0, %v2791_v18  ;;  %v1732_v13 = vsub.f32 1.0, %v1731_v4  ;;  %vm1736_vm8 = vweird.f32 %v2940_v6  ;;  %v1741_v27 = vand.u32 2147483648, %v4664_v3 }
 0x222   : > { %v4710_v63 = vadd.f32 1.0, %v1888_v36  ;;  %v2082_v21 = vmul.f32 %v2081_v51, %v4421_v43  ;;  %v1928_v16 = vmul.f32 %v1927_v35, %v4368_v59  ;;  %v2047_v8 = vadd.f32 0.4994258, %v2046_v22  ;;  %v2238_v59 = vld [vmem:[#allocation7 + $0x218] sm:$0xff] }
 0x223   : > { %v4714_v40 = vmul.f32 %v2126_v31, %v4382_v32  ;;  %v1733_v54 = vmul.f32 %v2940_v6, %v1732_v13  ;;  %v4718_v14 = vmul.f32 %v1878_v55, %v5044_v0  ;;  %v1918_v57 = vadd.f32 1.1283791, %v1917_v15  ;;  %2565 = vmatpush.msrb.mxu2 %v2238_v59 }
 0x224   : > { %vm1735_vm9 = vweird.f32 %v4664_v3  ;;  %2943 = vrcp.f32 %v4710_v63  ;;  %v2942_v37 = vpop.eup %2941  ;;  %v4723_v34 = vadd.f32 1.0, %v1928_v16  ;;  %v2048_v32 = vmul.f32 %v2047_v8, %v4400_v44  ;;  %2547 = vmatmul.f32.gmra.mxu1 %v4455_v10 }
 0x225   : > { %2456 = vmatmul.f32.gmra.mxu3 %v4714_v40  ;;  %v1734_v19 = vadd.f32 %v2940_v6, %v1733_v54  ;;  %v2083_v62 = vadd.f32 0.014752088, %v2082_v21  ;;  %v2037_v41 = vmul.f32 %v2036_v48, %v4400_v44  ;;  %v4729_v3 = vmul.f32 %v2074_v42, %v4421_v43  ;;  %vm1737_vm10 = vmor %vm1735_vm9, %vm1736_vm8 }
 0x226   : > { %v1742_v17 = vor.u32 1.1754944e-38, %v1741_v27  ;;  %v1771_v29 = vmul.f32 %v2942_v37, %v4697_v33  ;;  %vm1740_vm11 = vcmp.eq.f32.partialorder %v1739_v60, 8.507059e+37  ;;  %v1779_v58 = vand.u32 2147483647, %v4697_v33 }
 0x227   : > { %v1738_v24 = vsel %vm1737_vm10, %v2940_v6, %v1734_v19  ;;  %2945 = vrcp.f32 %v4723_v34  ;;  %v1781_v44 = vand.u32 2147483648, %v4697_v33  ;;  %v4736_v28 = vadd.f32 1.0, %v2048_v32  ;;  %v2236_v32 = vld [vmem:[#allocation7 + $0x208] sm:$0xff] }
 0x228   : > { %v1743_v26 = vsel %vm1740_vm11, %v1742_v17, %v1738_v24  ;;  %v1772_v10 = vsub.f32 1.0, %v1771_v29  ;;  %v4739_v39 = vmul.f32 %v1918_v57, %v4344_v25  ;;  %v1899_v53 = vand.u32 2147483647, %v4710_v63  ;;  %2566 = vmatpush.msrb.mxu2 %v2236_v32 }
 0x229   : > { %v1744_v55 = vmul.f32 %v1743_v26, %v4443_v47  ;;  %v2084_v6 = vmul.f32 %v2083_v62, %v4421_v43  ;;  %v4744_v51 = vadd.f32 1.1283791, %v2037_v41  ;;  %vm1776_vm12 = vweird.f32 %v2942_v37 }
 0x22a   : > { %v2944_v23 = vpop.eup %2943  ;;  %v1773_v42 = vmul.f32 %v2942_v37, %v1772_v10  ;;  %2947 = vrcp.f32 %v4736_v28  ;;  %vm1775_vm13 = vweird.f32 %v4697_v33  ;;  %vm4748_vm14 = vcmp.eq.f32.partialorder %v1779_v58, 8.507059e+37 }
 0x22b   : > { %v2794_v18 = vclamps-f32 %v1744_v55, 1.0  ;;  %v1891_v25 = vmul.f32 %v2944_v23, %v4710_v63  ;;  %v1782_v15 = vor.u32 1.1754944e-38, %v1781_v44  ;;  %v1901_v48 = vand.u32 2147483648, %v4710_v63  ;;  %vm1777_vm15 = vmor %vm1775_vm13, %vm1776_vm12 }
 0x22c   : > { %v1774_v47 = vadd.f32 %v2942_v37, %v1773_v42  ;;  %v2085_v60 = vadd.f32 0.112945676, %v2084_v6  ;;  %vm1895_vm0 = vweird.f32 %v4710_v63  ;;  %vm4755_vm1 = vcmp.eq.f32.partialorder %v1899_v53, 8.507059e+37 }
 0x22d   : > { %v2946_v36 = vpop.eup %2945  ;;  %v2129_v56 = vadd.f32 1.0, %v2794_v18  ;;  %v1892_v31 = vsub.f32 1.0, %v1891_v25  ;;  %vm1896_vm2 = vweird.f32 %v2944_v23  ;;  %v1941_v22 = vand.u32 2147483648, %v4723_v34 }
 0x22e   : > { %v1778_v33 = vsel %vm1777_vm15, %v2942_v37, %v1774_v47  ;;  %v1931_v35 = vmul.f32 %v2946_v36, %v4723_v34  ;;  %v2086_v16 = vmul.f32 %v2085_v60, %v4421_v43  ;;  %v1902_v57 = vor.u32 1.1754944e-38, %v1901_v48  ;;  %v2270_v37 = vld [vmem:[#allocation7 + $0x318] sm:$0xff]  ;;  %vm1897_vm4 = vmor %vm1895_vm0, %vm1896_vm2 }
 0x22f   : > { %v4762_v27 = vmul.f32 %v2129_v56, %v4425_v52  ;;  %v1783_v21 = vsel %vm4748_vm14, %v1782_v15, %v1778_v33  ;;  %v1893_v54 = vmul.f32 %v2944_v23, %v1892_v31  ;;  %vm1935_vm3 = vweird.f32 %v4723_v34  ;;  %2606 = vmatpush.msrb.mxu3 %v2270_v37  ;;  %v5049_v15 = vld [vmem:[#allocation22_spill] sm:$0xff] }
 0x230   : > { %v2948_v8 = vpop.eup %2947  ;;  %v1784_v0 = vmul.f32 %v1783_v21, %v4694_v46  ;;  %v1932_v19 = vsub.f32 1.0, %v1931_v35  ;;  %v1939_v1 = vand.u32 2147483647, %v4723_v34  ;;  %v2087_v62 = vadd.f32 0.4994258, %v2086_v16 }
 0x231   : > { %2418 = vmatmul.f32.gmra.mxu2 %v4762_v27  ;;  %v1894_v52 = vadd.f32 %v2944_v23, %v1893_v54  ;;  %v2051_v59 = vmul.f32 %v2948_v8, %v4736_v28  ;;  %vm1936_vm5 = vweird.f32 %v2946_v36  ;;  %v1942_v17 = vor.u32 1.1754944e-38, %v1941_v22  ;;  %2607 = vmatpush.msrb.mxu3 %v2268_v12 }
 0x232   : > { %v2795_v41 = vclamps-f32 %v1784_v0, 1.0  ;;  %v1933_v46 = vmul.f32 %v2946_v36, %v1932_v19  ;;  %v2059_v58 = vand.u32 2147483647, %v4736_v28  ;;  %v2088_v26 = vmul.f32 %v2087_v62, %v4421_v43  ;;  %vm1937_vm6 = vmor %vm1935_vm3, %vm1936_vm5 }
 0x233   : > { %v1898_v29 = vsel %vm1897_vm4, %v2944_v23, %v1894_v52  ;;  %v2052_v24 = vsub.f32 1.0, %v2051_v59  ;;  %v2061_v53 = vand.u32 2147483648, %v4736_v28  ;;  %vm2056_vm7 = vweird.f32 %v2948_v8 }
 0x234   : > { %v2130_v10 = vadd.f32 1.0, %v2795_v41  ;;  %v1903_v44 = vsel %vm4755_vm1, %v1902_v57, %v1898_v29  ;;  %v1934_v55 = vadd.f32 %v2946_v36, %v1933_v46  ;;  %v2089_v23 = vadd.f32 1.0, %v2088_v26  ;;  %v5050_v46 = vld [vmem:[#allocation12_spill] sm:$0xff]  ;;  %v5051_v29 = vld [vmem:[#allocation25_spill] sm:$0xff] }
 0x235   : > { %v1904_v63 = vmul.f32 %v1903_v44, %v4718_v14  ;;  %v2053_v6 = vmul.f32 %v2948_v8, %v2052_v24  ;;  %vm1940_vm8 = vcmp.eq.f32.partialorder %v1939_v1, 8.507059e+37  ;;  %vm2055_vm9 = vweird.f32 %v4736_v28  ;;  %v5052_v24 = vld [vmem:[#allocation24_spill] sm:$0xff] }
 0x236   : > { %v4784_v42 = vmul.f32 %v2130_v10, %v4433_v61  ;;  %v1938_v18 = vsel %vm1937_vm6, %v2946_v36, %v1934_v55  ;;  %2949 = vrcp.f32 %v2089_v23  ;;  %v789_v48 = vmul.f32 0.5, %v5049_v15  ;;  %vm2057_vm10 = vmor %vm2055_vm9, %vm2056_vm7 }
 0x237   : > { %v2798_v4 = vclamps-f32 %v1904_v63, 1.0  ;;  %v1943_v25 = vsel %vm1940_vm8, %v1942_v17, %v1938_v18  ;;  %v2054_v47 = vadd.f32 %v2948_v8, %v2053_v6  ;;  %v2062_v34 = vor.u32 1.1754944e-38, %v2061_v53 }
 0x238   : > { %2459 = vmatmul.f32.gmra.mxu3 %v4784_v42  ;;  %v1944_v14 = vmul.f32 %v1943_v25, %v4739_v39  ;;  %v2039_v61 = vmul.f32 %v4744_v51, %v4375_v45  ;;  %vm2060_vm11 = vcmp.eq.f32.partialorder %v2059_v58, 8.507059e+37  ;;  %v2076_v28 = vadd.f32 0.18741608, %v4729_v3  ;;  %v2363_v58 = vpop.f32.mrf.mxu1 }
 0x239   : > { %v2133_v60 = vadd.f32 1.0, %v2798_v4  ;;  %v2058_v36 = vsel %vm2057_vm10, %v2948_v8, %v2054_v47  ;;  %v790_v35 = vmul.f32 0.5, %v4336_v5  ;;  %v793_v16 = vmul.f32 0.5, %v4352_v50 }
 0x23a   : > { %v2799_v56 = vclamps-f32 %v1944_v14, 1.0  ;;  %v2063_v31 = vsel %vm2060_vm11, %v2062_v34, %v2058_v36  ;;  %v2077_v54 = vmul.f32 %v2076_v28, %v4421_v43  ;;  %v2101_v57 = vand.u32 2147483648, %v2089_v23 }
 0x23b   : > { %v4793_v13 = vmul.f32 %v2133_v60, %v789_v48  ;;  %v2064_v33 = vmul.f32 %v2063_v31, %v2039_v61  ;;  %v2099_v5 = vand.u32 2147483647, %v2089_v23  ;;  %vm2095_vm13 = vweird.f32 %v2089_v23 }
 0x23c   : > { %v2134_v22 = vadd.f32 1.0, %v2799_v56  ;;  %v2950_v21 = vpop.eup %2949  ;;  %v2078_v19 = vadd.f32 1.1283791, %v2077_v54  ;;  %v2102_v12 = vor.u32 1.1754944e-38, %v2101_v57  ;;  %v794_v62 = vmul.f32 0.5, %v4377_v20 }
 0x23d   : > { %2421 = vmatmul.f32.gmra.mxu2 %v4793_v13  ;;  %v2802_v39 = vclamps-f32 %v2064_v33, 1.0  ;;  %v2091_v51 = vmul.f32 %v2950_v21, %v2089_v23  ;;  %vm2096_vm12 = vweird.f32 %v2950_v21  ;;  %vm2100_vm15 = vcmp.eq.f32.partialorder %v2099_v5, 8.507059e+37  ;;  %v4810_v20 = vld [vmem:[%s4899_s4] sm:$0x3] }
 0x23e   : > { %v2166_v45 = vmul.f32 %v2134_v22, %v790_v35  ;;  %vm2097_vm14 = vmor %vm2095_vm13, %vm2096_vm12  ;;  %v2079_v43 = vmul.f32 %v2078_v19, %v4394_v38  ;;  %v4814_v38 = vperm.slane %v4810_v20, 0 }
 0x23f   : > { %v2137_v8 = vadd.f32 1.0, %v2802_v39  ;;  %v2092_v3 = vsub.f32 1.0, %v2091_v51 }
 0x240   : > { %2462 = vmatmul.f32.gmra.mxu3 %v2166_v45  ;;  %v2366_v53 = vpop.f32.mrf.mxu1 }
 0x241   : > { %v2169_v0 = vmul.f32 %v2137_v8, %v793_v16  ;;  %v2093_v37 = vmul.f32 %v2950_v21, %v2092_v3 }
 0x243   : > { %v2094_v32 = vadd.f32 %v2950_v21, %v2093_v37 }
 0x245   : > { %2424 = vmatmul.f32.gmra.mxu2 %v2169_v0  ;;  %v2098_v52 = vsel %vm2097_vm14, %v2950_v21, %v2094_v32 }
 0x246   : > { %v2103_v1 = vsel %vm2100_vm15, %v2102_v12, %v2098_v52 }
 0x247   : > { %v2104_v50 = vmul.f32 %v2103_v1, %v2079_v43 }
 0x248   : > { %v2369_v4 = vpop.f32.mrf.mxu1 }
 0x249   : > { %v2803_v59 = vclamps-f32 %v2104_v50, 1.0 }
 0x24a   : > { %v2445_v44 = vpop.f32.mrf.mxu3 }
 0x24b   : > { %v2138_v41 = vadd.f32 1.0, %v2803_v59 }
 0x24d   : > { %2567 = vmatmul.f32.vlgmr.msrb.gmra.mxu2 %v5050_v46  ;;  %v2170_v17 = vmul.f32 %v2138_v41, %v794_v62 }
 0x24f   : > { %2465 = vmatmul.f32.gmra.mxu3 %v2170_v17 }
 0x250   : > { %v2372_v61 = vpop.f32.mrf.mxu1 }
 0x255   : > { %2570 = vmatmul.f32.gmra.mxu2 %v4503_v7  ;;  %v2322_v7 = vpop.f32.mrf.mxu0 }
 0x256   : > { %v2323_v26 = vadd.f32 %v2322_v7, %v4814_v38 }
 0x257   : > { %2608 = vmatmul.f32.vlgmr.msrb.gmra.mxu3 %v5051_v29 }
 0x258   : > { %v2375_v33 = vpop.f32.mrf.mxu1 }
 0x25d   : > { %2573 = vmatmul.f32.gmra.mxu2 %v4592_v49  ;;  %v2364_v49 = vadd.f32 %v2363_v58, %v2323_v26 }
 0x25f   : > { %2611 = vmatmul.f32.gmra.mxu3 %v5052_v24 }
 0x260   : > { %v2378_v51 = vpop.f32.mrf.mxu1 }
 0x265   : > { %2576 = vmatmul.f32.gmra.mxu2 %v4651_v30  ;;  %v2404_v30 = vpop.f32.mrf.mxu2 }
 0x266   : > { %v2405_v10 = vadd.f32 %v2404_v30, %v2364_v49  ;;  %v4842_v30 = vperm.slane %v4810_v20, 1 }
 0x267   : > { %2614 = vmatmul.f32.gmra.mxu3 %v4626_v2  ;;  %v2325_v2 = vpop.f32.mrf.mxu0 }
 0x268   : > { %v2446_v55 = vadd.f32 %v2445_v44, %v2405_v10  ;;  %v2381_v3 = vpop.f32.mrf.mxu1 }
 0x26a   : > { %2633 = vst [vmem:[%s4822_s12] sm:$0xff] %v2446_v55 }
 0x26d   : > { %2579 = vmatmul.f32.gmra.mxu2 %v4681_v11  ;;  %v2326_v11 = vadd.f32 %v2325_v2, %v4814_v38 }
 0x26f   : > { %2617 = vmatmul.f32.gmra.mxu3 %v4669_v9  ;;  %v2367_v9 = vadd.f32 %v2366_v53, %v2326_v11  ;;  %v2328_v18 = vpop.f32.mrf.mxu0 }
 0x270   : > { %v2384_v43 = vpop.f32.mrf.mxu1 }
 0x275   : > { %2582 = vmatmul.f32.gmra.mxu2 %v4762_v27  ;;  %v2407_v63 = vpop.f32.mrf.mxu2 }
 0x276   : > { %v2408_v6 = vadd.f32 %v2407_v63, %v2367_v9 }
 0x277   : > { %2620 = vmatmul.f32.gmra.mxu3 %v4714_v40  ;;  %v2329_v40 = vadd.f32 %v2328_v18, %v4814_v38  ;;  %v2331_v14 = vpop.f32.mrf.mxu0 }
 0x279   : > { %v2370_v47 = vadd.f32 %v2369_v4, %v2329_v40 }
 0x27d   : > { %2585 = vmatmul.f32.gmra.mxu2 %v4793_v13 }
 0x27e   : > { %v2448_v23 = vpop.f32.mrf.mxu3 }
 0x27f   : > { %2623 = vmatmul.f32.gmra.mxu3 %v4784_v42  ;;  %v2449_v27 = vadd.f32 %v2448_v23, %v2408_v6  ;;  %v2332_v42 = vadd.f32 %v2331_v14, %v4814_v38  ;;  %v2334_v31 = vpop.f32.mrf.mxu0 }
 0x280   : > { %v2335_v35 = vadd.f32 %v2334_v31, %v4814_v38 }
 0x281   : > { %2635 = vst [vmem:[%s4822_s12 + $0x10] sm:$0xff] %v2449_v27  ;;  %v2373_v36 = vadd.f32 %v2372_v61, %v2332_v42 }
 0x282   : > { %v2376_v21 = vadd.f32 %v2375_v33, %v2335_v35 }
 0x285   : > { %2588 = vmatmul.f32.gmra.mxu2 %v2169_v0 }
 0x287   : > { %2626 = vmatmul.f32.gmra.mxu3 %v2166_v45  ;;  %v2337_v39 = vpop.f32.mrf.mxu0 }
 0x288   : > { %v2338_v0 = vadd.f32 %v2337_v39, %v4814_v38 }
 0x28a   : > { %v2410_v25 = vpop.f32.mrf.mxu2  ;;  %v2379_v19 = vadd.f32 %v2378_v51, %v2338_v0 }
 0x28b   : > { %v2411_v15 = vadd.f32 %v2410_v25, %v2370_v47 }
 0x28f   : > { %2629 = vmatmul.f32.gmra.mxu3 %v2170_v17  ;;  %v2340_v8 = vpop.f32.mrf.mxu0  ;;  %v2527_v17 = vpop.f32.mrf.mxu1 }
 0x290   : > { %v2341_v52 = vadd.f32 %v2340_v8, %v4814_v38 }
 0x291   : > { %v2451_v48 = vpop.f32.mrf.mxu3 }
 0x292   : > { %v2452_v34 = vadd.f32 %v2451_v48, %v2411_v15  ;;  %v2382_v1 = vadd.f32 %v2381_v3, %v2341_v52 }
 0x294   : > { %2637 = vst [vmem:[%s4822_s12 + $0x20] sm:$0xff] %v2452_v34 }
 0x296   : > { %v2413_v60 = vpop.f32.mrf.mxu2 }
 0x297   : > { %v2414_v28 = vadd.f32 %v2413_v60, %v2373_v36  ;;  %v2343_v5 = vpop.f32.mrf.mxu0  ;;  %v2530_v49 = vpop.f32.mrf.mxu1 }
 0x298   : > { %v2344_v24 = vadd.f32 %v2343_v5, %v4814_v38 }
 0x29a   : > { %v2385_v58 = vadd.f32 %v2384_v43, %v2344_v24 }
 0x29c   : > { %v2454_v56 = vpop.f32.mrf.mxu3 }
 0x29d   : > { %v2455_v13 = vadd.f32 %v2454_v56, %v2414_v28 }
 0x29f   : > { %2639 = vst [vmem:[%s4822_s12 + $0x30] sm:$0xff] %v2455_v13  ;;  %v2416_v22 = vpop.f32.mrf.mxu2  ;;  %v2486_v46 = vpop.f32.mrf.mxu0 }
 0x2a0   : > { %v2417_v54 = vadd.f32 %v2416_v22, %v2376_v21  ;;  %v2487_v2 = vadd.f32 %v2486_v46, %v4842_v30  ;;  %v2533_v38 = vpop.f32.mrf.mxu1 }
 0x2a2   : > { %v2528_v53 = vadd.f32 %v2527_v17, %v2487_v2 }
 0x2a7   : > { %v2489_v7 = vpop.f32.mrf.mxu0 }
 0x2a8   : > { %v2457_v45 = vpop.f32.mrf.mxu3  ;;  %v2490_v27 = vadd.f32 %v2489_v7, %v4842_v30  ;;  %v2536_v15 = vpop.f32.mrf.mxu1 }
 0x2a9   : > { %v2458_v16 = vadd.f32 %v2457_v45, %v2417_v54 }
 0x2aa   : > { %v2531_v18 = vadd.f32 %v2530_v49, %v2490_v27 }
 0x2ab   : > { %2641 = vst [vmem:[%s4822_s12 + $0x40] sm:$0xff] %v2458_v16 }
 0x2af   : > { %v2492_v63 = vpop.f32.mrf.mxu0 }
 0x2b0   : > { %v2493_v48 = vadd.f32 %v2492_v63, %v4842_v30  ;;  %v2539_v56 = vpop.f32.mrf.mxu1 }
 0x2b2   : > { %v2534_v14 = vadd.f32 %v2533_v38, %v2493_v48 }
 0x2b4   : > { %v2419_v57 = vpop.f32.mrf.mxu2 }
 0x2b5   : > { %v2420_v37 = vadd.f32 %v2419_v57, %v2379_v19 }
 0x2b7   : > { %v2495_v40 = vpop.f32.mrf.mxu0 }
 0x2b8   : > { %v2496_v28 = vadd.f32 %v2495_v40, %v4842_v30  ;;  %v2542_v45 = vpop.f32.mrf.mxu1 }
 0x2ba   : > { %v2537_v31 = vadd.f32 %v2536_v15, %v2496_v28 }
 0x2bb   : > { %v2460_v32 = vpop.f32.mrf.mxu3 }
 0x2bc   : > { %v2461_v12 = vadd.f32 %v2460_v32, %v2420_v37 }
 0x2be   : > { %2643 = vst [vmem:[%s4822_s12 + $0x50] sm:$0xff] %v2461_v12 }
 0x2bf   : > { %v2498_v36 = vpop.f32.mrf.mxu0 }
 0x2c0   : > { %v2422_v50 = vpop.f32.mrf.mxu2  ;;  %v2499_v21 = vadd.f32 %v2498_v36, %v4842_v30  ;;  %v2545_v5 = vpop.f32.mrf.mxu1 }
 0x2c1   : > { %v2423_v59 = vadd.f32 %v2422_v50, %v2382_v1 }
 0x2c2   : > { %v2540_v54 = vadd.f32 %v2539_v56, %v2499_v21 }
 0x2c3   : > { %v2463_v62 = vpop.f32.mrf.mxu3 }
 0x2c4   : > { %v2464_v41 = vadd.f32 %v2463_v62, %v2423_v59 }
 0x2c6   : > { %2645 = vst [vmem:[%s4822_s12 + $0x60] sm:$0xff] %v2464_v41 }
 0x2c7   : > { %v2501_v39 = vpop.f32.mrf.mxu0 }
 0x2c8   : > { %v2425_v29 = vpop.f32.mrf.mxu2  ;;  %v2502_v0 = vadd.f32 %v2501_v39, %v4842_v30  ;;  %v2548_v46 = vpop.f32.mrf.mxu1 }
 0x2c9   : > { %v2426_v10 = vadd.f32 %v2425_v29, %v2385_v58 }
 0x2ca   : > { %v2543_v57 = vadd.f32 %v2542_v45, %v2502_v0 }
 0x2cf   : > { %v2504_v19 = vpop.f32.mrf.mxu0 }
 0x2d0   : > { %v2568_v26 = vpop.f32.mrf.mxu2  ;;  %v2505_v52 = vadd.f32 %v2504_v19, %v4842_v30 }
 0x2d1   : > { %v2569_v9 = vadd.f32 %v2568_v26, %v2528_v53 }
 0x2d2   : > { %v2466_v44 = vpop.f32.mrf.mxu3  ;;  %v2546_v1 = vadd.f32 %v2545_v5, %v2505_v52 }
 0x2d3   : > { %v2467_v55 = vadd.f32 %v2466_v44, %v2426_v10 }
 0x2d5   : > { %2647 = vst [vmem:[%s4822_s12 + $0x70] sm:$0xff] %v2467_v55 }
 0x2d7   : > { %v2507_v59 = vpop.f32.mrf.mxu0 }
 0x2d8   : > { %v2571_v11 = vpop.f32.mrf.mxu2  ;;  %v2508_v17 = vadd.f32 %v2507_v59, %v4842_v30 }
 0x2d9   : > { %v2572_v4 = vadd.f32 %v2571_v11, %v2531_v18 }
 0x2da   : > { %v2609_v6 = vpop.f32.mrf.mxu3  ;;  %v2549_v24 = vadd.f32 %v2548_v46, %v2508_v17 }
 0x2db   : > { %v2610_v23 = vadd.f32 %v2609_v6, %v2569_v9 }
 0x2dd   : > { %2634 = vst [vmem:[%s4822_s12 + $0x8] sm:$0xff] %v2610_v23 }
 0x2e0   : > { %v2574_v20 = vpop.f32.mrf.mxu2 }
 0x2e1   : > { %v2575_v61 = vadd.f32 %v2574_v20, %v2534_v14 }
 0x2e2   : > { %v2612_v25 = vpop.f32.mrf.mxu3 }
 0x2e3   : > { %v2613_v47 = vadd.f32 %v2612_v25, %v2572_v4 }
 0x2e5   : > { %2636 = vst [vmem:[%s4822_s12 + $0x18] sm:$0xff] %v2613_v47 }
 0x2e8   : > { %v2577_v34 = vpop.f32.mrf.mxu2 }
 0x2e9   : > { %v2578_v33 = vadd.f32 %v2577_v34, %v2537_v31 }
 0x2ea   : > { %v2615_v42 = vpop.f32.mrf.mxu3 }
 0x2eb   : > { %v2616_v60 = vadd.f32 %v2615_v42, %v2575_v61 }
 0x2ed   : > { %2638 = vst [vmem:[%s4822_s12 + $0x28] sm:$0xff] %v2616_v60 }
 0x2f0   : > { %v2580_v13 = vpop.f32.mrf.mxu2 }
 0x2f1   : > { %v2581_v51 = vadd.f32 %v2580_v13, %v2540_v54 }
 0x2f2   : > { %v2618_v35 = vpop.f32.mrf.mxu3 }
 0x2f3   : > { %v2619_v22 = vadd.f32 %v2618_v35, %v2578_v33 }
 0x2f5   : > { %2640 = vst [vmem:[%s4822_s12 + $0x38] sm:$0xff] %v2619_v22 }
 0x2f8   : > { %v2583_v8 = vpop.f32.mrf.mxu2 }
 0x2f9   : > { %v2584_v37 = vadd.f32 %v2583_v8, %v2543_v57 }
 0x2fa   : > { %v2621_v16 = vpop.f32.mrf.mxu3 }
 0x2fb   : > { %v2622_v3 = vadd.f32 %v2621_v16, %v2581_v51 }
 0x2fd   : > { %2642 = vst [vmem:[%s4822_s12 + $0x48] sm:$0xff] %v2622_v3 }
 0x300   : > { %v2586_v43 = vpop.f32.mrf.mxu2 }
 0x301   : > { %v2587_v50 = vadd.f32 %v2586_v43, %v2546_v1 }
 0x302   : > { %v2624_v32 = vpop.f32.mrf.mxu3 }
 0x303   : > { %v2625_v12 = vadd.f32 %v2624_v32, %v2584_v37 }
 0x305   : > { %2644 = vst [vmem:[%s4822_s12 + $0x58] sm:$0xff] %v2625_v12 }
 0x308   : > { %v2589_v29 = vpop.f32.mrf.mxu2 }
 0x309   : > { %v2590_v7 = vadd.f32 %v2589_v29, %v2549_v24 }
 0x30a   : > { %v2627_v62 = vpop.f32.mrf.mxu3 }
 0x30b   : > { %v2628_v41 = vadd.f32 %v2627_v62, %v2587_v50 }
 0x30d   : > { %2646 = vst [vmem:[%s4822_s12 + $0x68] sm:$0xff] %v2628_v41 }
 0x312   : > { %v2630_v58 = vpop.f32.mrf.mxu3 }
 0x313   : > { %v2631_v26 = vadd.f32 %v2630_v58, %v2590_v7 }
 0x315   : > { %2648 = vst [vmem:[%s4822_s12 + $0x78] sm:$0xff] %v2631_v26 }
 0x316   : > { %3068 = shalt.err (!%p3065_p10)
}
 0x317   : > { %s3119_s10 = smov 256   ;;  %s3120_s11 = smov 16  }
 0x318   : > { %2824 = dma.vmem_to_hbm [thread:$0]  (%p3223_p5), %s2664_s8, 2048, %s2666_s9, %s2650_s22, %s3119_s10, %s3119_s10, %s3120_s11  }
 0x319 PF: > { %s2680_s12 = sand.u32 1, %s3099_s18   ;;  %p5053_p12 = scmp.ge.s32.totalorder %s3111_s21, 2 }
 0x31a   : > { %s2681_s13 = scalar_lea.sflag [#allocation4], %s2680_s12 }
 0x31b   : > { %p2838_p13 = pnand %p5053_p12, %p3186_p6 }
 0x31d   : > { %p2839_p0 = pneg %p2838_p13 }
 0x31f   : > { %3094 = dma.done.wait (%p2839_p0), %s2681_s13, 2048  }
 0x320   : > { %3096 = vsyncadd (%p2839_p0), %s2681_s13, 4294965248  ;;  %p19_p3 = scmp.ge.s32.totalorder %s3210_s16, 4   ;;  %s5054_s18 = smov %s3103_s19 }
 0x321   : > { %s5055_s19 = smov %s3107_s20  ;;  %s5056_s20 = smov %s3219_s26 }
 0x322   : > { %s5057_s21 = smov %s3210_s16  ;;  %21 = sbr.rel (!%p19_p3) target bundleno = 6 (0x6), region = 93 }
 0x327   :  { %2687 = vsyncpa [#allocation3], 1 }
 0x328   :  { %2689 = vsyncpa [#allocation3 + $0x1], 1 }
 0x329   :  { %2690 = vsyncpa [#allocation6], 1 }
 0x32a   :  { %2691 = vsyncpa [#allocation4], 1 }
 0x32b   :  { %2693 = vsyncpa [#allocation4 + $0x1], 1 }

</bundles_post_ra>
